<compile_context>
chip_gen: v7x
topology: tpu7x:2x2x1
jax: 0.10.0
libtpu: 0.0.40
codegen_flags: <defaults>
</compile_context>

<pallas_src>
import functools

import jax
import jax.numpy as jnp
from jax.experimental import pallas as pl
from jax.experimental.pallas import tpu as pltpu


def _round_up(x, m):
    return -(-x // m) * m


def _generator_kernel(x_ref, w1_ref, b1_ref, w2_ref, b2_ref, w3_ref, b3_ref,
                      mask_ref, out_ref, feat_ref, h1_pad, h2_pad,
                      *, H, W, L):
    """Fused 3-layer 3x3 conv generator for one batch element.

    Layout: activations are channel-major with flattened padded-row spatial on the lane
    axis. Valid pixel (h, w) lives at flat column L + h*(W+2) + w; columns with
    (col % (W+2)) >= W are junk and are zeroed via `mask` (they double as the row halos).

    x_ref   : (cin_pad, PADH) bf16   zero-padded, flattened, interior at [L, L+N)
    wK_ref  : (9, coutK, cinK) bf16  one (cout, cin) matrix per 3x3 tap
    bK_ref  : (coutK, 1) f32
    mask_ref: (1, N) f32             1.0 on valid columns
    out_ref : (out_ch, H*W) bf16     output_original (compact)
    feat_ref: (hidden, H*W) bf16     out_original = h2 (compact)
    h1_pad, h2_pad : (hidden, PADH) bf16 scratch (padded activations of layers 1/2)
    """
    Wp = W + 2
    N = H * Wp
    base = L - (Wp + 1)          # flat index of padded position 0
    PADH = h1_pad.shape[1]
    tail = PADH - (L + N)

    def conv(src_ref, w_ref, b_ref):
        # 9-tap accumulation, each tap a small MXU matmul straight from shifted slices.
        acc = None
        for t in range(9):
            ky, kx = divmod(t, 3)
            off = base + ky * Wp + kx
            part = jnp.dot(w_ref[t], src_ref[:, off:off + N],
                           preferred_element_type=jnp.float32)
            acc = part if acc is None else acc + part
        return acc + b_ref[...]

    def zero_halo(ref):
        # Interior [L, L+N) is fully rewritten every step (junk cols re-zeroed by mask);
        # only the halo strips need clearing.  Cheap, and safe under megacore sharding.
        ref[:, 0:L] = jnp.zeros((ref.shape[0], L), ref.dtype)
        ref[:, L + N:PADH] = jnp.zeros((ref.shape[0], tail), ref.dtype)

    def store_compact(dst_ref, val):
        # Drop the 2 junk columns per row while writing back (no post-kernel slice copy).
        for h in range(H):
            dst_ref[:, h * W:(h + 1) * W] = val[:, h * Wp:h * Wp + W].astype(dst_ref.dtype)

    zero_halo(h1_pad)
    zero_halo(h2_pad)

    mask = mask_ref[...]                                           # (1, N) f32

    # ---- layer 1: in_ch(->cin_pad) -> hidden, relu --------------------------------
    h1 = jnp.maximum(conv(x_ref, w1_ref, b1_ref), 0.0) * mask
    h1_pad[:, L:L + N] = h1.astype(h1_pad.dtype)                   # lane-aligned store

    # ---- layer 2: hidden -> hidden, relu  (this is `out_original`) -----------------
    h2 = jnp.maximum(conv(h1_pad, w2_ref, b2_ref), 0.0) * mask
    store_compact(feat_ref, h2)
    h2_pad[:, L:L + N] = h2.astype(h2_pad.dtype)

    # ---- layer 3: hidden -> 3, tanh  (this is `output_original`) -------------------
    y = jnp.tanh(conv(h2_pad, w3_ref, b3_ref))
    store_compact(out_ref, y)


def init_generator_params(key, in_ch=3, hidden=32, out_ch=3):
    def conv_init(k, cin, cout):
        kw, kb = jax.random.split(k)
        w = jax.random.normal(kw, (3, 3, cin, cout), jnp.float32) / jnp.sqrt(9.0 * cin)
        b = 0.1 * jax.random.normal(kb, (cout,), jnp.float32)
        return w, b

    k1, k2, k3 = jax.random.split(key, 3)
    w1, b1 = conv_init(k1, in_ch, hidden)
    w2, b2 = conv_init(k2, hidden, hidden)
    w3, b3 = conv_init(k3, hidden, out_ch)
    return dict(w1=w1, b1=b1, w2=w2, b2=b2, w3=w3, b3=b3)


def generator_forward(params, images_nchw):
    B, Cin, H, W = images_nchw.shape
    hidden = params["w1"].shape[-1]
    out_ch = params["w3"].shape[-1]

    Wp = W + 2
    N = H * Wp                                  # flat (padded-row) output length
    HW = H * W                                  # compact output length
    cin_pad = _round_up(Cin, 16)                # bf16 native sublane packing
    L = _round_up(Wp + 1, 128)                  # lane-aligned interior start
    PADH = _round_up(L + N + Wp + 2, 128)       # flat scratch / input length
    lead = L - (Wp + 1)

    # Input: NCHW -> bf16, pad channels + 1-px spatial halo, flatten rows, align to L.
    x = images_nchw.astype(jnp.bfloat16)
    x = jnp.pad(x, ((0, 0), (0, cin_pad - Cin), (1, 1), (1, 1)))
    x = x.reshape(B, cin_pad, (H + 2) * Wp)
    x = jnp.pad(x, ((0, 0), (0, 0), (lead, PADH - lead - (H + 2) * Wp)))

    # Weights: (3,3,cin,cout) HWIO -> (9, cout, cin_pad) bf16 (one matrix per tap).
    def prep_w(w, cpad):
        kh, kw, cin, cout = w.shape
        w = jnp.pad(w, ((0, 0), (0, 0), (0, cpad - cin), (0, 0)))
        return jnp.transpose(w, (0, 1, 3, 2)).reshape(kh * kw, cout, cpad).astype(jnp.bfloat16)

    w1r = prep_w(params["w1"], cin_pad)         # (9, hidden, cin_pad)
    w2r = prep_w(params["w2"], hidden)          # (9, hidden, hidden)
    w3r = prep_w(params["w3"], hidden)          # (9, out_ch, hidden)
    b1 = params["b1"].reshape(hidden, 1).astype(jnp.float32)
    b2 = params["b2"].reshape(hidden, 1).astype(jnp.float32)
    b3 = params["b3"].reshape(out_ch, 1).astype(jnp.float32)

    # Valid-column mask for the flattened padded-row layout.
    col = jnp.arange(N, dtype=jnp.int32) % Wp
    mask = (col < W).astype(jnp.float32).reshape(1, N)

    kernel = functools.partial(_generator_kernel, H=H, W=W, L=L)

    # Rough VMEM residency estimate -> explicit scoped limit (v5e defaults to only 16 MiB).
    bf = 2
    est = (2 * cin_pad * PADH * bf                                   # x (double-buffered)
           + 2 * (out_ch + hidden) * HW * bf                         # outputs (double-buffered)
           + 9 * (hidden * cin_pad + hidden * hidden + out_ch * hidden) * bf
           + (2 * hidden + out_ch) * 4 + N * 4                       # biases + mask
           + 2 * hidden * PADH * bf)                                 # padded scratch
    vmem_limit = int(min(64 << 20, max(32 << 20, 2 * est)))

    out_flat, feat_flat = pl.pallas_call(
        kernel,
        out_shape=(jax.ShapeDtypeStruct((B, out_ch, HW), jnp.bfloat16),
                   jax.ShapeDtypeStruct((B, hidden, HW), jnp.bfloat16)),
        grid=(B,),
        in_specs=[
            pl.BlockSpec((None, cin_pad, PADH), lambda b: (b, 0, 0)),
            pl.BlockSpec((9, hidden, cin_pad), lambda b: (0, 0, 0)),
            pl.BlockSpec((hidden, 1), lambda b: (0, 0)),
            pl.BlockSpec((9, hidden, hidden), lambda b: (0, 0, 0)),
            pl.BlockSpec((hidden, 1), lambda b: (0, 0)),
            pl.BlockSpec((9, out_ch, hidden), lambda b: (0, 0, 0)),
            pl.BlockSpec((out_ch, 1), lambda b: (0, 0)),
            pl.BlockSpec((1, N), lambda b: (0, 0)),
        ],
        out_specs=(pl.BlockSpec((None, out_ch, HW), lambda b: (b, 0, 0)),
                   pl.BlockSpec((None, hidden, HW), lambda b: (b, 0, 0))),
        scratch_shapes=[
            pltpu.VMEM((hidden, PADH), jnp.bfloat16),       # padded h1
            pltpu.VMEM((hidden, PADH), jnp.bfloat16),       # padded h2
        ],
        compiler_params=pltpu.CompilerParams(
            dimension_semantics=("parallel",),
            vmem_limit_bytes=vmem_limit),
    )(x, w1r, b1, w2r, b2, w3r, b3, mask)

    # Outputs are already compact (H*W); reshape is metadata-only.
    output_original = out_flat.reshape(B, out_ch, H, W)
    out_original = feat_flat.reshape(B, hidden, H, W)
    return output_original, out_original


def teacher_forward(params, images, masks):
    # Matches TeacherModel.forward: masks are accepted but unused; generator only.
    del masks
    return generator_forward(params, images)


def _reference_forward(params, images):
    """Pure-JAX reference mirroring the kernel numerics (bf16 inputs, f32 accumulation)."""
    x = jnp.transpose(images, (0, 2, 3, 1)).astype(jnp.bfloat16)

    def conv(x_bf16, w, b, act):
        y = jax.lax.conv_general_dilated(
            x_bf16, w.astype(jnp.bfloat16), (1, 1), "SAME",
            dimension_numbers=("NHWC", "HWIO", "NHWC"),
            preferred_element_type=jnp.float32)
        y = y + b
        return jnp.maximum(y, 0.0) if act == "relu" else jnp.tanh(y)

    h1 = conv(x, params["w1"], params["b1"], "relu")
    h2 = conv(h1.astype(jnp.bfloat16), params["w2"], params["b2"], "relu")
    y = conv(h2.astype(jnp.bfloat16), params["w3"], params["b3"], "tanh")
    return jnp.transpose(y, (0, 3, 1, 2)), jnp.transpose(h2, (0, 3, 1, 2))


if __name__ == "__main__":
    key = jax.random.PRNGKey(0)
    kp, kx, km = jax.random.split(key, 3)

    B, C, H, W = 2, 3, 16, 16
    images = jax.random.normal(kx, (B, C, H, W), jnp.float32)
    masks = (jax.random.uniform(km, (B, 1, H, W)) > 0.5).astype(jnp.float32)

    params = init_generator_params(kp)

    out, feat = jax.jit(teacher_forward)(params, images, masks)
    out, feat = jax.block_until_ready((out, feat))

    assert out.shape == (B, 3, H, W)
    assert feat.shape == (B, 32, H, W)

    ref_out, ref_feat = _reference_forward(params, images)
    err_out = float(jnp.max(jnp.abs(out.astype(jnp.float32) - ref_out)))
    err_feat = float(jnp.max(jnp.abs(feat.astype(jnp.float32) - ref_feat)))
    # Outputs are bf16 (perf choice); allow bf16 quantization error.
    assert err_out < 2e-2, err_out
    assert err_feat < 5e-2, err_feat

    print("KERNEL_OK")
</pallas_src>

<mosaic_0001>
module attributes {stable_mosaic.version = 11 : i64} {
  func.func @_generator_kernel(%arg0: i32, %arg1: memref<1x16x512xbf16, #tpu.memory_space<vmem>>, %arg2: memref<9x32x16xbf16, #tpu.memory_space<vmem>>, %arg3: memref<32x1xf32, #tpu.memory_space<vmem>>, %arg4: memref<9x32x32xbf16, #tpu.memory_space<vmem>>, %arg5: memref<32x1xf32, #tpu.memory_space<vmem>>, %arg6: memref<9x3x32xbf16, #tpu.memory_space<vmem>>, %arg7: memref<3x1xf32, #tpu.memory_space<vmem>>, %arg8: memref<1x288xf32, #tpu.memory_space<vmem>>, %arg9: memref<1x3x256xbf16, #tpu.memory_space<vmem>>, %arg10: memref<1x32x256xbf16, #tpu.memory_space<vmem>>, %arg11: memref<32x512xbf16, #tpu.memory_space<vmem>>, %arg12: memref<32x512xbf16, #tpu.memory_space<vmem>>) attributes {dimension_semantics = [#tpu.dimension_semantics<parallel>], iteration_bounds = array<i64: 2>, scalar_prefetch = 0 : i64, scratch_operands = 2 : i64, tpu.core_type = #tpu.core_type<tc>, window_params = [{transform_indices = @transform_0, window_bounds = array<i64: 1, 16, 512>}, {pipeline_mode = #tpu.pipeline_mode<synchronous>, transform_indices = @transform_1, window_bounds = array<i64: 9, 32, 16>}, {pipeline_mode = #tpu.pipeline_mode<synchronous>, transform_indices = @transform_2, window_bounds = array<i64: 32, 1>}, {pipeline_mode = #tpu.pipeline_mode<synchronous>, transform_indices = @transform_3, window_bounds = array<i64: 9, 32, 32>}, {pipeline_mode = #tpu.pipeline_mode<synchronous>, transform_indices = @transform_4, window_bounds = array<i64: 32, 1>}, {pipeline_mode = #tpu.pipeline_mode<synchronous>, transform_indices = @transform_5, window_bounds = array<i64: 9, 3, 32>}, {pipeline_mode = #tpu.pipeline_mode<synchronous>, transform_indices = @transform_6, window_bounds = array<i64: 3, 1>}, {pipeline_mode = #tpu.pipeline_mode<synchronous>, transform_indices = @transform_7, window_bounds = array<i64: 1, 288>}, {transform_indices = @transform_8, window_bounds = array<i64: 1, 3, 256>}, {transform_indices = @transform_9, window_bounds = array<i64: 1, 32, 256>}]} {
    %cst = arith.constant 0.000000e+00 : bf16
    %0 = vector.broadcast %cst : bf16 to vector<32x128xbf16>
    %c0 = arith.constant 0 : index
    %c0_0 = arith.constant 0 : index
    %1 = vector.load %arg11[%c0, %c0_0] : memref<32x512xbf16, #tpu.memory_space<vmem>>, vector<32x128xbf16>
    tpu.vector_store %arg11[%c0, %c0_0], %0 {strides = array<i32>} : memref<32x512xbf16, #tpu.memory_space<vmem>>, vector<32x128xbf16>,
    %cst_1 = arith.constant 0.000000e+00 : bf16
    %2 = vector.broadcast %cst_1 : bf16 to vector<32x96xbf16>
    %c0_2 = arith.constant 0 : index
    %c416 = arith.constant 416 : index
    %3 = vector.load %arg11[%c0_2, %c416] : memref<32x512xbf16, #tpu.memory_space<vmem>>, vector<32x96xbf16>
    tpu.vector_store %arg11[%c0_2, %c416], %2 {strides = array<i32>} : memref<32x512xbf16, #tpu.memory_space<vmem>>, vector<32x96xbf16>,
    %cst_3 = arith.constant 0.000000e+00 : bf16
    %4 = vector.broadcast %cst_3 : bf16 to vector<32x128xbf16>
    %c0_4 = arith.constant 0 : index
    %c0_5 = arith.constant 0 : index
    %5 = vector.load %arg12[%c0_4, %c0_5] : memref<32x512xbf16, #tpu.memory_space<vmem>>, vector<32x128xbf16>
    tpu.vector_store %arg12[%c0_4, %c0_5], %4 {strides = array<i32>} : memref<32x512xbf16, #tpu.memory_space<vmem>>, vector<32x128xbf16>,
    %cst_6 = arith.constant 0.000000e+00 : bf16
    %6 = vector.broadcast %cst_6 : bf16 to vector<32x96xbf16>
    %c0_7 = arith.constant 0 : index
    %c416_8 = arith.constant 416 : index
    %7 = vector.load %arg12[%c0_7, %c416_8] : memref<32x512xbf16, #tpu.memory_space<vmem>>, vector<32x96xbf16>
    tpu.vector_store %arg12[%c0_7, %c416_8], %6 {strides = array<i32>} : memref<32x512xbf16, #tpu.memory_space<vmem>>, vector<32x96xbf16>,
    %c0_9 = arith.constant 0 : index
    %c0_10 = arith.constant 0 : index
    %8 = vector.load %arg8[%c0_9, %c0_10] : memref<1x288xf32, #tpu.memory_space<vmem>>, vector<1x288xf32>
    %c0_11 = arith.constant 0 : index
    %c0_12 = arith.constant 0 : index
    %c0_13 = arith.constant 0 : index
    %9 = vector.load %arg2[%c0_11, %c0_12, %c0_13] : memref<9x32x16xbf16, #tpu.memory_space<vmem>>, vector<1x32x16xbf16>
    %10 = vector.shape_cast %9 : vector<1x32x16xbf16> to vector<32x16xbf16>
    %c0_14 = arith.constant 0 : index
    %c0_15 = arith.constant 0 : index
    %c109 = arith.constant 109 : index
    %11 = vector.load %arg1[%c0_14, %c0_15, %c109] : memref<1x16x512xbf16, #tpu.memory_space<vmem>>, vector<1x16x288xbf16>
    %12 = vector.shape_cast %11 : vector<1x16x288xbf16> to vector<16x288xbf16>
    %cst_16 = arith.constant dense<0.000000e+00> : vector<32x288xf32>
    %13 = tpu.matmul %10, %12, %cst_16 {dimension_numbers = #tpu.dot_dimension_numbers<[1], [0], [0], [1], [0, 0, 1, 1], [], []>} : vector<32x16xbf16>, vector<16x288xbf16>, vector<32x288xf32> -> vector<32x288xf32>
    %c1 = arith.constant 1 : index
    %c0_17 = arith.constant 0 : index
    %c0_18 = arith.constant 0 : index
    %14 = vector.load %arg2[%c1, %c0_17, %c0_18] : memref<9x32x16xbf16, #tpu.memory_space<vmem>>, vector<1x32x16xbf16>
    %15 = vector.shape_cast %14 : vector<1x32x16xbf16> to vector<32x16xbf16>
    %c0_19 = arith.constant 0 : index
    %c0_20 = arith.constant 0 : index
    %c110 = arith.constant 110 : index
    %16 = vector.load %arg1[%c0_19, %c0_20, %c110] : memref<1x16x512xbf16, #tpu.memory_space<vmem>>, vector<1x16x288xbf16>
    %17 = vector.shape_cast %16 : vector<1x16x288xbf16> to vector<16x288xbf16>
    %cst_21 = arith.constant dense<0.000000e+00> : vector<32x288xf32>
    %18 = tpu.matmul %15, %17, %cst_21 {dimension_numbers = #tpu.dot_dimension_numbers<[1], [0], [0], [1], [0, 0, 1, 1], [], []>} : vector<32x16xbf16>, vector<16x288xbf16>, vector<32x288xf32> -> vector<32x288xf32>
    %19 = arith.addf %13, %18 : vector<32x288xf32>
    %c2 = arith.constant 2 : index
    %c0_22 = arith.constant 0 : index
    %c0_23 = arith.constant 0 : index
    %20 = vector.load %arg2[%c2, %c0_22, %c0_23] : memref<9x32x16xbf16, #tpu.memory_space<vmem>>, vector<1x32x16xbf16>
    %21 = vector.shape_cast %20 : vector<1x32x16xbf16> to vector<32x16xbf16>
    %c0_24 = arith.constant 0 : index
    %c0_25 = arith.constant 0 : index
    %c111 = arith.constant 111 : index
    %22 = vector.load %arg1[%c0_24, %c0_25, %c111] : memref<1x16x512xbf16, #tpu.memory_space<vmem>>, vector<1x16x288xbf16>
    %23 = vector.shape_cast %22 : vector<1x16x288xbf16> to vector<16x288xbf16>
    %cst_26 = arith.constant dense<0.000000e+00> : vector<32x288xf32>
    %24 = tpu.matmul %21, %23, %cst_26 {dimension_numbers = #tpu.dot_dimension_numbers<[1], [0], [0], [1], [0, 0, 1, 1], [], []>} : vector<32x16xbf16>, vector<16x288xbf16>, vector<32x288xf32> -> vector<32x288xf32>
    %25 = arith.addf %19, %24 : vector<32x288xf32>
    %c3 = arith.constant 3 : index
    %c0_27 = arith.constant 0 : index
    %c0_28 = arith.constant 0 : index
    %26 = vector.load %arg2[%c3, %c0_27, %c0_28] : memref<9x32x16xbf16, #tpu.memory_space<vmem>>, vector<1x32x16xbf16>
    %27 = vector.shape_cast %26 : vector<1x32x16xbf16> to vector<32x16xbf16>
    %c0_29 = arith.constant 0 : index
    %c0_30 = arith.constant 0 : index
    %c127 = arith.constant 127 : index
    %28 = vector.load %arg1[%c0_29, %c0_30, %c127] : memref<1x16x512xbf16, #tpu.memory_space<vmem>>, vector<1x16x288xbf16>
    %29 = vector.shape_cast %28 : vector<1x16x288xbf16> to vector<16x288xbf16>
    %cst_31 = arith.constant dense<0.000000e+00> : vector<32x288xf32>
    %30 = tpu.matmul %27, %29, %cst_31 {dimension_numbers = #tpu.dot_dimension_numbers<[1], [0], [0], [1], [0, 0, 1, 1], [], []>} : vector<32x16xbf16>, vector<16x288xbf16>, vector<32x288xf32> -> vector<32x288xf32>
    %31 = arith.addf %25, %30 : vector<32x288xf32>
    %c4 = arith.constant 4 : index
    %c0_32 = arith.constant 0 : index
    %c0_33 = arith.constant 0 : index
    %32 = vector.load %arg2[%c4, %c0_32, %c0_33] : memref<9x32x16xbf16, #tpu.memory_space<vmem>>, vector<1x32x16xbf16>
    %33 = vector.shape_cast %32 : vector<1x32x16xbf16> to vector<32x16xbf16>
    %c0_34 = arith.constant 0 : index
    %c0_35 = arith.constant 0 : index
    %c128 = arith.constant 128 : index
    %34 = vector.load %arg1[%c0_34, %c0_35, %c128] : memref<1x16x512xbf16, #tpu.memory_space<vmem>>, vector<1x16x288xbf16>
    %35 = vector.shape_cast %34 : vector<1x16x288xbf16> to vector<16x288xbf16>
    %cst_36 = arith.constant dense<0.000000e+00> : vector<32x288xf32>
    %36 = tpu.matmul %33, %35, %cst_36 {dimension_numbers = #tpu.dot_dimension_numbers<[1], [0], [0], [1], [0, 0, 1, 1], [], []>} : vector<32x16xbf16>, vector<16x288xbf16>, vector<32x288xf32> -> vector<32x288xf32>
    %37 = arith.addf %31, %36 : vector<32x288xf32>
    %c5 = arith.constant 5 : index
    %c0_37 = arith.constant 0 : index
    %c0_38 = arith.constant 0 : index
    %38 = vector.load %arg2[%c5, %c0_37, %c0_38] : memref<9x32x16xbf16, #tpu.memory_space<vmem>>, vector<1x32x16xbf16>
    %39 = vector.shape_cast %38 : vector<1x32x16xbf16> to vector<32x16xbf16>
    %c0_39 = arith.constant 0 : index
    %c0_40 = arith.constant 0 : index
    %c129 = arith.constant 129 : index
    %40 = vector.load %arg1[%c0_39, %c0_40, %c129] : memref<1x16x512xbf16, #tpu.memory_space<vmem>>, vector<1x16x288xbf16>
    %41 = vector.shape_cast %40 : vector<1x16x288xbf16> to vector<16x288xbf16>
    %cst_41 = arith.constant dense<0.000000e+00> : vector<32x288xf32>
    %42 = tpu.matmul %39, %41, %cst_41 {dimension_numbers = #tpu.dot_dimension_numbers<[1], [0], [0], [1], [0, 0, 1, 1], [], []>} : vector<32x16xbf16>, vector<16x288xbf16>, vector<32x288xf32> -> vector<32x288xf32>
    %43 = arith.addf %37, %42 : vector<32x288xf32>
    %c6 = arith.constant 6 : index
    %c0_42 = arith.constant 0 : index
    %c0_43 = arith.constant 0 : index
    %44 = vector.load %arg2[%c6, %c0_42, %c0_43] : memref<9x32x16xbf16, #tpu.memory_space<vmem>>, vector<1x32x16xbf16>
    %45 = vector.shape_cast %44 : vector<1x32x16xbf16> to vector<32x16xbf16>
    %c0_44 = arith.constant 0 : index
    %c0_45 = arith.constant 0 : index
    %c145 = arith.constant 145 : index
    %46 = vector.load %arg1[%c0_44, %c0_45, %c145] : memref<1x16x512xbf16, #tpu.memory_space<vmem>>, vector<1x16x288xbf16>
    %47 = vector.shape_cast %46 : vector<1x16x288xbf16> to vector<16x288xbf16>
    %cst_46 = arith.constant dense<0.000000e+00> : vector<32x288xf32>
    %48 = tpu.matmul %45, %47, %cst_46 {dimension_numbers = #tpu.dot_dimension_numbers<[1], [0], [0], [1], [0, 0, 1, 1], [], []>} : vector<32x16xbf16>, vector<16x288xbf16>, vector<32x288xf32> -> vector<32x288xf32>
    %49 = arith.addf %43, %48 : vector<32x288xf32>
    %c7 = arith.constant 7 : index
    %c0_47 = arith.constant 0 : index
    %c0_48 = arith.constant 0 : index
    %50 = vector.load %arg2[%c7, %c0_47, %c0_48] : memref<9x32x16xbf16, #tpu.memory_space<vmem>>, vector<1x32x16xbf16>
    %51 = vector.shape_cast %50 : vector<1x32x16xbf16> to vector<32x16xbf16>
    %c0_49 = arith.constant 0 : index
    %c0_50 = arith.constant 0 : index
    %c146 = arith.constant 146 : index
    %52 = vector.load %arg1[%c0_49, %c0_50, %c146] : memref<1x16x512xbf16, #tpu.memory_space<vmem>>, vector<1x16x288xbf16>
    %53 = vector.shape_cast %52 : vector<1x16x288xbf16> to vector<16x288xbf16>
    %cst_51 = arith.constant dense<0.000000e+00> : vector<32x288xf32>
    %54 = tpu.matmul %51, %53, %cst_51 {dimension_numbers = #tpu.dot_dimension_numbers<[1], [0], [0], [1], [0, 0, 1, 1], [], []>} : vector<32x16xbf16>, vector<16x288xbf16>, vector<32x288xf32> -> vector<32x288xf32>
    %55 = arith.addf %49, %54 : vector<32x288xf32>
    %c8 = arith.constant 8 : index
    %c0_52 = arith.constant 0 : index
    %c0_53 = arith.constant 0 : index
    %56 = vector.load %arg2[%c8, %c0_52, %c0_53] : memref<9x32x16xbf16, #tpu.memory_space<vmem>>, vector<1x32x16xbf16>
    %57 = vector.shape_cast %56 : vector<1x32x16xbf16> to vector<32x16xbf16>
    %c0_54 = arith.constant 0 : index
    %c0_55 = arith.constant 0 : index
    %c147 = arith.constant 147 : index
    %58 = vector.load %arg1[%c0_54, %c0_55, %c147] : memref<1x16x512xbf16, #tpu.memory_space<vmem>>, vector<1x16x288xbf16>
    %59 = vector.shape_cast %58 : vector<1x16x288xbf16> to vector<16x288xbf16>
    %cst_56 = arith.constant dense<0.000000e+00> : vector<32x288xf32>
    %60 = tpu.matmul %57, %59, %cst_56 {dimension_numbers = #tpu.dot_dimension_numbers<[1], [0], [0], [1], [0, 0, 1, 1], [], []>} : vector<32x16xbf16>, vector<16x288xbf16>, vector<32x288xf32> -> vector<32x288xf32>
    %61 = arith.addf %55, %60 : vector<32x288xf32>
    %c0_57 = arith.constant 0 : index
    %c0_58 = arith.constant 0 : index
    %62 = vector.load %arg3[%c0_57, %c0_58] : memref<32x1xf32, #tpu.memory_space<vmem>>, vector<32x1xf32>
    %63 = vector.broadcast %62 : vector<32x1xf32> to vector<32x288xf32>
    %64 = arith.addf %61, %63 : vector<32x288xf32>
    %cst_59 = arith.constant 0.000000e+00 : f32
    %65 = vector.broadcast %cst_59 : f32 to vector<32x288xf32>
    %66 = arith.maximumf %64, %65 : vector<32x288xf32>
    %67 = vector.broadcast %8 : vector<1x288xf32> to vector<32x288xf32>
    %68 = arith.mulf %66, %67 : vector<32x288xf32>
    %69 = arith.truncf %68 : vector<32x288xf32> to vector<32x288xbf16>
    %c0_60 = arith.constant 0 : index
    %c128_61 = arith.constant 128 : index
    %70 = vector.load %arg11[%c0_60, %c128_61] : memref<32x512xbf16, #tpu.memory_space<vmem>>, vector<32x288xbf16>
    tpu.vector_store %arg11[%c0_60, %c128_61], %69 {strides = array<i32>} : memref<32x512xbf16, #tpu.memory_space<vmem>>, vector<32x288xbf16>,
    %c0_62 = arith.constant 0 : index
    %c0_63 = arith.constant 0 : index
    %c0_64 = arith.constant 0 : index
    %71 = vector.load %arg4[%c0_62, %c0_63, %c0_64] : memref<9x32x32xbf16, #tpu.memory_space<vmem>>, vector<1x32x32xbf16>
    %72 = vector.shape_cast %71 : vector<1x32x32xbf16> to vector<32x32xbf16>
    %c0_65 = arith.constant 0 : index
    %c109_66 = arith.constant 109 : index
    %73 = vector.load %arg11[%c0_65, %c109_66] : memref<32x512xbf16, #tpu.memory_space<vmem>>, vector<32x288xbf16>
    %cst_67 = arith.constant dense<0.000000e+00> : vector<32x288xf32>
    %74 = tpu.matmul %72, %73, %cst_67 {dimension_numbers = #tpu.dot_dimension_numbers<[1], [0], [0], [1], [0, 0, 1, 1], [], []>} : vector<32x32xbf16>, vector<32x288xbf16>, vector<32x288xf32> -> vector<32x288xf32>
    %c1_68 = arith.constant 1 : index
    %c0_69 = arith.constant 0 : index
    %c0_70 = arith.constant 0 : index
    %75 = vector.load %arg4[%c1_68, %c0_69, %c0_70] : memref<9x32x32xbf16, #tpu.memory_space<vmem>>, vector<1x32x32xbf16>
    %76 = vector.shape_cast %75 : vector<1x32x32xbf16> to vector<32x32xbf16>
    %c0_71 = arith.constant 0 : index
    %c110_72 = arith.constant 110 : index
    %77 = vector.load %arg11[%c0_71, %c110_72] : memref<32x512xbf16, #tpu.memory_space<vmem>>, vector<32x288xbf16>
    %cst_73 = arith.constant dense<0.000000e+00> : vector<32x288xf32>
    %78 = tpu.matmul %76, %77, %cst_73 {dimension_numbers = #tpu.dot_dimension_numbers<[1], [0], [0], [1], [0, 0, 1, 1], [], []>} : vector<32x32xbf16>, vector<32x288xbf16>, vector<32x288xf32> -> vector<32x288xf32>
    %79 = arith.addf %74, %78 : vector<32x288xf32>
    %c2_74 = arith.constant 2 : index
    %c0_75 = arith.constant 0 : index
    %c0_76 = arith.constant 0 : index
    %80 = vector.load %arg4[%c2_74, %c0_75, %c0_76] : memref<9x32x32xbf16, #tpu.memory_space<vmem>>, vector<1x32x32xbf16>
    %81 = vector.shape_cast %80 : vector<1x32x32xbf16> to vector<32x32xbf16>
    %c0_77 = arith.constant 0 : index
    %c111_78 = arith.constant 111 : index
    %82 = vector.load %arg11[%c0_77, %c111_78] : memref<32x512xbf16, #tpu.memory_space<vmem>>, vector<32x288xbf16>
    %cst_79 = arith.constant dense<0.000000e+00> : vector<32x288xf32>
    %83 = tpu.matmul %81, %82, %cst_79 {dimension_numbers = #tpu.dot_dimension_numbers<[1], [0], [0], [1], [0, 0, 1, 1], [], []>} : vector<32x32xbf16>, vector<32x288xbf16>, vector<32x288xf32> -> vector<32x288xf32>
    %84 = arith.addf %79, %83 : vector<32x288xf32>
    %c3_80 = arith.constant 3 : index
    %c0_81 = arith.constant 0 : index
    %c0_82 = arith.constant 0 : index
    %85 = vector.load %arg4[%c3_80, %c0_81, %c0_82] : memref<9x32x32xbf16, #tpu.memory_space<vmem>>, vector<1x32x32xbf16>
    %86 = vector.shape_cast %85 : vector<1x32x32xbf16> to vector<32x32xbf16>
    %c0_83 = arith.constant 0 : index
    %c127_84 = arith.constant 127 : index
    %87 = vector.load %arg11[%c0_83, %c127_84] : memref<32x512xbf16, #tpu.memory_space<vmem>>, vector<32x288xbf16>
    %cst_85 = arith.constant dense<0.000000e+00> : vector<32x288xf32>
    %88 = tpu.matmul %86, %87, %cst_85 {dimension_numbers = #tpu.dot_dimension_numbers<[1], [0], [0], [1], [0, 0, 1, 1], [], []>} : vector<32x32xbf16>, vector<32x288xbf16>, vector<32x288xf32> -> vector<32x288xf32>
    %89 = arith.addf %84, %88 : vector<32x288xf32>
    %c4_86 = arith.constant 4 : index
    %c0_87 = arith.constant 0 : index
    %c0_88 = arith.constant 0 : index
    %90 = vector.load %arg4[%c4_86, %c0_87, %c0_88] : memref<9x32x32xbf16, #tpu.memory_space<vmem>>, vector<1x32x32xbf16>
    %91 = vector.shape_cast %90 : vector<1x32x32xbf16> to vector<32x32xbf16>
    %c0_89 = arith.constant 0 : index
    %c128_90 = arith.constant 128 : index
    %92 = vector.load %arg11[%c0_89, %c128_90] : memref<32x512xbf16, #tpu.memory_space<vmem>>, vector<32x288xbf16>
    %cst_91 = arith.constant dense<0.000000e+00> : vector<32x288xf32>
    %93 = tpu.matmul %91, %92, %cst_91 {dimension_numbers = #tpu.dot_dimension_numbers<[1], [0], [0], [1], [0, 0, 1, 1], [], []>} : vector<32x32xbf16>, vector<32x288xbf16>, vector<32x288xf32> -> vector<32x288xf32>
    %94 = arith.addf %89, %93 : vector<32x288xf32>
    %c5_92 = arith.constant 5 : index
    %c0_93 = arith.constant 0 : index
    %c0_94 = arith.constant 0 : index
    %95 = vector.load %arg4[%c5_92, %c0_93, %c0_94] : memref<9x32x32xbf16, #tpu.memory_space<vmem>>, vector<1x32x32xbf16>
    %96 = vector.shape_cast %95 : vector<1x32x32xbf16> to vector<32x32xbf16>
    %c0_95 = arith.constant 0 : index
    %c129_96 = arith.constant 129 : index
    %97 = vector.load %arg11[%c0_95, %c129_96] : memref<32x512xbf16, #tpu.memory_space<vmem>>, vector<32x288xbf16>
    %cst_97 = arith.constant dense<0.000000e+00> : vector<32x288xf32>
    %98 = tpu.matmul %96, %97, %cst_97 {dimension_numbers = #tpu.dot_dimension_numbers<[1], [0], [0], [1], [0, 0, 1, 1], [], []>} : vector<32x32xbf16>, vector<32x288xbf16>, vector<32x288xf32> -> vector<32x288xf32>
    %99 = arith.addf %94, %98 : vector<32x288xf32>
    %c6_98 = arith.constant 6 : index
    %c0_99 = arith.constant 0 : index
    %c0_100 = arith.constant 0 : index
    %100 = vector.load %arg4[%c6_98, %c0_99, %c0_100] : memref<9x32x32xbf16, #tpu.memory_space<vmem>>, vector<1x32x32xbf16>
    %101 = vector.shape_cast %100 : vector<1x32x32xbf16> to vector<32x32xbf16>
    %c0_101 = arith.constant 0 : index
    %c145_102 = arith.constant 145 : index
    %102 = vector.load %arg11[%c0_101, %c145_102] : memref<32x512xbf16, #tpu.memory_space<vmem>>, vector<32x288xbf16>
    %cst_103 = arith.constant dense<0.000000e+00> : vector<32x288xf32>
    %103 = tpu.matmul %101, %102, %cst_103 {dimension_numbers = #tpu.dot_dimension_numbers<[1], [0], [0], [1], [0, 0, 1, 1], [], []>} : vector<32x32xbf16>, vector<32x288xbf16>, vector<32x288xf32> -> vector<32x288xf32>
    %104 = arith.addf %99, %103 : vector<32x288xf32>
    %c7_104 = arith.constant 7 : index
    %c0_105 = arith.constant 0 : index
    %c0_106 = arith.constant 0 : index
    %105 = vector.load %arg4[%c7_104, %c0_105, %c0_106] : memref<9x32x32xbf16, #tpu.memory_space<vmem>>, vector<1x32x32xbf16>
    %106 = vector.shape_cast %105 : vector<1x32x32xbf16> to vector<32x32xbf16>
    %c0_107 = arith.constant 0 : index
    %c146_108 = arith.constant 146 : index
    %107 = vector.load %arg11[%c0_107, %c146_108] : memref<32x512xbf16, #tpu.memory_space<vmem>>, vector<32x288xbf16>
    %cst_109 = arith.constant dense<0.000000e+00> : vector<32x288xf32>
    %108 = tpu.matmul %106, %107, %cst_109 {dimension_numbers = #tpu.dot_dimension_numbers<[1], [0], [0], [1], [0, 0, 1, 1], [], []>} : vector<32x32xbf16>, vector<32x288xbf16>, vector<32x288xf32> -> vector<32x288xf32>
    %109 = arith.addf %104, %108 : vector<32x288xf32>
    %c8_110 = arith.constant 8 : index
    %c0_111 = arith.constant 0 : index
    %c0_112 = arith.constant 0 : index
    %110 = vector.load %arg4[%c8_110, %c0_111, %c0_112] : memref<9x32x32xbf16, #tpu.memory_space<vmem>>, vector<1x32x32xbf16>
    %111 = vector.shape_cast %110 : vector<1x32x32xbf16> to vector<32x32xbf16>
    %c0_113 = arith.constant 0 : index
    %c147_114 = arith.constant 147 : index
    %112 = vector.load %arg11[%c0_113, %c147_114] : memref<32x512xbf16, #tpu.memory_space<vmem>>, vector<32x288xbf16>
    %cst_115 = arith.constant dense<0.000000e+00> : vector<32x288xf32>
    %113 = tpu.matmul %111, %112, %cst_115 {dimension_numbers = #tpu.dot_dimension_numbers<[1], [0], [0], [1], [0, 0, 1, 1], [], []>} : vector<32x32xbf16>, vector<32x288xbf16>, vector<32x288xf32> -> vector<32x288xf32>
    %114 = arith.addf %109, %113 : vector<32x288xf32>
    %c0_116 = arith.constant 0 : index
    %c0_117 = arith.constant 0 : index
    %115 = vector.load %arg5[%c0_116, %c0_117] : memref<32x1xf32, #tpu.memory_space<vmem>>, vector<32x1xf32>
    %116 = vector.broadcast %115 : vector<32x1xf32> to vector<32x288xf32>
    %117 = arith.addf %114, %116 : vector<32x288xf32>
    %cst_118 = arith.constant 0.000000e+00 : f32
    %118 = vector.broadcast %cst_118 : f32 to vector<32x288xf32>
    %119 = arith.maximumf %117, %118 : vector<32x288xf32>
    %120 = vector.broadcast %8 : vector<1x288xf32> to vector<32x288xf32>
    %121 = arith.mulf %119, %120 : vector<32x288xf32>
    %122 = vector.extract_strided_slice %121 {offsets = [0, 0], sizes = [32, 16], strides = [1, 1]} : vector<32x288xf32> to vector<32x16xf32>
    %123 = arith.truncf %122 : vector<32x16xf32> to vector<32x16xbf16>
    %c0_119 = arith.constant 0 : index
    %c0_120 = arith.constant 0 : index
    %c0_121 = arith.constant 0 : index
    %124 = vector.load %arg10[%c0_119, %c0_120, %c0_121] : memref<1x32x256xbf16, #tpu.memory_space<vmem>>, vector<1x32x16xbf16>
    %125 = vector.shape_cast %124 : vector<1x32x16xbf16> to vector<32x16xbf16>
    %126 = vector.shape_cast %123 : vector<32x16xbf16> to vector<1x32x16xbf16>
    tpu.vector_store %arg10[%c0_119, %c0_120, %c0_121], %126 {strides = array<i32>} : memref<1x32x256xbf16, #tpu.memory_space<vmem>>, vector<1x32x16xbf16>,
    %127 = vector.extract_strided_slice %121 {offsets = [0, 18], sizes = [32, 16], strides = [1, 1]} : vector<32x288xf32> to vector<32x16xf32>
    %128 = arith.truncf %127 : vector<32x16xf32> to vector<32x16xbf16>
    %c0_122 = arith.constant 0 : index
    %c0_123 = arith.constant 0 : index
    %c16 = arith.constant 16 : index
    %129 = vector.load %arg10[%c0_122, %c0_123, %c16] : memref<1x32x256xbf16, #tpu.memory_space<vmem>>, vector<1x32x16xbf16>
    %130 = vector.shape_cast %129 : vector<1x32x16xbf16> to vector<32x16xbf16>
    %131 = vector.shape_cast %128 : vector<32x16xbf16> to vector<1x32x16xbf16>
    tpu.vector_store %arg10[%c0_122, %c0_123, %c16], %131 {strides = array<i32>} : memref<1x32x256xbf16, #tpu.memory_space<vmem>>, vector<1x32x16xbf16>,
    %132 = vector.extract_strided_slice %121 {offsets = [0, 36], sizes = [32, 16], strides = [1, 1]} : vector<32x288xf32> to vector<32x16xf32>
    %133 = arith.truncf %132 : vector<32x16xf32> to vector<32x16xbf16>
    %c0_124 = arith.constant 0 : index
    %c0_125 = arith.constant 0 : index
    %c32 = arith.constant 32 : index
    %134 = vector.load %arg10[%c0_124, %c0_125, %c32] : memref<1x32x256xbf16, #tpu.memory_space<vmem>>, vector<1x32x16xbf16>
    %135 = vector.shape_cast %134 : vector<1x32x16xbf16> to vector<32x16xbf16>
    %136 = vector.shape_cast %133 : vector<32x16xbf16> to vector<1x32x16xbf16>
    tpu.vector_store %arg10[%c0_124, %c0_125, %c32], %136 {strides = array<i32>} : memref<1x32x256xbf16, #tpu.memory_space<vmem>>, vector<1x32x16xbf16>,
    %137 = vector.extract_strided_slice %121 {offsets = [0, 54], sizes = [32, 16], strides = [1, 1]} : vector<32x288xf32> to vector<32x16xf32>
    %138 = arith.truncf %137 : vector<32x16xf32> to vector<32x16xbf16>
    %c0_126 = arith.constant 0 : index
    %c0_127 = arith.constant 0 : index
    %c48 = arith.constant 48 : index
    %139 = vector.load %arg10[%c0_126, %c0_127, %c48] : memref<1x32x256xbf16, #tpu.memory_space<vmem>>, vector<1x32x16xbf16>
    %140 = vector.shape_cast %139 : vector<1x32x16xbf16> to vector<32x16xbf16>
    %141 = vector.shape_cast %138 : vector<32x16xbf16> to vector<1x32x16xbf16>
    tpu.vector_store %arg10[%c0_126, %c0_127, %c48], %141 {strides = array<i32>} : memref<1x32x256xbf16, #tpu.memory_space<vmem>>, vector<1x32x16xbf16>,
    %142 = vector.extract_strided_slice %121 {offsets = [0, 72], sizes = [32, 16], strides = [1, 1]} : vector<32x288xf32> to vector<32x16xf32>
    %143 = arith.truncf %142 : vector<32x16xf32> to vector<32x16xbf16>
    %c0_128 = arith.constant 0 : index
    %c0_129 = arith.constant 0 : index
    %c64 = arith.constant 64 : index
    %144 = vector.load %arg10[%c0_128, %c0_129, %c64] : memref<1x32x256xbf16, #tpu.memory_space<vmem>>, vector<1x32x16xbf16>
    %145 = vector.shape_cast %144 : vector<1x32x16xbf16> to vector<32x16xbf16>
    %146 = vector.shape_cast %143 : vector<32x16xbf16> to vector<1x32x16xbf16>
    tpu.vector_store %arg10[%c0_128, %c0_129, %c64], %146 {strides = array<i32>} : memref<1x32x256xbf16, #tpu.memory_space<vmem>>, vector<1x32x16xbf16>,
    %147 = vector.extract_strided_slice %121 {offsets = [0, 90], sizes = [32, 16], strides = [1, 1]} : vector<32x288xf32> to vector<32x16xf32>
    %148 = arith.truncf %147 : vector<32x16xf32> to vector<32x16xbf16>
    %c0_130 = arith.constant 0 : index
    %c0_131 = arith.constant 0 : index
    %c80 = arith.constant 80 : index
    %149 = vector.load %arg10[%c0_130, %c0_131, %c80] : memref<1x32x256xbf16, #tpu.memory_space<vmem>>, vector<1x32x16xbf16>
    %150 = vector.shape_cast %149 : vector<1x32x16xbf16> to vector<32x16xbf16>
    %151 = vector.shape_cast %148 : vector<32x16xbf16> to vector<1x32x16xbf16>
    tpu.vector_store %arg10[%c0_130, %c0_131, %c80], %151 {strides = array<i32>} : memref<1x32x256xbf16, #tpu.memory_space<vmem>>, vector<1x32x16xbf16>,
    %152 = vector.extract_strided_slice %121 {offsets = [0, 108], sizes = [32, 16], strides = [1, 1]} : vector<32x288xf32> to vector<32x16xf32>
    %153 = arith.truncf %152 : vector<32x16xf32> to vector<32x16xbf16>
    %c0_132 = arith.constant 0 : index
    %c0_133 = arith.constant 0 : index
    %c96 = arith.constant 96 : index
    %154 = vector.load %arg10[%c0_132, %c0_133, %c96] : memref<1x32x256xbf16, #tpu.memory_space<vmem>>, vector<1x32x16xbf16>
    %155 = vector.shape_cast %154 : vector<1x32x16xbf16> to vector<32x16xbf16>
    %156 = vector.shape_cast %153 : vector<32x16xbf16> to vector<1x32x16xbf16>
    tpu.vector_store %arg10[%c0_132, %c0_133, %c96], %156 {strides = array<i32>} : memref<1x32x256xbf16, #tpu.memory_space<vmem>>, vector<1x32x16xbf16>,
    %157 = vector.extract_strided_slice %121 {offsets = [0, 126], sizes = [32, 16], strides = [1, 1]} : vector<32x288xf32> to vector<32x16xf32>
    %158 = arith.truncf %157 : vector<32x16xf32> to vector<32x16xbf16>
    %c0_134 = arith.constant 0 : index
    %c0_135 = arith.constant 0 : index
    %c112 = arith.constant 112 : index
    %159 = vector.load %arg10[%c0_134, %c0_135, %c112] : memref<1x32x256xbf16, #tpu.memory_space<vmem>>, vector<1x32x16xbf16>
    %160 = vector.shape_cast %159 : vector<1x32x16xbf16> to vector<32x16xbf16>
    %161 = vector.shape_cast %158 : vector<32x16xbf16> to vector<1x32x16xbf16>
    tpu.vector_store %arg10[%c0_134, %c0_135, %c112], %161 {strides = array<i32>} : memref<1x32x256xbf16, #tpu.memory_space<vmem>>, vector<1x32x16xbf16>,
    %162 = vector.extract_strided_slice %121 {offsets = [0, 144], sizes = [32, 16], strides = [1, 1]} : vector<32x288xf32> to vector<32x16xf32>
    %163 = arith.truncf %162 : vector<32x16xf32> to vector<32x16xbf16>
    %c0_136 = arith.constant 0 : index
    %c0_137 = arith.constant 0 : index
    %c128_138 = arith.constant 128 : index
    %164 = vector.load %arg10[%c0_136, %c0_137, %c128_138] : memref<1x32x256xbf16, #tpu.memory_space<vmem>>, vector<1x32x16xbf16>
    %165 = vector.shape_cast %164 : vector<1x32x16xbf16> to vector<32x16xbf16>
    %166 = vector.shape_cast %163 : vector<32x16xbf16> to vector<1x32x16xbf16>
    tpu.vector_store %arg10[%c0_136, %c0_137, %c128_138], %166 {strides = array<i32>} : memref<1x32x256xbf16, #tpu.memory_space<vmem>>, vector<1x32x16xbf16>,
    %167 = vector.extract_strided_slice %121 {offsets = [0, 162], sizes = [32, 16], strides = [1, 1]} : vector<32x288xf32> to vector<32x16xf32>
    %168 = arith.truncf %167 : vector<32x16xf32> to vector<32x16xbf16>
    %c0_139 = arith.constant 0 : index
    %c0_140 = arith.constant 0 : index
    %c144 = arith.constant 144 : index
    %169 = vector.load %arg10[%c0_139, %c0_140, %c144] : memref<1x32x256xbf16, #tpu.memory_space<vmem>>, vector<1x32x16xbf16>
    %170 = vector.shape_cast %169 : vector<1x32x16xbf16> to vector<32x16xbf16>
    %171 = vector.shape_cast %168 : vector<32x16xbf16> to vector<1x32x16xbf16>
    tpu.vector_store %arg10[%c0_139, %c0_140, %c144], %171 {strides = array<i32>} : memref<1x32x256xbf16, #tpu.memory_space<vmem>>, vector<1x32x16xbf16>,
    %172 = vector.extract_strided_slice %121 {offsets = [0, 180], sizes = [32, 16], strides = [1, 1]} : vector<32x288xf32> to vector<32x16xf32>
    %173 = arith.truncf %172 : vector<32x16xf32> to vector<32x16xbf16>
    %c0_141 = arith.constant 0 : index
    %c0_142 = arith.constant 0 : index
    %c160 = arith.constant 160 : index
    %174 = vector.load %arg10[%c0_141, %c0_142, %c160] : memref<1x32x256xbf16, #tpu.memory_space<vmem>>, vector<1x32x16xbf16>
    %175 = vector.shape_cast %174 : vector<1x32x16xbf16> to vector<32x16xbf16>
    %176 = vector.shape_cast %173 : vector<32x16xbf16> to vector<1x32x16xbf16>
    tpu.vector_store %arg10[%c0_141, %c0_142, %c160], %176 {strides = array<i32>} : memref<1x32x256xbf16, #tpu.memory_space<vmem>>, vector<1x32x16xbf16>,
    %177 = vector.extract_strided_slice %121 {offsets = [0, 198], sizes = [32, 16], strides = [1, 1]} : vector<32x288xf32> to vector<32x16xf32>
    %178 = arith.truncf %177 : vector<32x16xf32> to vector<32x16xbf16>
    %c0_143 = arith.constant 0 : index
    %c0_144 = arith.constant 0 : index
    %c176 = arith.constant 176 : index
    %179 = vector.load %arg10[%c0_143, %c0_144, %c176] : memref<1x32x256xbf16, #tpu.memory_space<vmem>>, vector<1x32x16xbf16>
    %180 = vector.shape_cast %179 : vector<1x32x16xbf16> to vector<32x16xbf16>
    %181 = vector.shape_cast %178 : vector<32x16xbf16> to vector<1x32x16xbf16>
    tpu.vector_store %arg10[%c0_143, %c0_144, %c176], %181 {strides = array<i32>} : memref<1x32x256xbf16, #tpu.memory_space<vmem>>, vector<1x32x16xbf16>,
    %182 = vector.extract_strided_slice %121 {offsets = [0, 216], sizes = [32, 16], strides = [1, 1]} : vector<32x288xf32> to vector<32x16xf32>
    %183 = arith.truncf %182 : vector<32x16xf32> to vector<32x16xbf16>
    %c0_145 = arith.constant 0 : index
    %c0_146 = arith.constant 0 : index
    %c192 = arith.constant 192 : index
    %184 = vector.load %arg10[%c0_145, %c0_146, %c192] : memref<1x32x256xbf16, #tpu.memory_space<vmem>>, vector<1x32x16xbf16>
    %185 = vector.shape_cast %184 : vector<1x32x16xbf16> to vector<32x16xbf16>
    %186 = vector.shape_cast %183 : vector<32x16xbf16> to vector<1x32x16xbf16>
    tpu.vector_store %arg10[%c0_145, %c0_146, %c192], %186 {strides = array<i32>} : memref<1x32x256xbf16, #tpu.memory_space<vmem>>, vector<1x32x16xbf16>,
    %187 = vector.extract_strided_slice %121 {offsets = [0, 234], sizes = [32, 16], strides = [1, 1]} : vector<32x288xf32> to vector<32x16xf32>
    %188 = arith.truncf %187 : vector<32x16xf32> to vector<32x16xbf16>
    %c0_147 = arith.constant 0 : index
    %c0_148 = arith.constant 0 : index
    %c208 = arith.constant 208 : index
    %189 = vector.load %arg10[%c0_147, %c0_148, %c208] : memref<1x32x256xbf16, #tpu.memory_space<vmem>>, vector<1x32x16xbf16>
    %190 = vector.shape_cast %189 : vector<1x32x16xbf16> to vector<32x16xbf16>
    %191 = vector.shape_cast %188 : vector<32x16xbf16> to vector<1x32x16xbf16>
    tpu.vector_store %arg10[%c0_147, %c0_148, %c208], %191 {strides = array<i32>} : memref<1x32x256xbf16, #tpu.memory_space<vmem>>, vector<1x32x16xbf16>,
    %192 = vector.extract_strided_slice %121 {offsets = [0, 252], sizes = [32, 16], strides = [1, 1]} : vector<32x288xf32> to vector<32x16xf32>
    %193 = arith.truncf %192 : vector<32x16xf32> to vector<32x16xbf16>
    %c0_149 = arith.constant 0 : index
    %c0_150 = arith.constant 0 : index
    %c224 = arith.constant 224 : index
    %194 = vector.load %arg10[%c0_149, %c0_150, %c224] : memref<1x32x256xbf16, #tpu.memory_space<vmem>>, vector<1x32x16xbf16>
    %195 = vector.shape_cast %194 : vector<1x32x16xbf16> to vector<32x16xbf16>
    %196 = vector.shape_cast %193 : vector<32x16xbf16> to vector<1x32x16xbf16>
    tpu.vector_store %arg10[%c0_149, %c0_150, %c224], %196 {strides = array<i32>} : memref<1x32x256xbf16, #tpu.memory_space<vmem>>, vector<1x32x16xbf16>,
    %197 = vector.extract_strided_slice %121 {offsets = [0, 270], sizes = [32, 16], strides = [1, 1]} : vector<32x288xf32> to vector<32x16xf32>
    %198 = arith.truncf %197 : vector<32x16xf32> to vector<32x16xbf16>
    %c0_151 = arith.constant 0 : index
    %c0_152 = arith.constant 0 : index
    %c240 = arith.constant 240 : index
    %199 = vector.load %arg10[%c0_151, %c0_152, %c240] : memref<1x32x256xbf16, #tpu.memory_space<vmem>>, vector<1x32x16xbf16>
    %200 = vector.shape_cast %199 : vector<1x32x16xbf16> to vector<32x16xbf16>
    %201 = vector.shape_cast %198 : vector<32x16xbf16> to vector<1x32x16xbf16>
    tpu.vector_store %arg10[%c0_151, %c0_152, %c240], %201 {strides = array<i32>} : memref<1x32x256xbf16, #tpu.memory_space<vmem>>, vector<1x32x16xbf16>,
    %202 = arith.truncf %121 : vector<32x288xf32> to vector<32x288xbf16>
    %c0_153 = arith.constant 0 : index
    %c128_154 = arith.constant 128 : index
    %203 = vector.load %arg12[%c0_153, %c128_154] : memref<32x512xbf16, #tpu.memory_space<vmem>>, vector<32x288xbf16>
    tpu.vector_store %arg12[%c0_153, %c128_154], %202 {strides = array<i32>} : memref<32x512xbf16, #tpu.memory_space<vmem>>, vector<32x288xbf16>,
    %c0_155 = arith.constant 0 : index
    %c0_156 = arith.constant 0 : index
    %c0_157 = arith.constant 0 : index
    %204 = vector.load %arg6[%c0_155, %c0_156, %c0_157] : memref<9x3x32xbf16, #tpu.memory_space<vmem>>, vector<1x3x32xbf16>
    %205 = vector.shape_cast %204 : vector<1x3x32xbf16> to vector<3x32xbf16>
    %c0_158 = arith.constant 0 : index
    %c109_159 = arith.constant 109 : index
    %206 = vector.load %arg12[%c0_158, %c109_159] : memref<32x512xbf16, #tpu.memory_space<vmem>>, vector<32x288xbf16>
    %cst_160 = arith.constant dense<0.000000e+00> : vector<3x288xf32>
    %207 = tpu.matmul %205, %206, %cst_160 {dimension_numbers = #tpu.dot_dimension_numbers<[1], [0], [0], [1], [0, 0, 1, 1], [], []>} : vector<3x32xbf16>, vector<32x288xbf16>, vector<3x288xf32> -> vector<3x288xf32>
    %c1_161 = arith.constant 1 : index
    %c0_162 = arith.constant 0 : index
    %c0_163 = arith.constant 0 : index
    %208 = vector.load %arg6[%c1_161, %c0_162, %c0_163] : memref<9x3x32xbf16, #tpu.memory_space<vmem>>, vector<1x3x32xbf16>
    %209 = vector.shape_cast %208 : vector<1x3x32xbf16> to vector<3x32xbf16>
    %c0_164 = arith.constant 0 : index
    %c110_165 = arith.constant 110 : index
    %210 = vector.load %arg12[%c0_164, %c110_165] : memref<32x512xbf16, #tpu.memory_space<vmem>>, vector<32x288xbf16>
    %cst_166 = arith.constant dense<0.000000e+00> : vector<3x288xf32>
    %211 = tpu.matmul %209, %210, %cst_166 {dimension_numbers = #tpu.dot_dimension_numbers<[1], [0], [0], [1], [0, 0, 1, 1], [], []>} : vector<3x32xbf16>, vector<32x288xbf16>, vector<3x288xf32> -> vector<3x288xf32>
    %212 = arith.addf %207, %211 : vector<3x288xf32>
    %c2_167 = arith.constant 2 : index
    %c0_168 = arith.constant 0 : index
    %c0_169 = arith.constant 0 : index
    %213 = vector.load %arg6[%c2_167, %c0_168, %c0_169] : memref<9x3x32xbf16, #tpu.memory_space<vmem>>, vector<1x3x32xbf16>
    %214 = vector.shape_cast %213 : vector<1x3x32xbf16> to vector<3x32xbf16>
    %c0_170 = arith.constant 0 : index
    %c111_171 = arith.constant 111 : index
    %215 = vector.load %arg12[%c0_170, %c111_171] : memref<32x512xbf16, #tpu.memory_space<vmem>>, vector<32x288xbf16>
    %cst_172 = arith.constant dense<0.000000e+00> : vector<3x288xf32>
    %216 = tpu.matmul %214, %215, %cst_172 {dimension_numbers = #tpu.dot_dimension_numbers<[1], [0], [0], [1], [0, 0, 1, 1], [], []>} : vector<3x32xbf16>, vector<32x288xbf16>, vector<3x288xf32> -> vector<3x288xf32>
    %217 = arith.addf %212, %216 : vector<3x288xf32>
    %c3_173 = arith.constant 3 : index
    %c0_174 = arith.constant 0 : index
    %c0_175 = arith.constant 0 : index
    %218 = vector.load %arg6[%c3_173, %c0_174, %c0_175] : memref<9x3x32xbf16, #tpu.memory_space<vmem>>, vector<1x3x32xbf16>
    %219 = vector.shape_cast %218 : vector<1x3x32xbf16> to vector<3x32xbf16>
    %c0_176 = arith.constant 0 : index
    %c127_177 = arith.constant 127 : index
    %220 = vector.load %arg12[%c0_176, %c127_177] : memref<32x512xbf16, #tpu.memory_space<vmem>>, vector<32x288xbf16>
    %cst_178 = arith.constant dense<0.000000e+00> : vector<3x288xf32>
    %221 = tpu.matmul %219, %220, %cst_178 {dimension_numbers = #tpu.dot_dimension_numbers<[1], [0], [0], [1], [0, 0, 1, 1], [], []>} : vector<3x32xbf16>, vector<32x288xbf16>, vector<3x288xf32> -> vector<3x288xf32>
    %222 = arith.addf %217, %221 : vector<3x288xf32>
    %c4_179 = arith.constant 4 : index
    %c0_180 = arith.constant 0 : index
    %c0_181 = arith.constant 0 : index
    %223 = vector.load %arg6[%c4_179, %c0_180, %c0_181] : memref<9x3x32xbf16, #tpu.memory_space<vmem>>, vector<1x3x32xbf16>
    %224 = vector.shape_cast %223 : vector<1x3x32xbf16> to vector<3x32xbf16>
    %c0_182 = arith.constant 0 : index
    %c128_183 = arith.constant 128 : index
    %225 = vector.load %arg12[%c0_182, %c128_183] : memref<32x512xbf16, #tpu.memory_space<vmem>>, vector<32x288xbf16>
    %cst_184 = arith.constant dense<0.000000e+00> : vector<3x288xf32>
    %226 = tpu.matmul %224, %225, %cst_184 {dimension_numbers = #tpu.dot_dimension_numbers<[1], [0], [0], [1], [0, 0, 1, 1], [], []>} : vector<3x32xbf16>, vector<32x288xbf16>, vector<3x288xf32> -> vector<3x288xf32>
    %227 = arith.addf %222, %226 : vector<3x288xf32>
    %c5_185 = arith.constant 5 : index
    %c0_186 = arith.constant 0 : index
    %c0_187 = arith.constant 0 : index
    %228 = vector.load %arg6[%c5_185, %c0_186, %c0_187] : memref<9x3x32xbf16, #tpu.memory_space<vmem>>, vector<1x3x32xbf16>
    %229 = vector.shape_cast %228 : vector<1x3x32xbf16> to vector<3x32xbf16>
    %c0_188 = arith.constant 0 : index
    %c129_189 = arith.constant 129 : index
    %230 = vector.load %arg12[%c0_188, %c129_189] : memref<32x512xbf16, #tpu.memory_space<vmem>>, vector<32x288xbf16>
    %cst_190 = arith.constant dense<0.000000e+00> : vector<3x288xf32>
    %231 = tpu.matmul %229, %230, %cst_190 {dimension_numbers = #tpu.dot_dimension_numbers<[1], [0], [0], [1], [0, 0, 1, 1], [], []>} : vector<3x32xbf16>, vector<32x288xbf16>, vector<3x288xf32> -> vector<3x288xf32>
    %232 = arith.addf %227, %231 : vector<3x288xf32>
    %c6_191 = arith.constant 6 : index
    %c0_192 = arith.constant 0 : index
    %c0_193 = arith.constant 0 : index
    %233 = vector.load %arg6[%c6_191, %c0_192, %c0_193] : memref<9x3x32xbf16, #tpu.memory_space<vmem>>, vector<1x3x32xbf16>
    %234 = vector.shape_cast %233 : vector<1x3x32xbf16> to vector<3x32xbf16>
    %c0_194 = arith.constant 0 : index
    %c145_195 = arith.constant 145 : index
    %235 = vector.load %arg12[%c0_194, %c145_195] : memref<32x512xbf16, #tpu.memory_space<vmem>>, vector<32x288xbf16>
    %cst_196 = arith.constant dense<0.000000e+00> : vector<3x288xf32>
    %236 = tpu.matmul %234, %235, %cst_196 {dimension_numbers = #tpu.dot_dimension_numbers<[1], [0], [0], [1], [0, 0, 1, 1], [], []>} : vector<3x32xbf16>, vector<32x288xbf16>, vector<3x288xf32> -> vector<3x288xf32>
    %237 = arith.addf %232, %236 : vector<3x288xf32>
    %c7_197 = arith.constant 7 : index
    %c0_198 = arith.constant 0 : index
    %c0_199 = arith.constant 0 : index
    %238 = vector.load %arg6[%c7_197, %c0_198, %c0_199] : memref<9x3x32xbf16, #tpu.memory_space<vmem>>, vector<1x3x32xbf16>
    %239 = vector.shape_cast %238 : vector<1x3x32xbf16> to vector<3x32xbf16>
    %c0_200 = arith.constant 0 : index
    %c146_201 = arith.constant 146 : index
    %240 = vector.load %arg12[%c0_200, %c146_201] : memref<32x512xbf16, #tpu.memory_space<vmem>>, vector<32x288xbf16>
    %cst_202 = arith.constant dense<0.000000e+00> : vector<3x288xf32>
    %241 = tpu.matmul %239, %240, %cst_202 {dimension_numbers = #tpu.dot_dimension_numbers<[1], [0], [0], [1], [0, 0, 1, 1], [], []>} : vector<3x32xbf16>, vector<32x288xbf16>, vector<3x288xf32> -> vector<3x288xf32>
    %242 = arith.addf %237, %241 : vector<3x288xf32>
    %c8_203 = arith.constant 8 : index
    %c0_204 = arith.constant 0 : index
    %c0_205 = arith.constant 0 : index
    %243 = vector.load %arg6[%c8_203, %c0_204, %c0_205] : memref<9x3x32xbf16, #tpu.memory_space<vmem>>, vector<1x3x32xbf16>
    %244 = vector.shape_cast %243 : vector<1x3x32xbf16> to vector<3x32xbf16>
    %c0_206 = arith.constant 0 : index
    %c147_207 = arith.constant 147 : index
    %245 = vector.load %arg12[%c0_206, %c147_207] : memref<32x512xbf16, #tpu.memory_space<vmem>>, vector<32x288xbf16>
    %cst_208 = arith.constant dense<0.000000e+00> : vector<3x288xf32>
    %246 = tpu.matmul %244, %245, %cst_208 {dimension_numbers = #tpu.dot_dimension_numbers<[1], [0], [0], [1], [0, 0, 1, 1], [], []>} : vector<3x32xbf16>, vector<32x288xbf16>, vector<3x288xf32> -> vector<3x288xf32>
    %247 = arith.addf %242, %246 : vector<3x288xf32>
    %c0_209 = arith.constant 0 : index
    %c0_210 = arith.constant 0 : index
    %248 = vector.load %arg7[%c0_209, %c0_210] : memref<3x1xf32, #tpu.memory_space<vmem>>, vector<3x1xf32>
    %249 = vector.broadcast %248 : vector<3x1xf32> to vector<3x288xf32>
    %250 = arith.addf %247, %249 : vector<3x288xf32>
    %251 = math.tanh %250 : vector<3x288xf32>
    %252 = vector.extract_strided_slice %251 {offsets = [0, 0], sizes = [3, 16], strides = [1, 1]} : vector<3x288xf32> to vector<3x16xf32>
    %253 = arith.truncf %252 : vector<3x16xf32> to vector<3x16xbf16>
    %c0_211 = arith.constant 0 : index
    %c0_212 = arith.constant 0 : index
    %c0_213 = arith.constant 0 : index
    %254 = vector.load %arg9[%c0_211, %c0_212, %c0_213] : memref<1x3x256xbf16, #tpu.memory_space<vmem>>, vector<1x3x16xbf16>
    %255 = vector.shape_cast %254 : vector<1x3x16xbf16> to vector<3x16xbf16>
    %256 = vector.shape_cast %253 : vector<3x16xbf16> to vector<1x3x16xbf16>
    tpu.vector_store %arg9[%c0_211, %c0_212, %c0_213], %256 {strides = array<i32>} : memref<1x3x256xbf16, #tpu.memory_space<vmem>>, vector<1x3x16xbf16>,
    %257 = vector.extract_strided_slice %251 {offsets = [0, 18], sizes = [3, 16], strides = [1, 1]} : vector<3x288xf32> to vector<3x16xf32>
    %258 = arith.truncf %257 : vector<3x16xf32> to vector<3x16xbf16>
    %c0_214 = arith.constant 0 : index
    %c0_215 = arith.constant 0 : index
    %c16_216 = arith.constant 16 : index
    %259 = vector.load %arg9[%c0_214, %c0_215, %c16_216] : memref<1x3x256xbf16, #tpu.memory_space<vmem>>, vector<1x3x16xbf16>
    %260 = vector.shape_cast %259 : vector<1x3x16xbf16> to vector<3x16xbf16>
    %261 = vector.shape_cast %258 : vector<3x16xbf16> to vector<1x3x16xbf16>
    tpu.vector_store %arg9[%c0_214, %c0_215, %c16_216], %261 {strides = array<i32>} : memref<1x3x256xbf16, #tpu.memory_space<vmem>>, vector<1x3x16xbf16>,
    %262 = vector.extract_strided_slice %251 {offsets = [0, 36], sizes = [3, 16], strides = [1, 1]} : vector<3x288xf32> to vector<3x16xf32>
    %263 = arith.truncf %262 : vector<3x16xf32> to vector<3x16xbf16>
    %c0_217 = arith.constant 0 : index
    %c0_218 = arith.constant 0 : index
    %c32_219 = arith.constant 32 : index
    %264 = vector.load %arg9[%c0_217, %c0_218, %c32_219] : memref<1x3x256xbf16, #tpu.memory_space<vmem>>, vector<1x3x16xbf16>
    %265 = vector.shape_cast %264 : vector<1x3x16xbf16> to vector<3x16xbf16>
    %266 = vector.shape_cast %263 : vector<3x16xbf16> to vector<1x3x16xbf16>
    tpu.vector_store %arg9[%c0_217, %c0_218, %c32_219], %266 {strides = array<i32>} : memref<1x3x256xbf16, #tpu.memory_space<vmem>>, vector<1x3x16xbf16>,
    %267 = vector.extract_strided_slice %251 {offsets = [0, 54], sizes = [3, 16], strides = [1, 1]} : vector<3x288xf32> to vector<3x16xf32>
    %268 = arith.truncf %267 : vector<3x16xf32> to vector<3x16xbf16>
    %c0_220 = arith.constant 0 : index
    %c0_221 = arith.constant 0 : index
    %c48_222 = arith.constant 48 : index
    %269 = vector.load %arg9[%c0_220, %c0_221, %c48_222] : memref<1x3x256xbf16, #tpu.memory_space<vmem>>, vector<1x3x16xbf16>
    %270 = vector.shape_cast %269 : vector<1x3x16xbf16> to vector<3x16xbf16>
    %271 = vector.shape_cast %268 : vector<3x16xbf16> to vector<1x3x16xbf16>
    tpu.vector_store %arg9[%c0_220, %c0_221, %c48_222], %271 {strides = array<i32>} : memref<1x3x256xbf16, #tpu.memory_space<vmem>>, vector<1x3x16xbf16>,
    %272 = vector.extract_strided_slice %251 {offsets = [0, 72], sizes = [3, 16], strides = [1, 1]} : vector<3x288xf32> to vector<3x16xf32>
    %273 = arith.truncf %272 : vector<3x16xf32> to vector<3x16xbf16>
    %c0_223 = arith.constant 0 : index
    %c0_224 = arith.constant 0 : index
    %c64_225 = arith.constant 64 : index
    %274 = vector.load %arg9[%c0_223, %c0_224, %c64_225] : memref<1x3x256xbf16, #tpu.memory_space<vmem>>, vector<1x3x16xbf16>
    %275 = vector.shape_cast %274 : vector<1x3x16xbf16> to vector<3x16xbf16>
    %276 = vector.shape_cast %273 : vector<3x16xbf16> to vector<1x3x16xbf16>
    tpu.vector_store %arg9[%c0_223, %c0_224, %c64_225], %276 {strides = array<i32>} : memref<1x3x256xbf16, #tpu.memory_space<vmem>>, vector<1x3x16xbf16>,
    %277 = vector.extract_strided_slice %251 {offsets = [0, 90], sizes = [3, 16], strides = [1, 1]} : vector<3x288xf32> to vector<3x16xf32>
    %278 = arith.truncf %277 : vector<3x16xf32> to vector<3x16xbf16>
    %c0_226 = arith.constant 0 : index
    %c0_227 = arith.constant 0 : index
    %c80_228 = arith.constant 80 : index
    %279 = vector.load %arg9[%c0_226, %c0_227, %c80_228] : memref<1x3x256xbf16, #tpu.memory_space<vmem>>, vector<1x3x16xbf16>
    %280 = vector.shape_cast %279 : vector<1x3x16xbf16> to vector<3x16xbf16>
    %281 = vector.shape_cast %278 : vector<3x16xbf16> to vector<1x3x16xbf16>
    tpu.vector_store %arg9[%c0_226, %c0_227, %c80_228], %281 {strides = array<i32>} : memref<1x3x256xbf16, #tpu.memory_space<vmem>>, vector<1x3x16xbf16>,
    %282 = vector.extract_strided_slice %251 {offsets = [0, 108], sizes = [3, 16], strides = [1, 1]} : vector<3x288xf32> to vector<3x16xf32>
    %283 = arith.truncf %282 : vector<3x16xf32> to vector<3x16xbf16>
    %c0_229 = arith.constant 0 : index
    %c0_230 = arith.constant 0 : index
    %c96_231 = arith.constant 96 : index
    %284 = vector.load %arg9[%c0_229, %c0_230, %c96_231] : memref<1x3x256xbf16, #tpu.memory_space<vmem>>, vector<1x3x16xbf16>
    %285 = vector.shape_cast %284 : vector<1x3x16xbf16> to vector<3x16xbf16>
    %286 = vector.shape_cast %283 : vector<3x16xbf16> to vector<1x3x16xbf16>
    tpu.vector_store %arg9[%c0_229, %c0_230, %c96_231], %286 {strides = array<i32>} : memref<1x3x256xbf16, #tpu.memory_space<vmem>>, vector<1x3x16xbf16>,
    %287 = vector.extract_strided_slice %251 {offsets = [0, 126], sizes = [3, 16], strides = [1, 1]} : vector<3x288xf32> to vector<3x16xf32>
    %288 = arith.truncf %287 : vector<3x16xf32> to vector<3x16xbf16>
    %c0_232 = arith.constant 0 : index
    %c0_233 = arith.constant 0 : index
    %c112_234 = arith.constant 112 : index
    %289 = vector.load %arg9[%c0_232, %c0_233, %c112_234] : memref<1x3x256xbf16, #tpu.memory_space<vmem>>, vector<1x3x16xbf16>
    %290 = vector.shape_cast %289 : vector<1x3x16xbf16> to vector<3x16xbf16>
    %291 = vector.shape_cast %288 : vector<3x16xbf16> to vector<1x3x16xbf16>
    tpu.vector_store %arg9[%c0_232, %c0_233, %c112_234], %291 {strides = array<i32>} : memref<1x3x256xbf16, #tpu.memory_space<vmem>>, vector<1x3x16xbf16>,
    %292 = vector.extract_strided_slice %251 {offsets = [0, 144], sizes = [3, 16], strides = [1, 1]} : vector<3x288xf32> to vector<3x16xf32>
    %293 = arith.truncf %292 : vector<3x16xf32> to vector<3x16xbf16>
    %c0_235 = arith.constant 0 : index
    %c0_236 = arith.constant 0 : index
    %c128_237 = arith.constant 128 : index
    %294 = vector.load %arg9[%c0_235, %c0_236, %c128_237] : memref<1x3x256xbf16, #tpu.memory_space<vmem>>, vector<1x3x16xbf16>
    %295 = vector.shape_cast %294 : vector<1x3x16xbf16> to vector<3x16xbf16>
    %296 = vector.shape_cast %293 : vector<3x16xbf16> to vector<1x3x16xbf16>
    tpu.vector_store %arg9[%c0_235, %c0_236, %c128_237], %296 {strides = array<i32>} : memref<1x3x256xbf16, #tpu.memory_space<vmem>>, vector<1x3x16xbf16>,
    %297 = vector.extract_strided_slice %251 {offsets = [0, 162], sizes = [3, 16], strides = [1, 1]} : vector<3x288xf32> to vector<3x16xf32>
    %298 = arith.truncf %297 : vector<3x16xf32> to vector<3x16xbf16>
    %c0_238 = arith.constant 0 : index
    %c0_239 = arith.constant 0 : index
    %c144_240 = arith.constant 144 : index
    %299 = vector.load %arg9[%c0_238, %c0_239, %c144_240] : memref<1x3x256xbf16, #tpu.memory_space<vmem>>, vector<1x3x16xbf16>
    %300 = vector.shape_cast %299 : vector<1x3x16xbf16> to vector<3x16xbf16>
    %301 = vector.shape_cast %298 : vector<3x16xbf16> to vector<1x3x16xbf16>
    tpu.vector_store %arg9[%c0_238, %c0_239, %c144_240], %301 {strides = array<i32>} : memref<1x3x256xbf16, #tpu.memory_space<vmem>>, vector<1x3x16xbf16>,
    %302 = vector.extract_strided_slice %251 {offsets = [0, 180], sizes = [3, 16], strides = [1, 1]} : vector<3x288xf32> to vector<3x16xf32>
    %303 = arith.truncf %302 : vector<3x16xf32> to vector<3x16xbf16>
    %c0_241 = arith.constant 0 : index
    %c0_242 = arith.constant 0 : index
    %c160_243 = arith.constant 160 : index
    %304 = vector.load %arg9[%c0_241, %c0_242, %c160_243] : memref<1x3x256xbf16, #tpu.memory_space<vmem>>, vector<1x3x16xbf16>
    %305 = vector.shape_cast %304 : vector<1x3x16xbf16> to vector<3x16xbf16>
    %306 = vector.shape_cast %303 : vector<3x16xbf16> to vector<1x3x16xbf16>
    tpu.vector_store %arg9[%c0_241, %c0_242, %c160_243], %306 {strides = array<i32>} : memref<1x3x256xbf16, #tpu.memory_space<vmem>>, vector<1x3x16xbf16>,
    %307 = vector.extract_strided_slice %251 {offsets = [0, 198], sizes = [3, 16], strides = [1, 1]} : vector<3x288xf32> to vector<3x16xf32>
    %308 = arith.truncf %307 : vector<3x16xf32> to vector<3x16xbf16>
    %c0_244 = arith.constant 0 : index
    %c0_245 = arith.constant 0 : index
    %c176_246 = arith.constant 176 : index
    %309 = vector.load %arg9[%c0_244, %c0_245, %c176_246] : memref<1x3x256xbf16, #tpu.memory_space<vmem>>, vector<1x3x16xbf16>
    %310 = vector.shape_cast %309 : vector<1x3x16xbf16> to vector<3x16xbf16>
    %311 = vector.shape_cast %308 : vector<3x16xbf16> to vector<1x3x16xbf16>
    tpu.vector_store %arg9[%c0_244, %c0_245, %c176_246], %311 {strides = array<i32>} : memref<1x3x256xbf16, #tpu.memory_space<vmem>>, vector<1x3x16xbf16>,
    %312 = vector.extract_strided_slice %251 {offsets = [0, 216], sizes = [3, 16], strides = [1, 1]} : vector<3x288xf32> to vector<3x16xf32>
    %313 = arith.truncf %312 : vector<3x16xf32> to vector<3x16xbf16>
    %c0_247 = arith.constant 0 : index
    %c0_248 = arith.constant 0 : index
    %c192_249 = arith.constant 192 : index
    %314 = vector.load %arg9[%c0_247, %c0_248, %c192_249] : memref<1x3x256xbf16, #tpu.memory_space<vmem>>, vector<1x3x16xbf16>
    %315 = vector.shape_cast %314 : vector<1x3x16xbf16> to vector<3x16xbf16>
    %316 = vector.shape_cast %313 : vector<3x16xbf16> to vector<1x3x16xbf16>
    tpu.vector_store %arg9[%c0_247, %c0_248, %c192_249], %316 {strides = array<i32>} : memref<1x3x256xbf16, #tpu.memory_space<vmem>>, vector<1x3x16xbf16>,
    %317 = vector.extract_strided_slice %251 {offsets = [0, 234], sizes = [3, 16], strides = [1, 1]} : vector<3x288xf32> to vector<3x16xf32>
    %318 = arith.truncf %317 : vector<3x16xf32> to vector<3x16xbf16>
    %c0_250 = arith.constant 0 : index
    %c0_251 = arith.constant 0 : index
    %c208_252 = arith.constant 208 : index
    %319 = vector.load %arg9[%c0_250, %c0_251, %c208_252] : memref<1x3x256xbf16, #tpu.memory_space<vmem>>, vector<1x3x16xbf16>
    %320 = vector.shape_cast %319 : vector<1x3x16xbf16> to vector<3x16xbf16>
    %321 = vector.shape_cast %318 : vector<3x16xbf16> to vector<1x3x16xbf16>
    tpu.vector_store %arg9[%c0_250, %c0_251, %c208_252], %321 {strides = array<i32>} : memref<1x3x256xbf16, #tpu.memory_space<vmem>>, vector<1x3x16xbf16>,
    %322 = vector.extract_strided_slice %251 {offsets = [0, 252], sizes = [3, 16], strides = [1, 1]} : vector<3x288xf32> to vector<3x16xf32>
    %323 = arith.truncf %322 : vector<3x16xf32> to vector<3x16xbf16>
    %c0_253 = arith.constant 0 : index
    %c0_254 = arith.constant 0 : index
    %c224_255 = arith.constant 224 : index
    %324 = vector.load %arg9[%c0_253, %c0_254, %c224_255] : memref<1x3x256xbf16, #tpu.memory_space<vmem>>, vector<1x3x16xbf16>
    %325 = vector.shape_cast %324 : vector<1x3x16xbf16> to vector<3x16xbf16>
    %326 = vector.shape_cast %323 : vector<3x16xbf16> to vector<1x3x16xbf16>
    tpu.vector_store %arg9[%c0_253, %c0_254, %c224_255], %326 {strides = array<i32>} : memref<1x3x256xbf16, #tpu.memory_space<vmem>>, vector<1x3x16xbf16>,
    %327 = vector.extract_strided_slice %251 {offsets = [0, 270], sizes = [3, 16], strides = [1, 1]} : vector<3x288xf32> to vector<3x16xf32>
    %328 = arith.truncf %327 : vector<3x16xf32> to vector<3x16xbf16>
    %c0_256 = arith.constant 0 : index
    %c0_257 = arith.constant 0 : index
    %c240_258 = arith.constant 240 : index
    %329 = vector.load %arg9[%c0_256, %c0_257, %c240_258] : memref<1x3x256xbf16, #tpu.memory_space<vmem>>, vector<1x3x16xbf16>
    %330 = vector.shape_cast %329 : vector<1x3x16xbf16> to vector<3x16xbf16>
    %331 = vector.shape_cast %328 : vector<3x16xbf16> to vector<1x3x16xbf16>
    tpu.vector_store %arg9[%c0_256, %c0_257, %c240_258], %331 {strides = array<i32>} : memref<1x3x256xbf16, #tpu.memory_space<vmem>>, vector<1x3x16xbf16>,
    return
  }
  func.func @transform_0(%arg0: i32) -> (i32, i32, i32) {
    %c0_i32 = arith.constant 0 : i32
    %c0_i32_0 = arith.constant 0 : i32
    %c0_i32_1 = arith.constant 0 : i32
    return %arg0, %c0_i32, %c0_i32_0 : i32, i32, i32
  }
  func.func @transform_1(%arg0: i32) -> (i32, i32, i32) {
    %c0_i32 = arith.constant 0 : i32
    %c0_i32_0 = arith.constant 0 : i32
    %c0_i32_1 = arith.constant 0 : i32
    %c0_i32_2 = arith.constant 0 : i32
    return %c0_i32, %c0_i32_0, %c0_i32_1 : i32, i32, i32
  }
  func.func @transform_2(%arg0: i32) -> (i32, i32) {
    %c0_i32 = arith.constant 0 : i32
    %c0_i32_0 = arith.constant 0 : i32
    %c0_i32_1 = arith.constant 0 : i32
    return %c0_i32, %c0_i32_0 : i32, i32
  }
  func.func @transform_3(%arg0: i32) -> (i32, i32, i32) {
    %c0_i32 = arith.constant 0 : i32
    %c0_i32_0 = arith.constant 0 : i32
    %c0_i32_1 = arith.constant 0 : i32
    %c0_i32_2 = arith.constant 0 : i32
    return %c0_i32, %c0_i32_0, %c0_i32_1 : i32, i32, i32
  }
  func.func @transform_4(%arg0: i32) -> (i32, i32) {
    %c0_i32 = arith.constant 0 : i32
    %c0_i32_0 = arith.constant 0 : i32
    %c0_i32_1 = arith.constant 0 : i32
    return %c0_i32, %c0_i32_0 : i32, i32
  }
  func.func @transform_5(%arg0: i32) -> (i32, i32, i32) {
    %c0_i32 = arith.constant 0 : i32
    %c0_i32_0 = arith.constant 0 : i32
    %c0_i32_1 = arith.constant 0 : i32
    %c0_i32_2 = arith.constant 0 : i32
    return %c0_i32, %c0_i32_0, %c0_i32_1 : i32, i32, i32
  }
  func.func @transform_6(%arg0: i32) -> (i32, i32) {
    %c0_i32 = arith.constant 0 : i32
    %c0_i32_0 = arith.constant 0 : i32
    %c0_i32_1 = arith.constant 0 : i32
    return %c0_i32, %c0_i32_0 : i32, i32
  }
  func.func @transform_7(%arg0: i32) -> (i32, i32) {
    %c0_i32 = arith.constant 0 : i32
    %c0_i32_0 = arith.constant 0 : i32
    %c0_i32_1 = arith.constant 0 : i32
    return %c0_i32, %c0_i32_0 : i32, i32
  }
  func.func @transform_8(%arg0: i32) -> (i32, i32, i32) {
    %c0_i32 = arith.constant 0 : i32
    %c0_i32_0 = arith.constant 0 : i32
    %c0_i32_1 = arith.constant 0 : i32
    return %arg0, %c0_i32, %c0_i32_0 : i32, i32, i32
  }
  func.func @transform_9(%arg0: i32) -> (i32, i32, i32) {
    %c0_i32 = arith.constant 0 : i32
    %c0_i32_0 = arith.constant 0 : i32
    %c0_i32_1 = arith.constant 0 : i32
    return %arg0, %c0_i32, %c0_i32_0 : i32, i32, i32
  }
}

</mosaic_0001>

<bundles_post_ra>
// kernel: teacher_forward.1
= control target key start
LH: loop header
LB: loop body
LE: loop exit
PB: predicated region body
PF: predicated region fallthrough
CT: control target
= control target key end

     0   :  { %s5759_s30 = smov 0   ;;  %s7075_s0 = inlined_call_operand.vmem [shape: bf16[2,16,512], index: 0, kind: input, shape index: {}]   ;;  %s7076_s1 = inlined_call_operand.vmem [shape: bf16[9,32,16], index: 1, kind: input, shape index: {}]   ;;  %s7077_s2 = inlined_call_operand.vmem [shape: f32[32,1], index: 2, kind: input, shape index: {}]   ;;  %s7078_s3 = inlined_call_operand.vmem [shape: bf16[9,32,32], index: 3, kind: input, shape index: {}]   ;;  %s7079_s4 = inlined_call_operand.vmem [shape: f32[32,1], index: 4, kind: input, shape index: {}]   ;;  %s7080_s5 = inlined_call_operand.vmem [shape: bf16[9,3,32], index: 5, kind: input, shape index: {}]   ;;  %s7081_s6 = inlined_call_operand.vmem [shape: f32[3,1], index: 6, kind: input, shape index: {}]   ;;  %s7082_s7 = inlined_call_operand.vmem [shape: f32[1,288], index: 7, kind: input, shape index: {}]   ;;  %s7083_s8 = inlined_call_operand.vmem [shape: bf16[2,3,256], index: 8, kind: output, shape index: {0}]   ;;  %s7084_s9 = inlined_call_operand.vmem [shape: bf16[2,32,256], index: 9, kind: output, shape index: {1}]  }
   0x1 LB: > { %s4842_s10 = sadd.s32 4294967295, %s5681_s30   ;;  %p4846_p0 = scmp.ge.s32.totalorder %s5681_s30, 1  ;;  %s5681_s30 = sphi %s5759_s30, %s20_s30  }
   0x2   : > { %p290_p1 = scmp.lt.s32.totalorder %s5681_s30, 3 }
   0x4   : > { %p291_p2 = pnand %p4846_p0, %p290_p1 }
   0x5   : > { %p331_p3 = scmp.lt.s32.totalorder (!%p291_p2), %s4842_s10, 1  ;;  %v5772_v0 = vld [vmem:[%s7076_s1 + $0x10] sm:$0xff] (!%p291_p2)   ;;  %v5683_v1 = vmov (!%p291_p2), 0   ;;  %vm411_vm0 = vcmask (!%p291_p2), 130048   ;;  %s5684_s17 = smov (!%p291_p2), 18   ;;  %vm404_vm1 = vcmask (!%p291_p2), 146432  }
   0x6   : > { %294 = sbr.rel (%p291_p2) target bundleno = 1724 (0x6bc), region = 52  ;;  %450 = vmatprep.mubr.bf16.mxu0 (!%p291_p2), %v5683_v1  ;;  %347 = vst [vmem:[#allocation2] sm:$0xff] (!%p291_p2), %v5683_v1  ;;  %5620 = vset.pattern.permute.xlu1 (!%p291_p2), %v5683_v1  ;;  %s5685_s18 = smov (!%p291_p2), 19   ;;  %vm538_vm2 = vcmask (!%p291_p2), 154624   ;;  %vm676_vm3 = vcmask (!%p291_p2), 138240   ;;  %v5632_v21 = vld [vmem:[%s7076_s1 + $0x18] sm:$0xff] (!%p291_p2)  }
   0x7   : > { %5197 = vmatprep.mubr.msk.bf16.mxu1 (!%p291_p2), %vm411_vm0, %v5772_v0  ;;  %5619 = vset.pattern.permute.xlu0 (!%p291_p2), %v5683_v1  ;;  %s5686_s19 = smov (!%p291_p2), 17   ;;  %s5687_s20 = smov (!%p291_p2), 1   ;;  %v1697_v25 = vld [vmem:[%s7077_s2 + $0x8] sm:$0xff] (!%p291_p2)  ;;  %v1696_v26 = vld [vmem:[%s7077_s2] sm:$0xff] (!%p291_p2)  ;;  %v1698_v28 = vld [vmem:[%s7077_s2 + $0x10] sm:$0xff] (!%p291_p2)  ;;  %vm826_vm4 = vcmask (!%p291_p2), 7168  }
   0x8   : > { %s5688_s21 = smov (!%p291_p2), 127   ;;  %s5689_s22 = smov (!%p291_p2), 111   ;;  %v1699_v30 = vld [vmem:[%s7077_s2 + $0x18] sm:$0xff] (!%p291_p2)  ;;  %v5633_v31 = vld [vmem:[%s7076_s1] sm:$0xff] (!%p291_p2)   ;;  %v5634_v40 = vld [vmem:[%s7076_s1 + $0x8] sm:$0xff] (!%p291_p2)   ;;  %vm1129_vm5 = vcmask (!%p291_p2), 1039360  }
   0x9   : > { %s5690_s23 = smov (!%p291_p2), 110   ;;  %s5691_s24 = smov (!%p291_p2), 109   ;;  %v5635_v43 = vld [vmem:[%s7076_s1 + $0x20] sm:$0xff] (!%p291_p2)   ;;  %v5636_v46 = vld [vmem:[%s7076_s1 + $0x28] sm:$0xff] (!%p291_p2)   ;;  %v5637_v47 = vld [vmem:[%s7076_s1 + $0x30] sm:$0xff] (!%p291_p2)   ;;  %vm1276_vm6 = vcmask (!%p291_p2), 908288  }
   0xa   : > { %v5638_v50 = vld [vmem:[%s7076_s1 + $0x38] sm:$0xff] (!%p291_p2)   ;;  %v5639_v51 = vld [vmem:[%s7076_s1 + $0x40] sm:$0xff] (!%p291_p2)   ;;  %v5640_v57 = vld [vmem:[%s7076_s1 + $0x48] sm:$0xff] (!%p291_p2)   ;;  %vm1423_vm7 = vcmask (!%p291_p2), 900096   ;;  %vm1570_vm8 = vcmask (!%p291_p2), 891904   ;;  %vm349_vm9 = vcmask (!%p291_p2), 1047808  }
   0xb   : > { %v5641_v58 = vld [vmem:[%s7076_s1 + $0x50] sm:$0xff] (!%p291_p2)   ;;  %v5642_v60 = vld [vmem:[%s7076_s1 + $0x58] sm:$0xff] (!%p291_p2)   ;;  %v5643_v62 = vld [vmem:[%s7076_s1 + $0x60] sm:$0xff] (!%p291_p2)   ;;  %351 = vst.msk [vmem:[#allocation2 + $0x38] sm:$0xff] (!%p291_p2), %vm349_vm9, %v5683_v1  ;;  %vm1780_vm10 = vcmask (!%p291_p2), 261120   ;;  %vm3267_vm11 = vcmask (!%p291_p2), 125952  }
   0xc   : > { %350 = vst.msk [vmem:[#allocation2 + $0x18] sm:$0xff] (!%p291_p2), %vm349_vm9, %v5683_v1  ;;  %354 = vst.msk [vmem:[#allocation3 + $0x18] sm:$0xff] (!%p291_p2), %vm349_vm9, %v5683_v1  ;;  %vm5695_vm12 = vmmov (!%p291_p2), 0   ;;  %s5698_s28 = smov (!%p291_p2), 118   ;;  %s5699_s29 = smov (!%p291_p2), 116   ;;  %vm3284_vm13 = vcmask (!%p291_p2), 257152  }
   0xd   : > { %s7102_s10 = smov (!%p331_p3, %s4842_s10), 1  ;;  %355 = vst.msk [vmem:[#allocation3 + $0x38] sm:$0xff] %vm349_vm9, %v5683_v1  ;;  %s5700_s14 = smov 114   ;;  %vm3301_vm14 = vcmask 388352   ;;  %vm3318_vm15 = vcmask 519552  }
   0xe   : > { %s5082_s13 = sshll.u32 %s7102_s10, 5  ;;  %s5701_s15 = smov 112  }
   0xf   : > { %s5783_s16 = scalar_lea.vmem %s7075_s0, %s5082_s13  ;;  %s6318_s25 = scalar_lea.vmem %s7084_s9, %s5082_s13 }
  0x10   : > { %v5621_v2 = vld [vmem:[%s5783_s16 + $0x4] ss:$16 sps:$4 sm:$0xff]   ;;  %v5623_v3 = vld [vmem:[%s5783_s16] ss:$16 sps:$4 sm:$0xff]   ;;  %v5624_v4 = vld [vmem:[%s5783_s16 + $0x8] ss:$16 sps:$4 sm:$0xff]  }
  0x11   : > { %398 = vrot.lane.b32.xlu0 %v5621_v2, %s5684_s17  ;;  %396 = vrot.lane.b32.xlu1 %v5623_v3, %s5684_s17  ;;  %v5626_v5 = vld [vmem:[%s5783_s16 + $0xc] ss:$16 sps:$4 sm:$0xff]   ;;  %v5807_v6 = vld [vmem:[%s5783_s16 + $0x8] ss:$16 sps:$4 sm:$0xff]   ;;  %s5083_s26 = sshll.u32 %s7102_s10, 2  ;;  %s5704_s10 = smov 106  }
  0x12   : > { %v5811_v7 = vld [vmem:[%s5783_s16 + $0xc] ss:$16 sps:$4 sm:$0xff]   ;;  %v5816_v8 = vld [vmem:[%s5783_s16 + $0x4] ss:$16 sps:$4 sm:$0xff]   ;;  %s6873_s12 = scalar_lea.vmem %s7083_s8, %s5083_s26 }
  0x15   : > { %400 = vrot.lane.b32.xlu0 %v5624_v4, %s5684_s17  ;;  %532 = vrot.lane.b32.xlu1 %v5621_v2, %s5685_s18 }
  0x19   : > { %534 = vrot.lane.b32.xlu0 %v5624_v4, %s5685_s18  ;;  %530 = vrot.lane.b32.xlu1 %v5623_v3, %s5685_s18 }
  0x1d   : > { %670 = vrot.lane.b32.xlu0 %v5621_v2, %s5686_s19  ;;  %672 = vrot.lane.b32.xlu1 %v5624_v4, %s5686_s19 }
  0x21   : > { %668 = vrot.lane.b32.xlu0 %v5623_v3, %s5686_s19  ;;  %820 = vrot.lane.b32.xlu1 %v5621_v2, %s5687_s20 }
  0x25   : > { %822 = vrot.lane.b32.xlu0 %v5624_v4, %s5687_s20  ;;  %818 = vrot.lane.b32.xlu1 %v5623_v3, %s5687_s20  ;;  %v5644_v4 = vld [vmem:[%s7076_s1 + $0x68] sm:$0xff]  }
  0x29   : > { %402 = vrot.lane.b32.xlu0 %v5626_v5, %s5684_s17  ;;  %536 = vrot.lane.b32.xlu1 %v5626_v5, %s5685_s18 }
  0x2d   : > { %674 = vrot.lane.b32.xlu0 %v5626_v5, %s5686_s19  ;;  %1125 = vrot.lane.b32.xlu1 %v5807_v6, %s5688_s21 }
  0x31   : > { %1127 = vrot.lane.b32.xlu0 %v5811_v7, %s5688_s21  ;;  %1123 = vrot.lane.b32.xlu1 %v5816_v8, %s5688_s21 }
  0x35   : > { %824 = vrot.lane.b32.xlu0 %v5626_v5, %s5687_s20  ;;  %1272 = vrot.lane.b32.xlu1 %v5807_v6, %s5689_s22  ;;  %v5645_v5 = vld [vmem:[%s7076_s1 + $0x70] sm:$0xff]  }
  0x39   : > { %1274 = vrot.lane.b32.xlu0 %v5811_v7, %s5689_s22  ;;  %1270 = vrot.lane.b32.xlu1 %v5816_v8, %s5689_s22 }
  0x3d   : > { %1419 = vrot.lane.b32.xlu0 %v5807_v6, %s5690_s23  ;;  %1421 = vrot.lane.b32.xlu1 %v5811_v7, %s5690_s23 }
  0x41   : > { %1417 = vrot.lane.b32.xlu0 %v5816_v8, %s5690_s23  ;;  %1566 = vrot.lane.b32.xlu1 %v5807_v6, %s5691_s24 }
  0x45   : > { %1568 = vrot.lane.b32.xlu0 %v5811_v7, %s5691_s24  ;;  %1564 = vrot.lane.b32.xlu1 %v5816_v8, %s5691_s24 }
  0x49   : > { %1707 = vperm.xlu1 %5620, %v1697_v25   ;;  %1702 = vperm.xlu0 %5619, %v1696_v26  }
  0x4d   : > { %1712 = vperm.xlu1 %5620, %v1698_v28   ;;  %1717 = vperm.xlu0 %5619, %v1699_v30  }
  0x51   : > { %1820 = vrot.lane.b32.xlu1 %v5683_v1, %s5684_s17 }
  0x83   : > { %v399_v9 = vpop.permute.xlu0 %398  ;;  %v397_v10 = vpop.permute.xlu1 %396 }
  0x84   : > { %v405_v14 = vsel %vm404_vm1, %v397_v10, %v399_v9  ;;  %v5646_v10 = vld [vmem:[%s7076_s1 + $0x78] sm:$0xff]  }
  0x87   : > { %v401_v11 = vpop.permute.xlu0 %400  ;;  %v533_v12 = vpop.permute.xlu1 %532 }
  0x88   : > { %v406_v13 = vsel %vm404_vm1, %v399_v9, %v401_v11 }
  0x89   : > { %418 = vmatprep.subr.bf16.mxu0 %v406_v13 }
  0x8a   : > { %419 = vmatpush1.bf16.msra.mxu0 %v405_v14  ;;  %v5648_v14 = vld [vmem:[%s7076_s1 + $0x88] sm:$0xff]  }
  0x8b   : > { %v535_v15 = vpop.permute.xlu0 %534  ;;  %v531_v16 = vpop.permute.xlu1 %530 }
  0x8c   : > { %v540_v17 = vsel %vm538_vm2, %v533_v12, %v535_v15  ;;  %v539_v18 = vsel %vm538_vm2, %v531_v16, %v533_v12 }
  0x8d   : > { %4863 = vmatmul.mubr.msk.bf16.vlgmr.msra.gmra.mrb[0].mxu0 %vm411_vm0, %v5772_v0  ;;  %551 = vmatprep.subr.bf16.mxu0 %v540_v17 }
  0x8e   : > { %552 = vmatpush1.bf16.msra.mxu0 %v539_v18  ;;  %460 = vmatprep.mubr.bf16.mxu0 %v5683_v1 }
  0x8f   : > { %v671_v19 = vpop.permute.xlu0 %670  ;;  %v673_v20 = vpop.permute.xlu1 %672 }
  0x90   : > { %v678_v22 = vsel %vm676_vm3, %v671_v19, %v673_v20 }
  0x91   : > { %689 = vmatprep.subr.bf16.mxu0 %v678_v22  ;;  %v356_v22 = vld [vmem:[%s7082_s7] sm:$0x7] }
  0x93   : > { %v669_v23 = vpop.permute.xlu0 %668  ;;  %v821_v24 = vpop.permute.xlu1 %820 }
  0x94   : > { %v677_v32 = vsel %vm676_vm3, %v669_v23, %v671_v19 }
  0x95   : > { %4864 = vmatmul.mubr.msk.bf16.gmra.mrb[4].mxu0 %vm411_vm0, %v5632_v21 }
  0x96   : > { %583 = vmatprep.mubr.bf16.mxu0 %v5683_v1 }
  0x97   : > { %v823_v27 = vpop.permute.xlu0 %822  ;;  %v819_v29 = vpop.permute.xlu1 %818 }
  0x98   : > { %v828_v36 = vsel %vm826_vm4, %v821_v24, %v823_v27  ;;  %v827_v44 = vsel %vm826_vm4, %v819_v29, %v821_v24 }
  0x9b   : > { %v403_v33 = vpop.permute.xlu0 %402  ;;  %v537_v34 = vpop.permute.xlu1 %536 }
  0x9c   : > { %v407_v35 = vsel %vm404_vm1, %v401_v11, %v403_v33  ;;  %v541_v37 = vsel %vm538_vm2, %v535_v15, %v537_v34  ;;  %v5647_v11 = vld [vmem:[%s7076_s1 + $0x80] sm:$0xff]   ;;  %v1745_v15 = vlaneseq }
  0x9d   : > { %5195 = vmatprep.subr.bf16.mxu1 %v407_v35  ;;  %4869 = vmatmul.mubr.msk.bf16.vlgmr.msra.gmra.mrb[0].mxu0 %vm411_vm0, %v5633_v31 }
  0x9e   : > { %690 = vmatpush1.bf16.msra.mxu0 %v677_v32  ;;  %5196 = vmatpush3.bf16.msra.mxu1 %v407_v35  ;;  %v5989_v18 = vshrl.u32 %v1745_v15, 7 }
  0x9f   : > { %v675_v38 = vpop.permute.xlu0 %674  ;;  %5201 = vmatprep.subr.bf16.mxu1 %v541_v37  ;;  %593 = vmatprep.mubr.bf16.mxu0 %v5683_v1  ;;  %v1126_v48 = vpop.permute.xlu1 %1125 }
  0xa0   : > { %v679_v39 = vsel %vm676_vm3, %v673_v20, %v675_v38  ;;  %839 = vmatprep.subr.bf16.mxu0 %v828_v36  ;;  %v1755_v20 = vsub.s32 2, %v5989_v18 }
  0xa1   : > { %5198 = vmatmul.mubr.msk.bf16.vlgmr.msra.gmra.mrb[0].mxu1 %vm411_vm0, %v5632_v21 }
  0xa2   : > { %5202 = vmatpush3.bf16.msra.mxu1 %v541_v37  ;;  %5203 = vmatprep.mubr.msk.bf16.mxu1 %vm411_vm0, %v5633_v31  ;;  %v5995_v29 = vrot.slane %v356_v22, %v1755_v20 }
  0xa3   : > { %5207 = vmatprep.subr.bf16.mxu1 %v679_v39  ;;  %v1128_v41 = vpop.permute.xlu0 %1127  ;;  %v1124_v52 = vpop.permute.xlu1 %1123 }
  0xa4   : > { %v1131_v49 = vsel %vm1129_vm5, %v1126_v48, %v1128_v41  ;;  %v1130_v54 = vsel %vm1129_vm5, %v1124_v52, %v1126_v48 }
  0xa5   : > { %4870 = vmatmul.mubr.msk.bf16.gmra.mrb[4].mxu0 %vm411_vm0, %v5634_v40 }
  0xa6   : > { %721 = vmatprep.mubr.bf16.mxu0 %v5683_v1 }
  0xa7   : > { %v825_v42 = vpop.permute.xlu0 %824  ;;  %v1273_v55 = vpop.permute.xlu1 %1272 }
  0xa8   : > { %v829_v45 = vsel %vm826_vm4, %v823_v27, %v825_v42  ;;  %v1747_v42 = vsub.s32 0, %v5989_v18 }
  0xab   : > { %v1275_v53 = vpop.permute.xlu0 %1274  ;;  %v1271_v59 = vpop.permute.xlu1 %1270 }
  0xac   : > { %v1278_v56 = vsel %vm1276_vm6, %v1273_v55, %v1275_v53  ;;  %v1277_v61 = vsel %vm1276_vm6, %v1271_v59, %v1273_v55 }
  0xad   : > { %5204 = vmatmul.mubr.msk.bf16.vlgmr.msra.gmra.mrb[0].mxu1 %vm411_vm0, %v5634_v40  ;;  %4879 = vmatmul.mubr.msk.bf16.vlgmr.msra.gmra.mrb[0].mxu0 %vm411_vm0, %v5635_v43 }
  0xae   : > { %5208 = vmatpush3.bf16.msra.mxu1 %v679_v39  ;;  %840 = vmatpush1.bf16.msra.mxu0 %v827_v44  ;;  %v1751_v44 = vsub.s32 1, %v5989_v18 }
  0xaf   : > { %5213 = vmatprep.subr.bf16.mxu1 %v829_v45  ;;  %731 = vmatprep.mubr.bf16.mxu0 %v5683_v1  ;;  %v1420_v63 = vpop.permute.xlu0 %1419  ;;  %v1422_v0 = vpop.permute.xlu1 %1421 }
  0xb0   : > { %5209 = vmatprep.mubr.msk.bf16.mxu1 %vm411_vm0, %v5635_v43  ;;  %994 = vmatprep.subr.bf16.mxu0 %v5807_v6  ;;  %v1425_v2 = vsel %vm1423_vm7, %v1420_v63, %v1422_v0 }
  0xb3   : > { %v1418_v3 = vpop.permute.xlu0 %1417 }
  0xb5   : > { %4880 = vmatmul.mubr.msk.bf16.gmra.mrb[4].mxu0 %vm411_vm0, %v5636_v46 }
  0xb6   : > { %871 = vmatprep.mubr.bf16.mxu0 %v5683_v1 }
  0xb7   : > { %v1569_v6 = vpop.permute.xlu0 %1568 }
  0xb9   : > { %5210 = vmatmul.mubr.msk.bf16.vlgmr.msra.gmra.mrb[0].mxu1 %vm411_vm0, %v5636_v46 }
  0xba   : > { %5214 = vmatpush3.bf16.msra.mxu1 %v829_v45  ;;  %5215 = vmatprep.mubr.msk.bf16.mxu1 %vm411_vm0, %v5637_v47 }
  0xbb   : > { %5219 = vmatprep.subr.bf16.mxu1 %v5811_v7 }
  0xbd   : > { %4889 = vmatmul.mubr.msk.bf16.vlgmr.msra.gmra.mrb[0].mxu0 %vm411_vm0, %v5637_v47 }
  0xbe   : > { %995 = vmatpush1.bf16.msra.mxu0 %v5816_v8  ;;  %881 = vmatprep.mubr.bf16.mxu0 %v5683_v1  ;;  %v1567_v8 = vpop.permute.xlu1 %1566 }
  0xbf   : > { %1141 = vmatprep.subr.bf16.mxu0 %v1131_v49  ;;  %v1572_v9 = vsel %vm1570_vm8, %v1567_v8, %v1569_v6 }
  0xc2   : > { %v1565_v12 = vpop.permute.xlu1 %1564 }
  0xc3   : > { %v1571_v13 = vsel %vm1570_vm8, %v1565_v12, %v1567_v8 }
  0xc5   : > { %4890 = vmatmul.mubr.msk.bf16.gmra.mrb[4].mxu0 %vm411_vm0, %v5638_v50  ;;  %5216 = vmatmul.mubr.msk.bf16.vlgmr.msra.gmra.mrb[0].mxu1 %vm411_vm0, %v5638_v50  ;;  %v6005_v50 = vrot.slane %v356_v22, %v1747_v42 }
  0xc6   : > { %1026 = vmatprep.mubr.bf16.mxu0 %v5683_v1  ;;  %5220 = vmatpush3.bf16.msra.mxu1 %v5811_v7  ;;  %v1424_v7 = vsel %vm1423_vm7, %v1418_v3, %v1420_v63 }
  0xc7   : > { %5225 = vmatprep.subr.bf16.mxu1 %v1128_v41  ;;  %5221 = vmatprep.mubr.msk.bf16.mxu1 %vm411_vm0, %v5639_v51 }
  0xc8   : > { %v1708_v16 = vpop.permute.xlu1 %1707  ;;  %v1703_v17 = vpop.permute.xlu0 %1702 }
  0xcc   : > { %v1713_v19 = vpop.permute.xlu1 %1712  ;;  %v1718_v23 = vpop.permute.xlu0 %1717 }
  0xcd   : > { %4902 = vmatmul.mubr.msk.bf16.vlgmr.msra.gmra.mrb[0].mxu0 %vm411_vm0, %v5639_v51 }
  0xce   : > { %1142 = vmatpush1.bf16.msra.mxu0 %v1130_v54  ;;  %1036 = vmatprep.mubr.bf16.mxu0 %v5683_v1  ;;  %v6007_v54 = vrot.slane %v356_v22, %v1751_v44 }
  0xcf   : > { %1288 = vmatprep.subr.bf16.mxu0 %v1278_v56 }
  0xd0   : > { %v1821_v22 = vpop.permute.xlu1 %1820 }
  0xd1   : > { %5222 = vmatmul.mubr.msk.bf16.vlgmr.msra.gmra.mrb[0].mxu1 %vm411_vm0, %v5640_v57 }
  0xd2   : > { %5226 = vmatpush3.bf16.msra.mxu1 %v1128_v41  ;;  %5227 = vmatprep.mubr.msk.bf16.mxu1 %vm411_vm0, %v5641_v58 }
  0xd3   : > { %5231 = vmatprep.subr.bf16.mxu1 %v1275_v53 }
  0xd5   : > { %4903 = vmatmul.mubr.msk.bf16.gmra.mrb[4].mxu0 %vm411_vm0, %v5640_v57 }
  0xd6   : > { %1173 = vmatprep.mubr.bf16.mxu0 %v5683_v1 }
  0xdd   : > { %4912 = vmatmul.mubr.msk.bf16.vlgmr.msra.gmra.mrb[0].mxu0 %vm411_vm0, %v5641_v58  ;;  %5228 = vmatmul.mubr.msk.bf16.vlgmr.msra.gmra.mrb[0].mxu1 %vm411_vm0, %v5642_v60 }
  0xde   : > { %1289 = vmatpush1.bf16.msra.mxu0 %v1277_v61  ;;  %5232 = vmatpush3.bf16.msra.mxu1 %v1275_v53 }
  0xdf   : > { %1183 = vmatprep.mubr.bf16.mxu0 %v5683_v1  ;;  %5233 = vmatprep.mubr.msk.bf16.mxu1 %vm411_vm0, %v5643_v62 }
  0xe0   : > { %1435 = vmatprep.subr.bf16.mxu0 %v1425_v2  ;;  %5237 = vmatprep.subr.bf16.mxu1 %v1422_v0 }
  0xe5   : > { %4913 = vmatmul.mubr.msk.bf16.gmra.mrb[4].mxu0 %vm411_vm0, %v5642_v60 }
  0xe6   : > { %1320 = vmatprep.mubr.bf16.mxu0 %v5683_v1 }
  0xe9   : > { %5234 = vmatmul.mubr.msk.bf16.vlgmr.msra.gmra.mrb[0].mxu1 %vm411_vm0, %v5644_v4 }
  0xea   : > { %5238 = vmatpush3.bf16.msra.mxu1 %v1422_v0  ;;  %5239 = vmatprep.mubr.msk.bf16.mxu1 %vm411_vm0, %v5645_v5 }
  0xeb   : > { %5243 = vmatprep.subr.bf16.mxu1 %v1569_v6 }
  0xed   : > { %4922 = vmatmul.mubr.msk.bf16.vlgmr.msra.gmra.mrb[0].mxu0 %vm411_vm0, %v5643_v62 }
  0xee   : > { %1436 = vmatpush1.bf16.msra.mxu0 %v1424_v7  ;;  %1330 = vmatprep.mubr.bf16.mxu0 %v5683_v1 }
  0xef   : > { %1582 = vmatprep.subr.bf16.mxu0 %v1572_v9 }
  0xf5   : > { %4923 = vmatmul.mubr.msk.bf16.gmra.mrb[4].mxu0 %vm411_vm0, %v5644_v4  ;;  %5240 = vmatmul.mubr.msk.bf16.vlgmr.msra.gmra.mrb[0].mxu1 %vm411_vm0, %v5646_v10 }
  0xf6   : > { %1467 = vmatprep.mubr.bf16.mxu0 %v5683_v1  ;;  %5244 = vmatpush3.bf16.msra.mxu1 %v1569_v6 }
  0xf7   : > { %5245 = vmatprep.mubr.msk.bf16.mxu1 %vm411_vm0, %v5647_v11 }
  0xfd   : > { %4932 = vmatmul.mubr.msk.bf16.vlgmr.msra.gmra.mrb[0].mxu0 %vm411_vm0, %v5645_v5 }
  0xfe   : > { %1583 = vmatpush1.bf16.msra.mxu0 %v1571_v13  ;;  %1477 = vmatprep.mubr.bf16.mxu0 %v5683_v1 }
 0x101   : > { %5246 = vmatmul.mubr.msk.bf16.vlgmr.msra.gmra.mrb[0].mxu1 %vm411_vm0, %v5648_v14 }
 0x102   : > { %1886 = vmatprep.mubr.bf16.mxu1 %v5683_v1 }
 0x105   : > { %4933 = vmatmul.mubr.msk.bf16.gmra.mrb[4].mxu0 %vm411_vm0, %v5646_v10 }
 0x106   : > { %1614 = vmatprep.mubr.bf16.mxu0 %v5683_v1 }
 0x10d   : > { %4942 = vmatmul.mubr.msk.bf16.vlgmr.msra.gmra.mrb[0].mxu0 %vm411_vm0, %v5647_v11 }
 0x10e   : > { %1624 = vmatprep.mubr.bf16.mxu0 %v5683_v1 }
 0x115   : > { %4943 = vmatmul.mubr.msk.bf16.gmra.mrb[4].mxu0 %vm411_vm0, %v5648_v14  ;;  %vm3335_vm0 = vcmask 650752  }
 0x116   : > { %3657 = vmatprep.mubr.bf16.mxu0 %v5683_v1 }
 0x1d4   : > { %v5247_v21 = vpop.f32.mrb[0].mxu1 }
 0x1d5   : > { %v1728_v24 = vadd.f32 %v5247_v21, %v1713_v19  ;;  %v1669_v25 = vpop.f32.mrb[1].mxu1 }
 0x1d6   : > { %v1722_v26 = vadd.f32 %v1703_v17, %v1669_v25  ;;  %v5248_v27 = vpop.f32.mrb[2].mxu1 }
 0x1d7   : > { %v1740_v28 = vmax.f32 %v1728_v24, 0.0  ;;  %v1731_v30 = vadd.f32 %v5248_v27, %v1718_v23  ;;  %v1672_v31 = vpop.f32.mrb[3].mxu1  ;;  %v3192_v24 = vld [vmem:[%s7079_s4 + $0x8] sm:$0xff] }
 0x1d8   : > { %v1734_v32 = vmax.f32 %v1722_v26, 0.0  ;;  %v1725_v33 = vadd.f32 %v1708_v16, %v1672_v31  ;;  %v3193_v26 = vld [vmem:[%s7079_s4 + $0x10] sm:$0xff]  ;;  %v3194_v31 = vld [vmem:[%s7079_s4 + $0x18] sm:$0xff] }
 0x1d9   : > { %v1743_v34 = vmax.f32 %v1731_v30, 0.0  ;;  %v1768_v36 = vmul.f32 %v5995_v29, %v1740_v28 }
 0x1da   : > { %v1737_v35 = vmax.f32 %v1725_v33, 0.0  ;;  %v1762_v38 = vmul.f32 %v5995_v29, %v1734_v32 }
 0x1db   : > { %v1771_v37 = vmul.f32 %v5995_v29, %v1743_v34 }
 0x1dc   : > { %v1765_v39 = vmul.f32 %v5995_v29, %v1737_v35 }
 0x1dd   : > { %v1777_v40 = vpack.c.bf16 %v1771_v37, %v1768_v36 }
 0x1de   : > { %v1774_v41 = vpack.c.bf16 %v1765_v39, %v1762_v38  ;;  %v5649_v38 = vld [vmem:[%s7078_s3 + $0x10] sm:$0xff]  }
 0x1df   : > { %1784 = vst.msk [vmem:[#allocation2 + $0x38] sm:$0xff] %vm1780_vm10, %v1777_v40 }
 0x1e0   : > { %1781 = vst.msk [vmem:[#allocation2 + $0x18] sm:$0xff] %vm1780_vm10, %v1774_v41  ;;  %v1616_v43 = vpop.f32.mrb[0].mxu0 }
 0x1e1   : > { %v1720_v45 = vadd.f32 %v1703_v17, %v1616_v43  ;;  %v1618_v46 = vpop.f32.mrb[1].mxu0 }
 0x1e2   : > { %v1721_v47 = vadd.f32 %v1703_v17, %v1618_v46  ;;  %v1620_v48 = vpop.f32.mrb[2].mxu0 }
 0x1e3   : > { %v1732_v49 = vmax.f32 %v1720_v45, 0.0  ;;  %v1723_v51 = vadd.f32 %v1708_v16, %v1620_v48  ;;  %v1622_v52 = vpop.f32.mrb[3].mxu0  ;;  %v5650_v45 = vld [vmem:[%s7078_s3 + $0x18] sm:$0xff]  }
 0x1e4   : > { %v1733_v53 = vmax.f32 %v1721_v47, 0.0  ;;  %v1724_v55 = vadd.f32 %v1708_v16, %v1622_v52 }
 0x1e5   : > { %v1735_v56 = vmax.f32 %v1723_v51, 0.0  ;;  %v1760_v58 = vmul.f32 %v6005_v50, %v1732_v49 }
 0x1e6   : > { %v1736_v57 = vmax.f32 %v1724_v55, 0.0  ;;  %v1761_v60 = vmul.f32 %v6007_v54, %v1733_v53  ;;  %v6039_v21 = vld [vmem:[#allocation2 + $0x38] sm:$0xff] }
 0x1e7   : > { %v1763_v59 = vmul.f32 %v6005_v50, %v1735_v56  ;;  %v6035_v20 = vld [vmem:[#allocation2 + $0x18] sm:$0xff] }
 0x1e8   : > { %v1764_v61 = vmul.f32 %v6007_v54, %v1736_v57  ;;  %v1626_v62 = vpop.f32.mrb[4].mxu0  ;;  %v5651_v57 = vld [vmem:[%s7078_s3] sm:$0xff]  }
 0x1e9   : > { %v6013_v63 = vpack.c.bf16 %v1763_v59, %v1760_v58  ;;  %v1726_v0 = vadd.f32 %v1713_v19, %v1626_v62  ;;  %v1628_v2 = vpop.f32.mrb[5].mxu0  ;;  %v5652_v62 = vld [vmem:[%s7078_s3 + $0x8] sm:$0xff]  }
 0x1ea   : > { %v6015_v3 = vpack.c.bf16 %v1764_v61, %v1761_v60  ;;  %v1727_v4 = vadd.f32 %v1713_v19, %v1628_v2  ;;  %v1630_v5 = vpop.f32.mrb[6].mxu0 }
 0x1eb   : > { %v1738_v6 = vmax.f32 %v1726_v0, 0.0  ;;  %v1729_v7 = vadd.f32 %v1718_v23, %v1630_v5  ;;  %v1632_v8 = vpop.f32.mrb[7].mxu0  ;;  %1822 = vrot.lane.b32.xlu1 %v6013_v63, %s5684_s17 }
 0x1ec   : > { %v1739_v9 = vmax.f32 %v1727_v4, 0.0  ;;  %v1730_v10 = vadd.f32 %v1718_v23, %v1632_v8  ;;  %1824 = vrot.lane.b32.xlu0 %v6015_v3, %s5684_s17  ;;  %v3191_v23 = vld [vmem:[%s7079_s4] sm:$0xff] }
 0x1ed   : > { %v1741_v11 = vmax.f32 %v1729_v7, 0.0  ;;  %v1766_v13 = vmul.f32 %v6005_v50, %v1738_v6  ;;  %v6191_v8 = vld [vmem:[#allocation2] sm:$0xff] }
 0x1ee   : > { %v1742_v12 = vmax.f32 %v1730_v10, 0.0  ;;  %v1767_v15 = vmul.f32 %v6007_v54, %v1739_v9 }
 0x1ef   : > { %v1769_v14 = vmul.f32 %v6005_v50, %v1741_v11 }
 0x1f0   : > { %v1770_v16 = vmul.f32 %v6007_v54, %v1742_v12  ;;  %v5653_v12 = vld [vmem:[%s7078_s3 + $0x20] sm:$0xff]  }
 0x1f1   : > { %v6025_v17 = vpack.c.bf16 %v1769_v14, %v1766_v13 }
 0x1f2   : > { %v6027_v19 = vpack.c.bf16 %v1770_v16, %v1767_v15 }
 0x1f3   : > { %1830 = vrot.lane.b32.xlu0 %v6025_v17, %s5684_s17 }
 0x1f4   : > { %1832 = vrot.lane.b32.xlu1 %v6027_v19, %s5684_s17 }
 0x1f7   : > { %1828 = vrot.lane.b32.xlu0 %v5683_v1, %s5684_s17 }
 0x1f8   : > { %1826 = vrot.lane.b32.xlu1 %v6035_v20, %s5684_s17 }
 0x1fb   : > { %1834 = vrot.lane.b32.xlu0 %v6039_v21, %s5684_s17 }
 0x1fc   : > { %1968 = vrot.lane.b32.xlu1 %v6013_v63, %s5685_s18 }
 0x1ff   : > { %1970 = vrot.lane.b32.xlu0 %v6015_v3, %s5685_s18 }
 0x200   : > { %1966 = vrot.lane.b32.xlu1 %v5683_v1, %s5685_s18 }
 0x203   : > { %1976 = vrot.lane.b32.xlu0 %v6025_v17, %s5685_s18 }
 0x204   : > { %1978 = vrot.lane.b32.xlu1 %v6027_v19, %s5685_s18 }
 0x207   : > { %1974 = vrot.lane.b32.xlu0 %v5683_v1, %s5685_s18 }
 0x208   : > { %1972 = vrot.lane.b32.xlu1 %v6035_v20, %s5685_s18 }
 0x20b   : > { %1980 = vrot.lane.b32.xlu0 %v6039_v21, %s5685_s18 }
 0x20c   : > { %2119 = vrot.lane.b32.xlu1 %v6013_v63, %s5686_s19 }
 0x20f   : > { %2121 = vrot.lane.b32.xlu0 %v6015_v3, %s5686_s19 }
 0x210   : > { %2117 = vrot.lane.b32.xlu1 %v5683_v1, %s5686_s19 }
 0x213   : > { %2127 = vrot.lane.b32.xlu0 %v6025_v17, %s5686_s19 }
 0x214   : > { %2129 = vrot.lane.b32.xlu1 %v6027_v19, %s5686_s19 }
 0x217   : > { %2125 = vrot.lane.b32.xlu0 %v5683_v1, %s5686_s19 }
 0x218   : > { %2123 = vrot.lane.b32.xlu1 %v6035_v20, %s5686_s19 }
 0x21b   : > { %2131 = vrot.lane.b32.xlu0 %v6039_v21, %s5686_s19 }
 0x21c   : > { %2282 = vrot.lane.b32.xlu1 %v6013_v63, %s5687_s20 }
 0x21f   : > { %2284 = vrot.lane.b32.xlu0 %v6015_v3, %s5687_s20 }
 0x220   : > { %2280 = vrot.lane.b32.xlu1 %v5683_v1, %s5687_s20 }
 0x223   : > { %2290 = vrot.lane.b32.xlu0 %v6025_v17, %s5687_s20 }
 0x224   : > { %2292 = vrot.lane.b32.xlu1 %v6027_v19, %s5687_s20 }
 0x227   : > { %2288 = vrot.lane.b32.xlu0 %v5683_v1, %s5687_s20 }
 0x228   : > { %2286 = vrot.lane.b32.xlu1 %v6035_v20, %s5687_s20 }
 0x22b   : > { %2294 = vrot.lane.b32.xlu0 %v6039_v21, %s5687_s20 }
 0x22c   : > { %2580 = vrot.lane.b32.xlu1 %v6015_v3, %s5688_s21 }
 0x22f   : > { %2582 = vrot.lane.b32.xlu0 %v6035_v20, %s5688_s21 }
 0x230   : > { %2578 = vrot.lane.b32.xlu1 %v6013_v63, %s5688_s21 }
 0x233   : > { %2586 = vrot.lane.b32.xlu0 %v6027_v19, %s5688_s21 }
 0x234   : > { %2588 = vrot.lane.b32.xlu1 %v6039_v21, %s5688_s21 }
 0x237   : > { %2584 = vrot.lane.b32.xlu0 %v6025_v17, %s5688_s21 }
 0x238   : > { %2737 = vrot.lane.b32.xlu1 %v6015_v3, %s5689_s22 }
 0x23b   : > { %2739 = vrot.lane.b32.xlu0 %v6035_v20, %s5689_s22 }
 0x23c   : > { %2735 = vrot.lane.b32.xlu1 %v6013_v63, %s5689_s22 }
 0x23f   : > { %2743 = vrot.lane.b32.xlu0 %v6027_v19, %s5689_s22 }
 0x240   : > { %2745 = vrot.lane.b32.xlu1 %v6039_v21, %s5689_s22 }
 0x243   : > { %2741 = vrot.lane.b32.xlu0 %v6025_v17, %s5689_s22 }
 0x244   : > { %2894 = vrot.lane.b32.xlu1 %v6015_v3, %s5690_s23 }
 0x247   : > { %2896 = vrot.lane.b32.xlu0 %v6035_v20, %s5690_s23 }
 0x248   : > { %2892 = vrot.lane.b32.xlu1 %v6013_v63, %s5690_s23 }
 0x24b   : > { %2900 = vrot.lane.b32.xlu0 %v6027_v19, %s5690_s23 }
 0x24c   : > { %2902 = vrot.lane.b32.xlu1 %v6039_v21, %s5690_s23 }
 0x24f   : > { %2898 = vrot.lane.b32.xlu0 %v6025_v17, %s5690_s23 }
 0x250   : > { %3051 = vrot.lane.b32.xlu1 %v6015_v3, %s5691_s24 }
 0x253   : > { %3053 = vrot.lane.b32.xlu0 %v6035_v20, %s5691_s24 }
 0x254   : > { %3049 = vrot.lane.b32.xlu1 %v6013_v63, %s5691_s24 }
 0x257   : > { %3057 = vrot.lane.b32.xlu0 %v6027_v19, %s5691_s24 }
 0x258   : > { %3059 = vrot.lane.b32.xlu1 %v6039_v21, %s5691_s24 }
 0x25b   : > { %3055 = vrot.lane.b32.xlu0 %v6025_v17, %s5691_s24 }
 0x25c   : > { %3197 = vperm.xlu1 %5620, %v3191_v23  }
 0x25d   : > { %v1823_v25 = vpop.permute.xlu1 %1822 }
 0x25e   : > { %v1825_v27 = vpop.permute.xlu0 %1824  ;;  %v1836_v30 = vsel %vm404_vm1, %v1821_v22, %v1823_v25  ;;  %v5654_v22 = vld [vmem:[%s7078_s3 + $0x28] sm:$0xff]  }
 0x25f   : > { %3202 = vperm.xlu0 %5619, %v3192_v24   ;;  %v1837_v28 = vsel %vm404_vm1, %v1823_v25, %v1825_v27 }
 0x260   : > { %3207 = vperm.xlu1 %5620, %v3193_v26   ;;  %1854 = vmatprep.subr.bf16.mxu1 %v1837_v28 }
 0x261   : > { %1855 = vmatpush1.bf16.msra.mxu1 %v1836_v30 }
 0x263   : > { %3212 = vperm.xlu0 %5619, %v3194_v31  }
 0x264   : > { %3594 = vrot.lane.b32.xlu1 %v5683_v1, %s5684_s17 }
 0x265   : > { %v1831_v32 = vpop.permute.xlu0 %1830 }
 0x266   : > { %v1833_v33 = vpop.permute.xlu1 %1832 }
 0x267   : > { %v1840_v34 = vsel %vm404_vm1, %v1831_v32, %v1833_v33 }
 0x268   : > { %1856 = vmatprep.subr.bf16.mxu1 %v1840_v34 }
 0x269   : > { %v1829_v35 = vpop.permute.xlu0 %1828 }
 0x26a   : > { %v1839_v36 = vsel %vm404_vm1, %v1829_v35, %v1831_v32  ;;  %v1827_v37 = vpop.permute.xlu1 %1826 }
 0x26b   : > { %1857 = vmatpush1.bf16.msra.mxu1 %v1839_v36  ;;  %v1838_v39 = vsel %vm404_vm1, %v1825_v27, %v1827_v37  ;;  %v5656_v37 = vld [vmem:[%s7078_s3 + $0x38] sm:$0xff]  }
 0x26c   : > { %5249 = vmatprep.subr.bf16.mxu1 %v1838_v39 }
 0x26d   : > { %v1835_v40 = vpop.permute.xlu0 %1834 }
 0x26e   : > { %4952 = vmatmul.mubr.msk.bf16.vlgmr.msra.gmra.mrb[4].mxu1 %vm1780_vm10, %v5649_v38  ;;  %v1969_v41 = vpop.permute.xlu1 %1968  ;;  %v1841_v42 = vsel %vm404_vm1, %v1833_v33, %v1835_v40  ;;  %v5655_v33 = vld [vmem:[%s7078_s3 + $0x30] sm:$0xff]  }
 0x26f   : > { %5250 = vmatpush3.bf16.msra.mxu1 %v1838_v39  ;;  %1896 = vmatprep.mubr.bf16.mxu1 %v5683_v1 }
 0x270   : > { %5251 = vmatprep.subr.bf16.mxu1 %v1841_v42 }
 0x271   : > { %v1971_v43 = vpop.permute.xlu0 %1970 }
 0x272   : > { %v1983_v44 = vsel %vm538_vm2, %v1969_v41, %v1971_v43  ;;  %v1967_v46 = vpop.permute.xlu1 %1966 }
 0x273   : > { %5252 = vmatpush3.bf16.msra.mxu1 %v1841_v42  ;;  %v1982_v51 = vsel %vm538_vm2, %v1967_v46, %v1969_v41 }
 0x274   : > { %2000 = vmatprep.subr.bf16.mxu1 %v1983_v44  ;;  %v5659_v44 = vld [vmem:[%s7078_s3 + $0x50] sm:$0xff]  }
 0x275   : > { %v1977_v47 = vpop.permute.xlu0 %1976 }
 0x276   : > { %4953 = vmatmul.mubr.msk.bf16.gmra.mrb[8].mxu1 %vm1780_vm10, %v5650_v45  ;;  %v1979_v48 = vpop.permute.xlu1 %1978 }
 0x277   : > { %5253 = vmatprep.mubr.msk.bf16.mxu1 %vm1780_vm10, %v5649_v38  ;;  %v1986_v52 = vsel %vm538_vm2, %v1977_v47, %v1979_v48  ;;  %v5657_v38 = vld [vmem:[%s7078_s3 + $0x40] sm:$0xff]  }
 0x279   : > { %v1975_v49 = vpop.permute.xlu0 %1974 }
 0x27a   : > { %v1973_v53 = vpop.permute.xlu1 %1972  ;;  %v1985_v55 = vsel %vm538_vm2, %v1975_v49, %v1977_v47  ;;  %v5660_v47 = vld [vmem:[%s7078_s3 + $0x58] sm:$0xff]  }
 0x27b   : > { %v1984_v58 = vsel %vm538_vm2, %v1971_v43, %v1973_v53 }
 0x27d   : > { %v1981_v56 = vpop.permute.xlu0 %1980 }
 0x27e   : > { %5254 = vmatmul.mubr.msk.bf16.vlgmr.msra.gmra.mrb[12].mxu1 %vm1780_vm10, %v5650_v45  ;;  %v2120_v59 = vpop.permute.xlu1 %2119  ;;  %v1987_v60 = vsel %vm538_vm2, %v1979_v48, %v1981_v56 }
 0x27f   : > { %2001 = vmatpush1.bf16.msra.mxu1 %v1982_v51  ;;  %2032 = vmatprep.mubr.bf16.mxu1 %v5683_v1 }
 0x280   : > { %2002 = vmatprep.subr.bf16.mxu1 %v1986_v52 }
 0x281   : > { %v2122_v61 = vpop.permute.xlu0 %2121 }
 0x282   : > { %v2134_v0 = vsel %vm676_vm3, %v2120_v59, %v2122_v61  ;;  %v2118_v2 = vpop.permute.xlu1 %2117 }
 0x283   : > { %2003 = vmatpush1.bf16.msra.mxu1 %v1985_v55 }
 0x284   : > { %5257 = vmatprep.subr.bf16.mxu1 %v1984_v58 }
 0x285   : > { %v2128_v4 = vpop.permute.xlu0 %2127 }
 0x286   : > { %4958 = vmatmul.mubr.msk.bf16.vlgmr.msra.gmra.mrb[4].mxu1 %vm1780_vm10, %v5651_v57  ;;  %v2130_v5 = vpop.permute.xlu1 %2129 }
 0x287   : > { %5258 = vmatpush3.bf16.msra.mxu1 %v1984_v58  ;;  %2042 = vmatprep.mubr.bf16.mxu1 %v5683_v1  ;;  %v2133_v1 = vsel %vm676_vm3, %v2118_v2, %v2120_v59  ;;  %v2137_v7 = vsel %vm676_vm3, %v2128_v4, %v2130_v5  ;;  %v5661_v58 = vld [vmem:[%s7078_s3 + $0x60] sm:$0xff]  }
 0x288   : > { %5259 = vmatprep.subr.bf16.mxu1 %v1987_v60 }
 0x289   : > { %v2126_v6 = vpop.permute.xlu0 %2125 }
 0x28a   : > { %v2124_v9 = vpop.permute.xlu1 %2123  ;;  %v2136_v10 = vsel %vm676_vm3, %v2126_v6, %v2128_v4 }
 0x28b   : > { %5260 = vmatpush3.bf16.msra.mxu1 %v1987_v60  ;;  %v2135_v13 = vsel %vm676_vm3, %v2122_v61, %v2124_v9  ;;  %v5662_v61 = vld [vmem:[%s7078_s3 + $0x68] sm:$0xff]   ;;  %v5663_v9 = vld [vmem:[%s7078_s3 + $0x70] sm:$0xff]  }
 0x28c   : > { %2151 = vmatprep.subr.bf16.mxu1 %v2134_v0 }
 0x28d   : > { %v2132_v11 = vpop.permute.xlu0 %2131 }
 0x28e   : > { %4959 = vmatmul.mubr.msk.bf16.gmra.mrb[8].mxu1 %vm1780_vm10, %v5652_v62  ;;  %v2283_v14 = vpop.permute.xlu1 %2282  ;;  %v2138_v15 = vsel %vm676_vm3, %v2130_v5, %v2132_v11 }
 0x28f   : > { %5261 = vmatprep.mubr.msk.bf16.mxu1 %vm1780_vm10, %v5651_v57 }
 0x291   : > { %v2285_v16 = vpop.permute.xlu0 %2284 }
 0x292   : > { %v2297_v23 = vsel %vm826_vm4, %v2283_v14, %v2285_v16  ;;  %v2281_v24 = vpop.permute.xlu1 %2280 }
 0x293   : > { %v2296_v27 = vsel %vm826_vm4, %v2281_v24, %v2283_v14 }
 0x295   : > { %v2291_v25 = vpop.permute.xlu0 %2290 }
 0x296   : > { %5262 = vmatmul.mubr.msk.bf16.vlgmr.msra.gmra.mrb[12].mxu1 %vm1780_vm10, %v5652_v62  ;;  %v2293_v26 = vpop.permute.xlu1 %2292 }
 0x297   : > { %2152 = vmatpush1.bf16.msra.mxu1 %v2133_v1  ;;  %2183 = vmatprep.mubr.bf16.mxu1 %v6191_v8  ;;  %v2300_v30 = vsel %vm826_vm4, %v2291_v25, %v2293_v26 }
 0x298   : > { %2153 = vmatprep.subr.bf16.mxu1 %v2137_v7 }
 0x299   : > { %v2289_v28 = vpop.permute.xlu0 %2288 }
 0x29a   : > { %v2287_v31 = vpop.permute.xlu1 %2286  ;;  %v2299_v32 = vsel %vm826_vm4, %v2289_v28, %v2291_v25 }
 0x29b   : > { %2154 = vmatpush1.bf16.msra.mxu1 %v2136_v10  ;;  %v2298_v34 = vsel %vm826_vm4, %v2285_v16, %v2287_v31 }
 0x29c   : > { %5265 = vmatprep.subr.bf16.mxu1 %v2135_v13 }
 0x29d   : > { %v2295_v35 = vpop.permute.xlu0 %2294 }
 0x29e   : > { %4968 = vmatmul.mubr.msk.bf16.vlgmr.msra.gmra.mrb[4].mxu1 %vm1780_vm10, %v5653_v12  ;;  %v2301_v36 = vsel %vm826_vm4, %v2293_v26, %v2295_v35  ;;  %v5665_v26 = vld [vmem:[%s7078_s3 + $0x80] sm:$0xff]  }
 0x29f   : > { %5266 = vmatpush3.bf16.msra.mxu1 %v2135_v13  ;;  %2193 = vmatprep.mubr.bf16.mxu1 %v6191_v8 }
 0x2a0   : > { %5267 = vmatprep.subr.bf16.mxu1 %v2138_v15 }
 0x2a3   : > { %5268 = vmatpush3.bf16.msra.mxu1 %v2138_v15 }
 0x2a4   : > { %2314 = vmatprep.subr.bf16.mxu1 %v2297_v23 }
 0x2a6   : > { %4969 = vmatmul.mubr.msk.bf16.gmra.mrb[8].mxu1 %vm1780_vm10, %v5654_v22 }
 0x2a7   : > { %5269 = vmatprep.mubr.msk.bf16.mxu1 %vm1780_vm10, %v5653_v12  ;;  %v5664_v12 = vld [vmem:[%s7078_s3 + $0x78] sm:$0xff]  }
 0x2ae   : > { %5270 = vmatmul.mubr.msk.bf16.vlgmr.msra.gmra.mrb[12].mxu1 %vm1780_vm10, %v5654_v22 }
 0x2af   : > { %2315 = vmatpush1.bf16.msra.mxu1 %v2296_v27  ;;  %2346 = vmatprep.mubr.bf16.mxu1 %v6191_v8  ;;  %v5666_v27 = vld [vmem:[%s7078_s3 + $0x88] sm:$0xff]  }
 0x2b0   : > { %2316 = vmatprep.subr.bf16.mxu1 %v2300_v30 }
 0x2b3   : > { %2317 = vmatpush1.bf16.msra.mxu1 %v2299_v32 }
 0x2b4   : > { %5273 = vmatprep.subr.bf16.mxu1 %v2298_v34 }
 0x2b6   : > { %4978 = vmatmul.mubr.msk.bf16.vlgmr.msra.gmra.mrb[4].mxu1 %vm1780_vm10, %v5655_v33 }
 0x2b7   : > { %5274 = vmatpush3.bf16.msra.mxu1 %v2298_v34  ;;  %2356 = vmatprep.mubr.bf16.mxu1 %v6191_v8 }
 0x2b8   : > { %5275 = vmatprep.subr.bf16.mxu1 %v2301_v36 }
 0x2bb   : > { %5276 = vmatpush3.bf16.msra.mxu1 %v2301_v36 }
 0x2bc   : > { %2449 = vmatprep.subr.bf16.mxu1 %v6015_v3  ;;  %v2581_v3 = vpop.permute.xlu1 %2580 }
 0x2be   : > { %4979 = vmatmul.mubr.msk.bf16.gmra.mrb[8].mxu1 %vm1780_vm10, %v5656_v37 }
 0x2bf   : > { %5277 = vmatprep.mubr.msk.bf16.mxu1 %vm1780_vm10, %v5655_v33 }
 0x2c0   : > { %v2579_v39 = vpop.permute.xlu1 %2578 }
 0x2c1   : > { %v2590_v41 = vsel %vm1129_vm5, %v2579_v39, %v2581_v3 }
 0x2c4   : > { %v2589_v40 = vpop.permute.xlu1 %2588 }
 0x2c6   : > { %5278 = vmatmul.mubr.msk.bf16.vlgmr.msra.gmra.mrb[12].mxu1 %vm1780_vm10, %v5656_v37 }
 0x2c7   : > { %2450 = vmatpush1.bf16.msra.mxu1 %v6013_v63  ;;  %2481 = vmatprep.mubr.bf16.mxu1 %v6191_v8  ;;  %v2583_v63 = vpop.permute.xlu0 %2582 }
 0x2c8   : > { %2451 = vmatprep.subr.bf16.mxu1 %v6027_v19  ;;  %v5658_v19 = vld [vmem:[%s7078_s3 + $0x48] sm:$0xff]   ;;  %v2738_v45 = vpop.permute.xlu1 %2737 }
 0x2cb   : > { %2452 = vmatpush1.bf16.msra.mxu1 %v6025_v17  ;;  %v2591_v17 = vsel %vm1129_vm5, %v2581_v3, %v2583_v63 }
 0x2cc   : > { %5281 = vmatprep.subr.bf16.mxu1 %v6035_v20  ;;  %v2736_v49 = vpop.permute.xlu1 %2735 }
 0x2cd   : > { %v2747_v53 = vsel %vm1276_vm6, %v2736_v49, %v2738_v45 }
 0x2ce   : > { %4988 = vmatmul.mubr.msk.bf16.vlgmr.msra.gmra.mrb[4].mxu1 %vm1780_vm10, %v5657_v38 }
 0x2cf   : > { %5282 = vmatpush3.bf16.msra.mxu1 %v6035_v20  ;;  %2491 = vmatprep.mubr.bf16.mxu1 %v6191_v8  ;;  %v2587_v20 = vpop.permute.xlu0 %2586 }
 0x2d0   : > { %5283 = vmatprep.subr.bf16.mxu1 %v6039_v21  ;;  %v2593_v43 = vsel %vm1129_vm5, %v2587_v20, %v2589_v40  ;;  %v2746_v52 = vpop.permute.xlu1 %2745 }
 0x2d3   : > { %5284 = vmatpush3.bf16.msra.mxu1 %v6039_v21  ;;  %v2585_v42 = vpop.permute.xlu0 %2584 }
 0x2d4   : > { %2606 = vmatprep.subr.bf16.mxu1 %v2591_v17  ;;  %v2592_v21 = vsel %vm1129_vm5, %v2585_v42, %v2587_v20  ;;  %v2895_v59 = vpop.permute.xlu1 %2894 }
 0x2d6   : > { %4989 = vmatmul.mubr.msk.bf16.gmra.mrb[8].mxu1 %vm1780_vm10, %v5658_v19 }
 0x2d7   : > { %5285 = vmatprep.mubr.msk.bf16.mxu1 %vm1780_vm10, %v5657_v38  ;;  %v2740_v46 = vpop.permute.xlu0 %2739 }
 0x2d8   : > { %v2748_v48 = vsel %vm1276_vm6, %v2738_v45, %v2740_v46  ;;  %v2893_v0 = vpop.permute.xlu1 %2892 }
 0x2d9   : > { %v2904_v5 = vsel %vm1423_vm7, %v2893_v0, %v2895_v59 }
 0x2db   : > { %v2744_v51 = vpop.permute.xlu0 %2743 }
 0x2dc   : > { %v2750_v56 = vsel %vm1276_vm6, %v2744_v51, %v2746_v52  ;;  %v2903_v4 = vpop.permute.xlu1 %2902 }
 0x2de   : > { %5286 = vmatmul.mubr.msk.bf16.vlgmr.msra.gmra.mrb[12].mxu1 %vm1780_vm10, %v5658_v19 }
 0x2df   : > { %2607 = vmatpush1.bf16.msra.mxu1 %v2590_v41  ;;  %2638 = vmatprep.mubr.bf16.mxu1 %v6191_v8  ;;  %v2742_v55 = vpop.permute.xlu0 %2741 }
 0x2e0   : > { %2608 = vmatprep.subr.bf16.mxu1 %v2593_v43  ;;  %v2749_v57 = vsel %vm1276_vm6, %v2742_v55, %v2744_v51  ;;  %v3052_v10 = vpop.permute.xlu1 %3051 }
 0x2e3   : > { %2609 = vmatpush1.bf16.msra.mxu1 %v2592_v21  ;;  %v2897_v60 = vpop.permute.xlu0 %2896 }
 0x2e4   : > { %5289 = vmatprep.subr.bf16.mxu1 %v2583_v63  ;;  %v2905_v62 = vsel %vm1423_vm7, %v2895_v59, %v2897_v60  ;;  %v3050_v14 = vpop.permute.xlu1 %3049 }
 0x2e5   : > { %v3061_v22 = vsel %vm1570_vm8, %v3050_v14, %v3052_v10 }
 0x2e6   : > { %4998 = vmatmul.mubr.msk.bf16.vlgmr.msra.gmra.mrb[4].mxu1 %vm1780_vm10, %v5659_v44 }
 0x2e7   : > { %5290 = vmatpush3.bf16.msra.mxu1 %v2583_v63  ;;  %2648 = vmatprep.mubr.bf16.mxu1 %v6191_v8  ;;  %v2901_v2 = vpop.permute.xlu0 %2900 }
 0x2e8   : > { %5291 = vmatprep.subr.bf16.mxu1 %v2589_v40  ;;  %v2907_v1 = vsel %vm1423_vm7, %v2901_v2, %v2903_v4  ;;  %v3060_v16 = vpop.permute.xlu1 %3059 }
 0x2eb   : > { %5292 = vmatpush3.bf16.msra.mxu1 %v2589_v40  ;;  %v2899_v6 = vpop.permute.xlu0 %2898 }
 0x2ec   : > { %2763 = vmatprep.subr.bf16.mxu1 %v2748_v48  ;;  %v2906_v7 = vsel %vm1423_vm7, %v2899_v6, %v2901_v2  ;;  %v3198_v28 = vpop.permute.xlu1 %3197 }
 0x2ee   : > { %4999 = vmatmul.mubr.msk.bf16.gmra.mrb[8].mxu1 %vm1780_vm10, %v5660_v47 }
 0x2ef   : > { %5293 = vmatprep.mubr.msk.bf16.mxu1 %vm1780_vm10, %v5659_v44  ;;  %v3054_v11 = vpop.permute.xlu0 %3053 }
 0x2f0   : > { %v3062_v13 = vsel %vm1570_vm8, %v3052_v10, %v3054_v11  ;;  %v3208_v42 = vpop.permute.xlu1 %3207 }
 0x2f3   : > { %v3058_v15 = vpop.permute.xlu0 %3057 }
 0x2f4   : > { %v3064_v24 = vsel %vm1570_vm8, %v3058_v15, %v3060_v16 }
 0x2f6   : > { %5294 = vmatmul.mubr.msk.bf16.vlgmr.msra.gmra.mrb[12].mxu1 %vm1780_vm10, %v5660_v47 }
 0x2f7   : > { %2764 = vmatpush1.bf16.msra.mxu1 %v2747_v53  ;;  %2795 = vmatprep.mubr.bf16.mxu1 %v6191_v8  ;;  %v3056_v23 = vpop.permute.xlu0 %3055 }
 0x2f8   : > { %2765 = vmatprep.subr.bf16.mxu1 %v2750_v56  ;;  %v3063_v25 = vsel %vm1570_vm8, %v3056_v23, %v3058_v15 }
 0x2fb   : > { %2766 = vmatpush1.bf16.msra.mxu1 %v2749_v57  ;;  %v3203_v33 = vpop.permute.xlu0 %3202 }
 0x2fc   : > { %5297 = vmatprep.subr.bf16.mxu1 %v2740_v46 }
 0x2fe   : > { %5008 = vmatmul.mubr.msk.bf16.vlgmr.msra.gmra.mrb[4].mxu1 %vm1780_vm10, %v5661_v58 }
 0x2ff   : > { %5298 = vmatpush3.bf16.msra.mxu1 %v2740_v46  ;;  %2805 = vmatprep.mubr.bf16.mxu1 %v6191_v8  ;;  %v3213_v49 = vpop.permute.xlu0 %3212 }
 0x300   : > { %5299 = vmatprep.subr.bf16.mxu1 %v2746_v52 }
 0x303   : > { %5300 = vmatpush3.bf16.msra.mxu1 %v2746_v52 }
 0x304   : > { %2920 = vmatprep.subr.bf16.mxu1 %v2905_v62 }
 0x306   : > { %5009 = vmatmul.mubr.msk.bf16.gmra.mrb[8].mxu1 %vm1780_vm10, %v5662_v61 }
 0x307   : > { %5301 = vmatprep.mubr.msk.bf16.mxu1 %vm1780_vm10, %v5661_v58 }
 0x30e   : > { %5302 = vmatmul.mubr.msk.bf16.vlgmr.msra.gmra.mrb[12].mxu1 %vm1780_vm10, %v5662_v61 }
 0x30f   : > { %2921 = vmatpush1.bf16.msra.mxu1 %v2904_v5  ;;  %2952 = vmatprep.mubr.bf16.mxu1 %v6191_v8 }
 0x310   : > { %2922 = vmatprep.subr.bf16.mxu1 %v2907_v1 }
 0x313   : > { %2923 = vmatpush1.bf16.msra.mxu1 %v2906_v7 }
 0x314   : > { %5305 = vmatprep.subr.bf16.mxu1 %v2897_v60 }
 0x316   : > { %5018 = vmatmul.mubr.msk.bf16.vlgmr.msra.gmra.mrb[4].mxu1 %vm1780_vm10, %v5663_v9 }
 0x317   : > { %5306 = vmatpush3.bf16.msra.mxu1 %v2897_v60  ;;  %2962 = vmatprep.mubr.bf16.mxu1 %v6191_v8 }
 0x318   : > { %5307 = vmatprep.subr.bf16.mxu1 %v2903_v4 }
 0x31b   : > { %5308 = vmatpush3.bf16.msra.mxu1 %v2903_v4 }
 0x31c   : > { %3077 = vmatprep.subr.bf16.mxu1 %v3062_v13 }
 0x31e   : > { %5019 = vmatmul.mubr.msk.bf16.gmra.mrb[8].mxu1 %vm1780_vm10, %v5664_v12 }
 0x31f   : > { %5309 = vmatprep.mubr.msk.bf16.mxu1 %vm1780_vm10, %v5663_v9 }
 0x326   : > { %5310 = vmatmul.mubr.msk.bf16.vlgmr.msra.gmra.mrb[12].mxu1 %vm1780_vm10, %v5664_v12 }
 0x327   : > { %3078 = vmatpush1.bf16.msra.mxu1 %v3061_v22  ;;  %3109 = vmatprep.mubr.bf16.mxu1 %v6191_v8 }
 0x328   : > { %3079 = vmatprep.subr.bf16.mxu1 %v3064_v24 }
 0x32b   : > { %3080 = vmatpush1.bf16.msra.mxu1 %v3063_v25 }
 0x32c   : > { %5313 = vmatprep.subr.bf16.mxu1 %v3054_v11 }
 0x32e   : > { %5028 = vmatmul.mubr.msk.bf16.vlgmr.msra.gmra.mrb[4].mxu1 %vm1780_vm10, %v5665_v26 }
 0x32f   : > { %5314 = vmatpush3.bf16.msra.mxu1 %v3054_v11  ;;  %3119 = vmatprep.mubr.bf16.mxu1 %v6191_v8 }
 0x330   : > { %5315 = vmatprep.subr.bf16.mxu1 %v3060_v16 }
 0x333   : > { %5316 = vmatpush3.bf16.msra.mxu1 %v3060_v16 }
 0x336   : > { %5029 = vmatmul.mubr.msk.bf16.gmra.mrb[8].mxu1 %vm1780_vm10, %v5666_v27 }
 0x337   : > { %5317 = vmatprep.mubr.msk.bf16.mxu1 %vm1780_vm10, %v5665_v26 }
 0x33e   : > { %5318 = vmatmul.mubr.msk.bf16.vlgmr.msra.gmra.mrb[12].mxu1 %vm1780_vm10, %v5666_v27 }
 0x401   : > { %v3111_v30 = vpop.f32.mrb[4].mxu1 }
 0x402   : > { %v3215_v31 = vadd.f32 %v3198_v28, %v3111_v30  ;;  %v3113_v32 = vpop.f32.mrb[5].mxu1 }
 0x403   : > { %v3216_v34 = vadd.f32 %v3198_v28, %v3113_v32  ;;  %v3115_v35 = vpop.f32.mrb[6].mxu1 }
 0x404   : > { %v3227_v36 = vmax.f32 %v3215_v31, 0.0  ;;  %v3218_v37 = vadd.f32 %v3203_v33, %v3115_v35  ;;  %v3117_v38 = vpop.f32.mrb[7].mxu1 }
 0x405   : > { %v3228_v3 = vmax.f32 %v3216_v34, 0.0  ;;  %v3219_v63 = vadd.f32 %v3203_v33, %v3117_v38 }
 0x406   : > { %v6311_v19 = vmul.f32 %v3227_v36, %v6005_v50  ;;  %v3230_v17 = vmax.f32 %v3218_v37, 0.0 }
 0x407   : > { %v6321_v39 = vmul.f32 %v3228_v3, %v6007_v54  ;;  %v3231_v20 = vmax.f32 %v3219_v63, 0.0  ;;  %v3595_v3 = vpop.permute.xlu1 %3594 }
 0x408   : > { %v6325_v40 = vpack.c.bf16 %v6311_v19, %v6311_v19  ;;  %v6328_v41 = vmul.f32 %v3230_v17, %v6005_v50 }
 0x409   : > { %v6331_v43 = vmul.f32 %v3231_v20, %v6007_v54  ;;  %v3121_v21 = vpop.f32.mrb[8].mxu1  ;;  %v5089_v44 = vpack.c.bf16 %v6321_v39, %v6311_v19 }
 0x40a   : > { %v6337_v45 = vpack.c.bf16 %v6328_v41, %v6311_v19  ;;  %v6341_v46 = vpack.c.bf16 %v6328_v41, %v6328_v41  ;;  %v3221_v47 = vadd.f32 %v3208_v42, %v3121_v21  ;;  %v3123_v48 = vpop.f32.mrb[9].mxu1  ;;  %3268 = vst.msk [vmem:[%s6318_s25] sm:$0xf] %vm3267_vm11, %v6325_v40  ;;  %v4585_v21 = vld [vmem:[%s7081_s6] sm:$0x7] }
 0x40b   : > { %v6348_v51 = vpack.c.bf16 %v6331_v43, %v6321_v39  ;;  %v3222_v52 = vadd.f32 %v3208_v42, %v3123_v48  ;;  %v3125_v53 = vpop.f32.mrb[10].mxu1  ;;  %v5090_v55 = vpack.c.bf16 %v6331_v43, %v6328_v41 }
 0x40c   : > { %v3233_v56 = vmax.f32 %v3221_v47, 0.0  ;;  %v3224_v57 = vadd.f32 %v3213_v49, %v3125_v53  ;;  %v3127_v58 = vpop.f32.mrb[11].mxu1  ;;  %3596 = vrot.lane.b32.xlu1 %v6337_v45, %s5684_s17  ;;  %3269 = vst.msk [vmem:[%s6318_s25 + $0x8] sm:$0xf] %vm3267_vm11, %v6341_v46 }
 0x40d   : > { %v3234_v59 = vmax.f32 %v3222_v52, 0.0  ;;  %v3225_v60 = vadd.f32 %v3213_v49, %v3127_v58  ;;  %3598 = vrot.lane.b32.xlu0 %v6348_v51, %s5684_s17 }
 0x40e   : > { %v6360_v61 = vmul.f32 %v3233_v56, %v6005_v50  ;;  %v3236_v62 = vmax.f32 %v3224_v57, 0.0  ;;  %v5052_v56 = vld [vmem:[%s7080_s5 + $0x2] sm:$0x3]  ;;  %v5693_v57 = vmov 0.0  }
 0x40f   : > { %v6363_v0 = vmul.f32 %v3234_v59, %v6007_v54  ;;  %v3237_v2 = vmax.f32 %v3225_v60, 0.0 }
 0x410   : > { %v6367_v4 = vpack.c.bf16 %v6360_v61, %v6360_v61  ;;  %v6370_v5 = vmul.f32 %v3236_v62, %v6005_v50 }
 0x411   : > { %v6373_v6 = vmul.f32 %v3237_v2, %v6007_v54  ;;  %v5319_v1 = vpop.f32.mrb[12].mxu1  ;;  %v5091_v7 = vpack.c.bf16 %v6363_v0, %v6360_v61 }
 0x412   : > { %v6379_v9 = vpack.c.bf16 %v6370_v5, %v6360_v61  ;;  %v6383_v10 = vpack.c.bf16 %v6370_v5, %v6370_v5  ;;  %v3223_v11 = vadd.f32 %v5319_v1, %v3208_v42  ;;  %v3164_v12 = vpop.f32.mrb[13].mxu1  ;;  %3270 = vst.msk [vmem:[%s6318_s25 + $0x10] sm:$0xf] %vm3267_vm11, %v6367_v4 }
 0x413   : > { %v6390_v50 = vpack.c.bf16 %v6373_v6, %v6363_v0  ;;  %v3217_v54 = vadd.f32 %v3198_v28, %v3164_v12  ;;  %v5320_v13 = vpop.f32.mrb[14].mxu1  ;;  %v5092_v14 = vpack.c.bf16 %v6373_v6, %v6370_v5  ;;  %v6657_v19 = vpack.c.bf16 %v6373_v6, %v6373_v6 }
 0x414   : > { %v3235_v15 = vmax.f32 %v3223_v11, 0.0  ;;  %v3226_v16 = vadd.f32 %v5320_v13, %v3213_v49  ;;  %v3167_v22 = vpop.f32.mrb[15].mxu1  ;;  %3604 = vrot.lane.b32.xlu0 %v6379_v9, %s5684_s17  ;;  %3271 = vst.msk [vmem:[%s6318_s25 + $0x18] sm:$0xf] %vm3267_vm11, %v6383_v10 }
 0x415   : > { %v3229_v23 = vmax.f32 %v3217_v54, 0.0  ;;  %v3220_v24 = vadd.f32 %v3203_v33, %v3167_v22  ;;  %3606 = vrot.lane.b32.xlu1 %v6390_v50, %s5684_s17 }
 0x416   : > { %v6402_v25 = vmul.f32 %v3235_v15, %v5995_v29  ;;  %v3238_v26 = vmax.f32 %v3226_v16, 0.0 }
 0x417   : > { %v6405_v27 = vmul.f32 %v3229_v23, %v5995_v29  ;;  %v3232_v28 = vmax.f32 %v3220_v24, 0.0 }
 0x418   : > { %v6408_v30 = vmul.f32 %v3238_v26, %v5995_v29  ;;  %3602 = vrot.lane.b32.xlu0 %v6191_v8, %s5684_s17  ;;  %v5099_v31 = vpack.c.bf16 %v6402_v25, %v6363_v0  ;;  %v3575_v26 = vld [vmem:[%s7080_s5] sm:$0x3] }
 0x419   : > { %v6415_v32 = vmul.f32 %v3232_v28, %v5995_v29  ;;  %v5097_v33 = vpack.c.bf16 %v6405_v27, %v6321_v39 }
 0x41a   : > { %v3513_v34 = vpack.c.bf16 %v6408_v30, %v6402_v25  ;;  %v5100_v35 = vpack.c.bf16 %v6408_v30, %v6373_v6 }
 0x41b   : > { %v3512_v36 = vpack.c.bf16 %v6415_v32, %v6405_v27  ;;  %v5098_v37 = vpack.c.bf16 %v6415_v32, %v6331_v43  ;;  %v5102_v6 = vpack.c.bf16 %v6415_v32, %v6415_v32 }
 0x41c   : > { %3574 = vst.msk [vmem:[#allocation3 + $0x38] sm:$0xff] %vm1780_vm10, %v3513_v34 }
 0x41d   : > { %3571 = vst.msk [vmem:[#allocation3 + $0x18] sm:$0xff] %vm1780_vm10, %v3512_v36 }
 0x423   : > { %v6429_v29 = vld [vmem:[#allocation3 + $0x38] sm:$0xff] }
 0x424   : > { %3608 = vrot.lane.b32.xlu0 %v6429_v29, %s5684_s17  ;;  %v6433_v38 = vld [vmem:[#allocation3 + $0x18] sm:$0xff] }
 0x425   : > { %3600 = vrot.lane.b32.xlu1 %v6433_v38, %s5684_s17  ;;  %s5702_s17 = smov 108  }
 0x428   : > { %3710 = vrot.lane.b32.xlu0 %v6348_v51, %s5685_s18 }
 0x429   : > { %3708 = vrot.lane.b32.xlu1 %v6337_v45, %s5685_s18 }
 0x42c   : > { %3716 = vrot.lane.b32.xlu0 %v6379_v9, %s5685_s18 }
 0x42d   : > { %3706 = vrot.lane.b32.xlu1 %v6191_v8, %s5685_s18 }
 0x430   : > { %3714 = vrot.lane.b32.xlu0 %v6191_v8, %s5685_s18 }
 0x431   : > { %3718 = vrot.lane.b32.xlu1 %v6390_v50, %s5685_s18 }
 0x434   : > { %3720 = vrot.lane.b32.xlu0 %v6429_v29, %s5685_s18 }
 0x435   : > { %3712 = vrot.lane.b32.xlu1 %v6433_v38, %s5685_s18  ;;  %s5692_s18 = smov 126  }
 0x438   : > { %3824 = vrot.lane.b32.xlu0 %v6348_v51, %s5686_s19 }
 0x439   : > { %3822 = vrot.lane.b32.xlu1 %v6337_v45, %s5686_s19 }
 0x43c   : > { %3830 = vrot.lane.b32.xlu0 %v6379_v9, %s5686_s19 }
 0x43d   : > { %3820 = vrot.lane.b32.xlu1 %v6191_v8, %s5686_s19 }
 0x440   : > { %3828 = vrot.lane.b32.xlu0 %v6191_v8, %s5686_s19 }
 0x441   : > { %3832 = vrot.lane.b32.xlu1 %v6390_v50, %s5686_s19 }
 0x444   : > { %3834 = vrot.lane.b32.xlu0 %v6429_v29, %s5686_s19 }
 0x445   : > { %3826 = vrot.lane.b32.xlu1 %v6433_v38, %s5686_s19 }
 0x448   : > { %3941 = vrot.lane.b32.xlu0 %v6348_v51, %s5687_s20 }
 0x449   : > { %3939 = vrot.lane.b32.xlu1 %v6337_v45, %s5687_s20 }
 0x44c   : > { %3947 = vrot.lane.b32.xlu0 %v6379_v9, %s5687_s20 }
 0x44d   : > { %3937 = vrot.lane.b32.xlu1 %v6191_v8, %s5687_s20 }
 0x450   : > { %3945 = vrot.lane.b32.xlu0 %v6191_v8, %s5687_s20 }
 0x451   : > { %3949 = vrot.lane.b32.xlu1 %v6390_v50, %s5687_s20 }
 0x454   : > { %3951 = vrot.lane.b32.xlu0 %v6429_v29, %s5687_s20 }
 0x455   : > { %3943 = vrot.lane.b32.xlu1 %v6433_v38, %s5687_s20 }
 0x458   : > { %4147 = vrot.lane.b32.xlu0 %v6433_v38, %s5688_s21 }
 0x459   : > { %4145 = vrot.lane.b32.xlu1 %v6348_v51, %s5688_s21 }
 0x45c   : > { %4151 = vrot.lane.b32.xlu0 %v6390_v50, %s5688_s21 }
 0x45d   : > { %4143 = vrot.lane.b32.xlu1 %v6337_v45, %s5688_s21 }
 0x460   : > { %4149 = vrot.lane.b32.xlu0 %v6379_v9, %s5688_s21 }
 0x461   : > { %4153 = vrot.lane.b32.xlu1 %v6429_v29, %s5688_s21  ;;  %s5694_s21 = smov 124  }
 0x464   : > { %4258 = vrot.lane.b32.xlu0 %v6433_v38, %s5689_s22 }
 0x465   : > { %4256 = vrot.lane.b32.xlu1 %v6348_v51, %s5689_s22 }
 0x468   : > { %4262 = vrot.lane.b32.xlu0 %v6390_v50, %s5689_s22 }
 0x469   : > { %4254 = vrot.lane.b32.xlu1 %v6337_v45, %s5689_s22 }
 0x46c   : > { %4260 = vrot.lane.b32.xlu0 %v6379_v9, %s5689_s22 }
 0x46d   : > { %4264 = vrot.lane.b32.xlu1 %v6429_v29, %s5689_s22  ;;  %s5696_s22 = smov 122  }
 0x470   : > { %4369 = vrot.lane.b32.xlu0 %v6433_v38, %s5690_s23 }
 0x471   : > { %4367 = vrot.lane.b32.xlu1 %v6348_v51, %s5690_s23 }
 0x474   : > { %4373 = vrot.lane.b32.xlu0 %v6390_v50, %s5690_s23 }
 0x475   : > { %4365 = vrot.lane.b32.xlu1 %v6337_v45, %s5690_s23 }
 0x478   : > { %4371 = vrot.lane.b32.xlu0 %v6379_v9, %s5690_s23 }
 0x479   : > { %4375 = vrot.lane.b32.xlu1 %v6429_v29, %s5690_s23 }
 0x47c   : > { %4480 = vrot.lane.b32.xlu0 %v6433_v38, %s5691_s24 }
 0x47d   : > { %4478 = vrot.lane.b32.xlu1 %v6348_v51, %s5691_s24 }
 0x47e   : > { %v3597_v63 = vpop.permute.xlu1 %3596 }
 0x47f   : > { %v3599_v17 = vpop.permute.xlu0 %3598  ;;  %v3610_v42 = vsel %vm404_vm1, %v3595_v3, %v3597_v63 }
 0x480   : > { %4484 = vrot.lane.b32.xlu0 %v6390_v50, %s5691_s24  ;;  %v3611_v20 = vsel %vm404_vm1, %v3597_v63, %v3599_v17 }
 0x481   : > { %4476 = vrot.lane.b32.xlu1 %v6337_v45, %s5691_s24  ;;  %3625 = vmatprep.subr.bf16.mxu0 %v3611_v20 }
 0x482   : > { %3626 = vmatpush1.bf16.msra.mxu0 %v3610_v42 }
 0x484   : > { %4482 = vrot.lane.b32.xlu0 %v6379_v9, %s5691_s24 }
 0x485   : > { %4486 = vrot.lane.b32.xlu1 %v6429_v29, %s5691_s24  ;;  %s5697_s24 = smov 120  }
 0x486   : > { %v3605_v47 = vpop.permute.xlu0 %3604 }
 0x487   : > { %v3607_v48 = vpop.permute.xlu1 %3606 }
 0x488   : > { %3272 = vrot.lane.b32.xlu0 %v6325_v40, %s5692_s18  ;;  %v3614_v49 = vsel %vm404_vm1, %v3605_v47, %v3607_v48 }
 0x489   : > { %4588 = vperm.xlu1 %5620, %v4585_v21   ;;  %3627 = vmatprep.subr.bf16.mxu0 %v3614_v49 }
 0x48a   : > { %v3603_v52 = vpop.permute.xlu0 %3602 }
 0x48b   : > { %v3613_v53 = vsel %vm404_vm1, %v3603_v52, %v3605_v47 }
 0x48c   : > { %3276 = vrot.lane.b32.xlu0 %v6367_v4, %s5692_s18  ;;  %3628 = vmatpush1.bf16.msra.mxu0 %v3613_v53  ;;  %v5057_v53 = vld [vmem:[%s7080_s5 + $0x4] sm:$0x3] }
 0x48d   : > { %3274 = vrot.lane.b32.xlu1 %v6341_v46, %s5692_s18  ;;  %5321 = vmatprep.subr.bf16.mxu0 %v5693_v57 }
 0x48f   : > { %5053 = vmatmul.mubr.msk.bf16.vlgmr.msra.gmra.mrb[8].mxu0 %vm1780_vm10, %v5052_v56 }
 0x490   : > { %3289 = vrot.lane.b32.xlu0 %v6325_v40, %s5694_s21  ;;  %5325 = vmatprep.mubr.msk.bf16.mxu0 %vm5695_vm12, %v5693_v57 }
 0x491   : > { %3278 = vrot.lane.b32.xlu1 %v6383_v10, %s5692_s18 }
 0x494   : > { %3293 = vrot.lane.b32.xlu0 %v6367_v4, %s5694_s21 }
 0x495   : > { %3291 = vrot.lane.b32.xlu1 %v6341_v46, %s5694_s21 }
 0x496   : > { %v3609_v58 = vpop.permute.xlu0 %3608 }
 0x497   : > { %v3601_v59 = vpop.permute.xlu1 %3600  ;;  %v3615_v1 = vsel %vm404_vm1, %v3607_v48, %v3609_v58 }
 0x498   : > { %v3612_v60 = vsel %vm404_vm1, %v3599_v17, %v3601_v59  ;;  %3306 = vrot.lane.b32.xlu0 %v6325_v40, %s5696_s22  ;;  %vm3352_vm1 = vcmask 781952  }
 0x499   : > { %3295 = vrot.lane.b32.xlu1 %v6383_v10, %s5694_s21  ;;  %5322 = vmatpush3.bf16.msra.mxu0 %v3612_v60 }
 0x49a   : > { %v3711_v62 = vpop.permute.xlu0 %3710  ;;  %5323 = vmatprep.subr.bf16.mxu0 %v5693_v57 }
 0x49b   : > { %v3709_v2 = vpop.permute.xlu1 %3708 }
 0x49c   : > { %3310 = vrot.lane.b32.xlu0 %v6367_v4, %s5696_s22  ;;  %v3723_v11 = vsel %vm538_vm2, %v3709_v2, %v3711_v62 }
 0x49d   : > { %3308 = vrot.lane.b32.xlu1 %v6341_v46, %s5696_s22  ;;  %5324 = vmatpush3.bf16.msra.mxu0 %v3615_v1  ;;  %v5060_v1 = vld [vmem:[%s7080_s5 + $0x6] sm:$0x3] }
 0x49e   : > { %v3717_v12 = vpop.permute.xlu0 %3716  ;;  %3737 = vmatprep.subr.bf16.mxu0 %v3723_v11  ;;  %v6675_v11 = vpack.c.bf16 %v6363_v0, %v6363_v0  ;;  %v5101_v0 = vpack.c.bf16 %v6405_v27, %v6405_v27 }
 0x49f   : > { %v3707_v54 = vpop.permute.xlu1 %3706 }
 0x4a0   : > { %v3722_v13 = vsel %vm538_vm2, %v3707_v54, %v3709_v2  ;;  %3323 = vrot.lane.b32.xlu0 %v6325_v40, %s5697_s24  ;;  %5326 = vmatmul.mubr.msk.bf16.vlgmr.msra.gmra.mrb[12].mxu0 %vm1780_vm10, %v5052_v56 }
 0x4a1   : > { %3312 = vrot.lane.b32.xlu1 %v6383_v10, %s5696_s22  ;;  %3738 = vmatpush1.bf16.msra.mxu0 %v3722_v13 }
 0x4a2   : > { %v3715_v15 = vpop.permute.xlu0 %3714  ;;  %3769 = vmatprep.mubr.bf16.mxu0 %v6191_v8 }
 0x4a3   : > { %v3719_v16 = vpop.permute.xlu1 %3718  ;;  %v3725_v23 = vsel %vm538_vm2, %v3715_v15, %v3717_v12 }
 0x4a4   : > { %3329 = vrot.lane.b32.xlu0 %v6383_v10, %s5697_s24  ;;  %v3726_v22 = vsel %vm538_vm2, %v3717_v12, %v3719_v16 }
 0x4a5   : > { %3325 = vrot.lane.b32.xlu1 %v6341_v46, %s5697_s24  ;;  %3739 = vmatprep.subr.bf16.mxu0 %v3726_v22 }
 0x4a6   : > { %v3721_v24 = vpop.permute.xlu0 %3720  ;;  %3740 = vmatpush1.bf16.msra.mxu0 %v3725_v23 }
 0x4a7   : > { %v3713_v28 = vpop.permute.xlu1 %3712  ;;  %5329 = vmatprep.subr.bf16.mxu0 %v5693_v57  ;;  %v3727_v63 = vsel %vm538_vm2, %v3719_v16, %v3721_v24 }
 0x4a8   : > { %v3724_v34 = vsel %vm538_vm2, %v3711_v62, %v3713_v28  ;;  %3342 = vrot.lane.b32.xlu0 %v6341_v46, %s5698_s28  ;;  %v5063_v28 = vld [vmem:[%s7080_s5 + $0x8] sm:$0x3]  ;;  %vm3369_vm2 = vcmask 913152  }
 0x4a9   : > { %3327 = vrot.lane.b32.xlu1 %v6367_v4, %s5697_s24  ;;  %5055 = vmatmul.mubr.msk.bf16.vlgmr.msra.gmra.mrb[16].mxu0 %vm1780_vm10, %v3575_v26 }
 0x4aa   : > { %v3825_v36 = vpop.permute.xlu0 %3824  ;;  %5330 = vmatpush3.bf16.msra.mxu0 %v3724_v34  ;;  %5333 = vmatprep.mubr.msk.bf16.mxu0 %vm5695_vm12, %v5693_v57 }
 0x4ab   : > { %v3823_v3 = vpop.permute.xlu1 %3822  ;;  %5331 = vmatprep.subr.bf16.mxu0 %v5693_v57 }
 0x4ac   : > { %3346 = vrot.lane.b32.xlu0 %v6383_v10, %s5698_s28  ;;  %v3837_v20 = vsel %vm676_vm3, %v3823_v3, %v3825_v36 }
 0x4ad   : > { %3340 = vrot.lane.b32.xlu1 %v6325_v40, %s5698_s28 }
 0x4ae   : > { %v3831_v17 = vpop.permute.xlu0 %3830  ;;  %5332 = vmatpush3.bf16.msra.mxu0 %v3727_v63 }
 0x4af   : > { %3851 = vmatprep.subr.bf16.mxu0 %v3837_v20  ;;  %v3821_v42 = vpop.permute.xlu1 %3820 }
 0x4b0   : > { %v3836_v21 = vsel %vm676_vm3, %v3821_v42, %v3823_v3  ;;  %3359 = vrot.lane.b32.xlu0 %v6341_v46, %s5699_s29 }
 0x4b1   : > { %3344 = vrot.lane.b32.xlu1 %v6367_v4, %s5698_s28  ;;  %5334 = vmatmul.mubr.msk.bf16.vlgmr.msra.gmra.mrb[20].mxu0 %vm1780_vm10, %v3575_v26 }
 0x4b2   : > { %v3829_v47 = vpop.permute.xlu0 %3828  ;;  %3852 = vmatpush1.bf16.msra.mxu0 %v3836_v21  ;;  %3883 = vmatprep.mubr.bf16.mxu0 %v6191_v8  ;;  %v5066_v21 = vld [vmem:[%s7080_s5 + $0xa] sm:$0x3] }
 0x4b3   : > { %v3833_v48 = vpop.permute.xlu1 %3832  ;;  %v3839_v52 = vsel %vm676_vm3, %v3829_v47, %v3831_v17 }
 0x4b4   : > { %3363 = vrot.lane.b32.xlu0 %v6383_v10, %s5699_s29  ;;  %v3840_v49 = vsel %vm676_vm3, %v3831_v17, %v3833_v48 }
 0x4b5   : > { %3357 = vrot.lane.b32.xlu1 %v6325_v40, %s5699_s29  ;;  %3853 = vmatprep.subr.bf16.mxu0 %v3840_v49 }
 0x4b6   : > { %v3835_v46 = vpop.permute.xlu0 %3834  ;;  %3854 = vmatpush1.bf16.msra.mxu0 %v3839_v52 }
 0x4b7   : > { %v3827_v56 = vpop.permute.xlu1 %3826  ;;  %5337 = vmatprep.subr.bf16.mxu0 %v5693_v57  ;;  %v3841_v41 = vsel %vm676_vm3, %v3833_v48, %v3835_v46 }
 0x4b8   : > { %v3838_v58 = vsel %vm676_vm3, %v3825_v36, %v3827_v56  ;;  %3388 = vrot.lane.b32.xlu0 %v5090_v55, %s5700_s14  ;;  %v6644_v55 = vpack.c.bf16 %v6331_v43, %v6331_v43  ;;  %vm3398_vm3 = vcmask 932864  }
 0x4b9   : > { %3361 = vrot.lane.b32.xlu1 %v6367_v4, %s5699_s29  ;;  %5058 = vmatmul.mubr.msk.bf16.vlgmr.msra.gmra.mrb[24].mxu0 %vm1780_vm10, %v5057_v53 }
 0x4ba   : > { %v3942_v40 = vpop.permute.xlu0 %3941  ;;  %5338 = vmatpush3.bf16.msra.mxu0 %v3838_v58  ;;  %5341 = vmatprep.mubr.msk.bf16.mxu0 %vm5695_vm12, %v5693_v57  ;;  %v5674_v58 = vld [vmem:[#allocation2] sm:$0xff] }
 0x4bb   : > { %v3940_v10 = vpop.permute.xlu1 %3939  ;;  %5339 = vmatprep.subr.bf16.mxu0 %v5693_v57 }
 0x4bc   : > { %3392 = vrot.lane.b32.xlu0 %v5092_v14, %s5700_s14  ;;  %v3954_v59 = vsel %vm826_vm4, %v3940_v10, %v3942_v40  ;;  %v6662_v14 = vpack.c.bf16 %v6321_v39, %v6321_v39 }
 0x4bd   : > { %3386 = vrot.lane.b32.xlu1 %v5089_v44, %s5700_s14 }
 0x4be   : > { %v3948_v4 = vpop.permute.xlu0 %3947  ;;  %5340 = vmatpush3.bf16.msra.mxu0 %v3841_v41  ;;  %v5069_v41 = vld [vmem:[%s7080_s5 + $0xc] sm:$0x3] }
 0x4bf   : > { %3968 = vmatprep.subr.bf16.mxu0 %v3954_v59  ;;  %v3938_v60 = vpop.permute.xlu1 %3937 }
 0x4c0   : > { %v3953_v5 = vsel %vm826_vm4, %v3938_v60, %v3940_v10  ;;  %3418 = vrot.lane.b32.xlu0 %v6644_v55, %s5701_s15 }
 0x4c1   : > { %3390 = vrot.lane.b32.xlu1 %v5091_v7, %s5700_s14  ;;  %5342 = vmatmul.mubr.msk.bf16.vlgmr.msra.gmra.mrb[28].mxu0 %vm1780_vm10, %v5057_v53 }
 0x4c2   : > { %v3946_v44 = vpop.permute.xlu0 %3945  ;;  %3969 = vmatpush1.bf16.msra.mxu0 %v3953_v5  ;;  %4000 = vmatprep.mubr.bf16.mxu0 %v6191_v8 }
 0x4c3   : > { %v3950_v62 = vpop.permute.xlu1 %3949  ;;  %v3956_v7 = vsel %vm826_vm4, %v3946_v44, %v3948_v4 }
 0x4c4   : > { %3422 = vrot.lane.b32.xlu0 %v6657_v19, %s5701_s15  ;;  %v3957_v61 = vsel %vm826_vm4, %v3948_v4, %v3950_v62 }
 0x4c5   : > { %3416 = vrot.lane.b32.xlu1 %v6662_v14, %s5701_s15  ;;  %3970 = vmatprep.subr.bf16.mxu0 %v3957_v61 }
 0x4c6   : > { %v3952_v2 = vpop.permute.xlu0 %3951  ;;  %3971 = vmatpush1.bf16.msra.mxu0 %v3956_v7 }
 0x4c7   : > { %v3944_v12 = vpop.permute.xlu1 %3943  ;;  %5345 = vmatprep.subr.bf16.mxu0 %v5693_v57  ;;  %v3958_v16 = vsel %vm826_vm4, %v3950_v62, %v3952_v2 }
 0x4c8   : > { %v3955_v54 = vsel %vm826_vm4, %v3942_v40, %v3944_v12  ;;  %3434 = vrot.lane.b32.xlu0 %v6644_v55, %s5690_s23  ;;  %vm3407_vm4 = vcmask 1044352  }
 0x4c9   : > { %3420 = vrot.lane.b32.xlu1 %v6675_v11, %s5701_s15  ;;  %5061 = vmatmul.mubr.msk.bf16.vlgmr.msra.gmra.mrb[32].mxu0 %vm1780_vm10, %v5060_v1 }
 0x4ca   : > { %v4148_v13 = vpop.permute.xlu0 %4147  ;;  %5346 = vmatpush3.bf16.msra.mxu0 %v3955_v54  ;;  %5349 = vmatprep.mubr.msk.bf16.mxu0 %vm5695_vm12, %v5693_v57  ;;  %v5072_v54 = vld [vmem:[%s7080_s5 + $0xe] sm:$0x3] }
 0x4cb   : > { %v4146_v15 = vpop.permute.xlu1 %4145  ;;  %5347 = vmatprep.subr.bf16.mxu0 %v5693_v57 }
 0x4cc   : > { %3438 = vrot.lane.b32.xlu0 %v6657_v19, %s5690_s23  ;;  %v4156_v36 = vsel %vm1129_vm5, %v4146_v15, %v4148_v13 }
 0x4cd   : > { %3432 = vrot.lane.b32.xlu1 %v6662_v14, %s5690_s23 }
 0x4ce   : > { %v4152_v22 = vpop.permute.xlu0 %4151  ;;  %5348 = vmatpush3.bf16.msra.mxu0 %v3958_v16 }
 0x4cf   : > { %4057 = vmatprep.subr.bf16.mxu0 %v6348_v51  ;;  %v4144_v23 = vpop.permute.xlu1 %4143 }
 0x4d0   : > { %3450 = vrot.lane.b32.xlu0 %v6644_v55, %s5702_s17  ;;  %v4155_v63 = vsel %vm1129_vm5, %v4144_v23, %v4146_v15 }
 0x4d1   : > { %3436 = vrot.lane.b32.xlu1 %v6675_v11, %s5690_s23  ;;  %5350 = vmatmul.mubr.msk.bf16.vlgmr.msra.gmra.mrb[36].mxu0 %vm1780_vm10, %v5060_v1 }
 0x4d2   : > { %v4150_v24 = vpop.permute.xlu0 %4149  ;;  %4058 = vmatpush1.bf16.msra.mxu0 %v6337_v45  ;;  %4089 = vmatprep.mubr.bf16.mxu0 %v6191_v8 }
 0x4d3   : > { %4059 = vmatprep.subr.bf16.mxu0 %v6390_v50  ;;  %v4154_v26 = vpop.permute.xlu1 %4153  ;;  %v4157_v20 = vsel %vm1129_vm5, %v4150_v24, %v4152_v22 }
 0x4d5   : > { %3448 = vrot.lane.b32.xlu1 %v6662_v14, %s5702_s17 }
 0x4d6   : > { %v4259_v51 = vpop.permute.xlu0 %4258  ;;  %4060 = vmatpush1.bf16.msra.mxu0 %v6379_v9 }
 0x4d7   : > { %v4257_v34 = vpop.permute.xlu1 %4256  ;;  %5353 = vmatprep.subr.bf16.mxu0 %v5693_v57 }
 0x4d8   : > { %v4267_v49 = vsel %vm1276_vm6, %v4257_v34, %v4259_v51 }
 0x4d9   : > { %3452 = vrot.lane.b32.xlu1 %v6675_v11, %s5702_s17  ;;  %5064 = vmatmul.mubr.msk.bf16.vlgmr.msra.gmra.mrb[40].mxu0 %vm1780_vm10, %v5063_v28 }
 0x4da   : > { %v4263_v45 = vpop.permute.xlu0 %4262  ;;  %5354 = vmatpush3.bf16.msra.mxu0 %v6433_v38  ;;  %5357 = vmatprep.mubr.msk.bf16.mxu0 %vm5695_vm12, %v5693_v57  ;;  %v4158_v38 = vsel %vm1129_vm5, %v4152_v22, %v4154_v26  ;;  %vm4598_vm5 = vcmask 123904  }
 0x4db   : > { %v4255_v50 = vpop.permute.xlu1 %4254  ;;  %5355 = vmatprep.subr.bf16.mxu0 %v5693_v57 }
 0x4dc   : > { %v4266_v52 = vsel %vm1276_vm6, %v4255_v50, %v4257_v34 }
 0x4de   : > { %v4261_v9 = vpop.permute.xlu0 %4260  ;;  %5356 = vmatpush3.bf16.msra.mxu0 %v6429_v29 }
 0x4df   : > { %4168 = vmatprep.subr.bf16.mxu0 %v4156_v36  ;;  %v4265_v3 = vpop.permute.xlu1 %4264  ;;  %v4268_v40 = vsel %vm1276_vm6, %v4261_v9, %v4263_v45  ;;  %v5075_v9 = vld [vmem:[%s7080_s5 + $0x10] sm:$0x3] }
 0x4e0   : > { %v4269_v56 = vsel %vm1276_vm6, %v4263_v45, %v4265_v3  ;;  %vm4599_vm6 = vsmask.f32 1280 }
 0x4e1   : > { %5358 = vmatmul.mubr.msk.bf16.vlgmr.msra.gmra.mrb[44].mxu0 %vm1780_vm10, %v5063_v28 }
 0x4e2   : > { %v6719_v17 = vpop.permute.xlu0 %4369  ;;  %4169 = vmatpush1.bf16.msra.mxu0 %v4155_v63  ;;  %4200 = vmatprep.mubr.bf16.mxu0 %v6191_v8 }
 0x4e3   : > { %4170 = vmatprep.subr.bf16.mxu0 %v4158_v38  ;;  %v4368_v42 = vpop.permute.xlu1 %4367 }
 0x4e4   : > { %v4378_v44 = vsel %vm1423_vm7, %v4368_v42, %v6719_v17 }
 0x4e6   : > { %v4374_v29 = vpop.permute.xlu0 %4373  ;;  %4171 = vmatpush1.bf16.msra.mxu0 %v4157_v20 }
 0x4e7   : > { %5361 = vmatprep.subr.bf16.mxu0 %v5693_v57  ;;  %v4366_v8 = vpop.permute.xlu1 %4365 }
 0x4e8   : > { %v4377_v62 = vsel %vm1423_vm7, %v4366_v8, %v4368_v42 }
 0x4e9   : > { %5067 = vmatmul.mubr.msk.bf16.vlgmr.msra.gmra.mrb[48].mxu0 %vm1780_vm10, %v5066_v21 }
 0x4ea   : > { %v4372_v47 = vpop.permute.xlu0 %4371  ;;  %5362 = vmatpush3.bf16.msra.mxu0 %v4148_v13  ;;  %5365 = vmatprep.mubr.msk.bf16.mxu0 %vm5695_vm12, %v5693_v57 }
 0x4eb   : > { %5363 = vmatprep.subr.bf16.mxu0 %v5693_v57  ;;  %v4376_v46 = vpop.permute.xlu1 %4375  ;;  %v4379_v1 = vsel %vm1423_vm7, %v4372_v47, %v4374_v29 }
 0x4ec   : > { %v4380_v7 = vsel %vm1423_vm7, %v4374_v29, %v4376_v46  ;;  %vm6877_vm7 = vmand %vm4598_vm5, %vm4599_vm6 }
 0x4ee   : > { %v6732_v48 = vpop.permute.xlu0 %4480  ;;  %5364 = vmatpush3.bf16.msra.mxu0 %v4154_v26 }
 0x4ef   : > { %4279 = vmatprep.subr.bf16.mxu0 %v4267_v49  ;;  %v4479_v4 = vpop.permute.xlu1 %4478 }
 0x4f0   : > { %v4489_v23 = vsel %vm1570_vm8, %v4479_v4, %v6732_v48 }
 0x4f1   : > { %5366 = vmatmul.mubr.msk.bf16.vlgmr.msra.gmra.mrb[52].mxu0 %vm1780_vm10, %v5066_v21 }
 0x4f2   : > { %v6737_v53 = vpop.permute.xlu0 %4484  ;;  %4280 = vmatpush1.bf16.msra.mxu0 %v4266_v52  ;;  %4311 = vmatprep.mubr.bf16.mxu0 %v5674_v58 }
 0x4f3   : > { %4281 = vmatprep.subr.bf16.mxu0 %v4269_v56  ;;  %v4477_v60 = vpop.permute.xlu1 %4476 }
 0x4f4   : > { %v4488_v26 = vsel %vm1570_vm8, %v4477_v60, %v4479_v4 }
 0x4f6   : > { %v4483_v10 = vpop.permute.xlu0 %4482  ;;  %4282 = vmatpush1.bf16.msra.mxu0 %v4268_v40 }
 0x4f7   : > { %5369 = vmatprep.subr.bf16.mxu0 %v5693_v57  ;;  %v4487_v2 = vpop.permute.xlu1 %4486  ;;  %v4490_v45 = vsel %vm1570_vm8, %v4483_v10, %v6737_v53 }
 0x4f8   : > { %v4491_v28 = vsel %vm1570_vm8, %v6737_v53, %v4487_v2  ;;  %vm4615_vm8 = vcmask 255104  }
 0x4f9   : > { %5070 = vmatmul.mubr.msk.bf16.vlgmr.msra.gmra.mrb[56].mxu0 %vm1780_vm10, %v5069_v41  ;;  %vm6930_vm9 = vmand %vm4615_vm8, %vm4599_vm6 }
 0x4fa   : > { %v3273_v59 = vpop.permute.xlu0 %3272  ;;  %5370 = vmatpush3.bf16.msra.mxu0 %v4259_v51  ;;  %5373 = vmatprep.mubr.msk.bf16.mxu0 %vm5695_vm12, %v5693_v57 }
 0x4fb   : > { %3285 = vst.msk [vmem:[%s6318_s25] sm:$0xf] %vm3284_vm13, %v3273_v59  ;;  %5371 = vmatprep.subr.bf16.mxu0 %v5693_v57 }
 0x4fe   : > { %v3277_v5 = vpop.permute.xlu0 %3276  ;;  %5372 = vmatpush3.bf16.msra.mxu0 %v4265_v3 }
 0x4ff   : > { %3287 = vst.msk [vmem:[%s6318_s25 + $0x10] sm:$0xf] %vm3284_vm13, %v3277_v5  ;;  %4390 = vmatprep.subr.bf16.mxu0 %v4378_v44 }
 0x501   : > { %5374 = vmatmul.mubr.msk.bf16.vlgmr.msra.gmra.mrb[60].mxu0 %vm1780_vm10, %v5069_v41 }
 0x502   : > { %v3290_v61 = vpop.permute.xlu0 %3289  ;;  %4391 = vmatpush1.bf16.msra.mxu0 %v4377_v62  ;;  %4422 = vmatprep.mubr.bf16.mxu0 %v5674_v58 }
 0x503   : > { %3302 = vst.msk [vmem:[%s6318_s25] sm:$0xf] %vm3301_vm14, %v3290_v61  ;;  %4392 = vmatprep.subr.bf16.mxu0 %v4380_v7 }
 0x506   : > { %v3294_v12 = vpop.permute.xlu0 %3293  ;;  %4393 = vmatpush1.bf16.msra.mxu0 %v4379_v1 }
 0x507   : > { %3304 = vst.msk [vmem:[%s6318_s25 + $0x10] sm:$0xf] %vm3301_vm14, %v3294_v12  ;;  %5377 = vmatprep.subr.bf16.mxu0 %v5693_v57 }
 0x508   : > { %v6767_v13 = vpop.permute.xlu1 %4588 }
 0x509   : > { %5073 = vmatmul.mubr.msk.bf16.vlgmr.msra.gmra.mrb[64].mxu0 %vm1780_vm10, %v5072_v54 }
 0x50a   : > { %v3307_v15 = vpop.permute.xlu0 %3306  ;;  %5378 = vmatpush3.bf16.msra.mxu0 %v6719_v17  ;;  %5381 = vmatprep.mubr.msk.bf16.mxu0 %vm5695_vm12, %v5693_v57 }
 0x50b   : > { %3319 = vst.msk [vmem:[%s6318_s25] sm:$0xf] %vm3318_vm15, %v3307_v15  ;;  %5379 = vmatprep.subr.bf16.mxu0 %v5693_v57 }
 0x50c   : > { %v3275_v16 = vpop.permute.xlu1 %3274 }
 0x50d   : > { %3286 = vst.msk [vmem:[%s6318_s25 + $0x8] sm:$0xf] %vm3284_vm13, %v3275_v16 }
 0x50e   : > { %v3311_v22 = vpop.permute.xlu0 %3310  ;;  %5380 = vmatpush3.bf16.msra.mxu0 %v4376_v46 }
 0x50f   : > { %3321 = vst.msk [vmem:[%s6318_s25 + $0x10] sm:$0xf] %vm3318_vm15, %v3311_v22  ;;  %4501 = vmatprep.subr.bf16.mxu0 %v4489_v23 }
 0x510   : > { %v3279_v24 = vpop.permute.xlu1 %3278 }
 0x511   : > { %3288 = vst.msk [vmem:[%s6318_s25 + $0x18] sm:$0xf] %vm3284_vm13, %v3279_v24  ;;  %5382 = vmatmul.mubr.msk.bf16.vlgmr.msra.gmra.mrb[68].mxu0 %vm1780_vm10, %v5072_v54 }
 0x512   : > { %v3324_v51 = vpop.permute.xlu0 %3323  ;;  %4502 = vmatpush1.bf16.msra.mxu0 %v4488_v26  ;;  %4533 = vmatprep.mubr.bf16.mxu0 %v5674_v58 }
 0x513   : > { %3336 = vst.msk [vmem:[%s6318_s25] sm:$0xf] %vm3335_vm0, %v3324_v51  ;;  %4503 = vmatprep.subr.bf16.mxu0 %v4491_v28 }
 0x514   : > { %v3292_v34 = vpop.permute.xlu1 %3291 }
 0x515   : > { %3303 = vst.msk [vmem:[%s6318_s25 + $0x8] sm:$0xf] %vm3301_vm14, %v3292_v34 }
 0x516   : > { %v3330_v50 = vpop.permute.xlu0 %3329  ;;  %4504 = vmatpush1.bf16.msra.mxu0 %v4490_v45 }
 0x517   : > { %5385 = vmatprep.subr.bf16.mxu0 %v5693_v57 }
 0x518   : > { %v3296_v36 = vpop.permute.xlu1 %3295 }
 0x519   : > { %3305 = vst.msk [vmem:[%s6318_s25 + $0x18] sm:$0xf] %vm3301_vm14, %v3296_v36  ;;  %5076 = vmatmul.mubr.msk.bf16.vlgmr.msra.gmra.mrb[72].mxu0 %vm1780_vm10, %v5075_v9 }
 0x51a   : > { %v3343_v3 = vpop.permute.xlu0 %3342  ;;  %5386 = vmatpush3.bf16.msra.mxu0 %v6732_v48  ;;  %5389 = vmatprep.mubr.msk.bf16.mxu0 %vm5695_vm12, %v5693_v57  ;;  %vm4631_vm12 = vcmask 517504  }
 0x51b   : > { %5387 = vmatprep.subr.bf16.mxu0 %v5693_v57 }
 0x51c   : > { %v3309_v63 = vpop.permute.xlu1 %3308 }
 0x51d   : > { %3320 = vst.msk [vmem:[%s6318_s25 + $0x8] sm:$0xf] %vm3318_vm15, %v3309_v63 }
 0x51e   : > { %v3347_v17 = vpop.permute.xlu0 %3346  ;;  %5388 = vmatpush3.bf16.msra.mxu0 %v4487_v2 }
 0x520   : > { %v3313_v38 = vpop.permute.xlu1 %3312 }
 0x521   : > { %3322 = vst.msk [vmem:[%s6318_s25 + $0x18] sm:$0xf] %vm3318_vm15, %v3313_v38  ;;  %5390 = vmatmul.mubr.msk.bf16.vlgmr.msra.gmra.mrb[76].mxu0 %vm1780_vm10, %v5075_v9  ;;  %vm4623_vm10 = vcmask 386304  }
 0x522   : > { %3339 = vst.msk [vmem:[%s6318_s25 + $0x18] sm:$0xf] %vm3335_vm0, %v3330_v50  ;;  %v3360_v20 = vpop.permute.xlu0 %3359 }
 0x523   : > { %3356 = vst.msk [vmem:[%s6318_s25 + $0x18] sm:$0xf] %vm3352_vm1, %v3347_v17 }
 0x524   : > { %v3326_v57 = vpop.permute.xlu1 %3325 }
 0x525   : > { %3337 = vst.msk [vmem:[%s6318_s25 + $0x8] sm:$0xf] %vm3335_vm0, %v3326_v57 }
 0x526   : > { %3354 = vst.msk [vmem:[%s6318_s25 + $0x8] sm:$0xf] %vm3352_vm1, %v3343_v3  ;;  %v3364_v42 = vpop.permute.xlu0 %3363 }
 0x527   : > { %3373 = vst.msk [vmem:[%s6318_s25 + $0x18] sm:$0xf] %vm3369_vm2, %v3364_v42  ;;  %3371 = vst.msk [vmem:[%s6318_s25 + $0x8] sm:$0xf] %vm3369_vm2, %v3360_v20 }
 0x528   : > { %v3328_v29 = vpop.permute.xlu1 %3327 }
 0x529   : > { %3338 = vst.msk [vmem:[%s6318_s25 + $0x10] sm:$0xf] %vm3335_vm0, %v3328_v29 }
 0x52a   : > { %v3389_v21 = vpop.permute.xlu0 %3388 }
 0x52b   : > { %v3395_v47 = vrot.slane %v3389_v21, 4 }
 0x52c   : > { %v3341_v8 = vpop.permute.xlu1 %3340 }
 0x52d   : > { %v3400_v48 = vsel %vm3398_vm3, %v3389_v21, %v3395_v47  ;;  %3353 = vst.msk [vmem:[%s6318_s25] sm:$0xf] %vm3352_vm1, %v3341_v8 }
 0x52e   : > { %3409 = vst.msk [vmem:[%s6318_s25 + $0x8] sm:$0xf] %vm3407_vm4, %v3400_v48  ;;  %v3393_v49 = vpop.permute.xlu0 %3392 }
 0x52f   : > { %v3397_v52 = vrot.slane %v3393_v49, 4 }
 0x530   : > { %v3345_v46 = vpop.permute.xlu1 %3344 }
 0x531   : > { %v3402_v53 = vsel %vm3398_vm3, %v3393_v49, %v3397_v52  ;;  %3355 = vst.msk [vmem:[%s6318_s25 + $0x10] sm:$0xf] %vm3352_vm1, %v3345_v46 }
 0x532   : > { %3411 = vst.msk [vmem:[%s6318_s25 + $0x18] sm:$0xf] %vm3407_vm4, %v3402_v53  ;;  %v3419_v56 = vpop.permute.xlu0 %3418 }
 0x533   : > { %3429 = vst.msk [vmem:[%s6318_s25 + $0xc] sm:$0xf] %vm3267_vm11, %v3419_v56 }
 0x534   : > { %v3358_v58 = vpop.permute.xlu1 %3357 }
 0x535   : > { %3370 = vst.msk [vmem:[%s6318_s25] sm:$0xf] %vm3369_vm2, %v3358_v58 }
 0x536   : > { %v3423_v40 = vpop.permute.xlu0 %3422 }
 0x537   : > { %3431 = vst.msk [vmem:[%s6318_s25 + $0x1c] sm:$0xf] %vm3267_vm11, %v3423_v40 }
 0x538   : > { %v3362_v10 = vpop.permute.xlu1 %3361 }
 0x539   : > { %3372 = vst.msk [vmem:[%s6318_s25 + $0x10] sm:$0xf] %vm3369_vm2, %v3362_v10 }
 0x53a   : > { %v3435_v41 = vpop.permute.xlu0 %3434 }
 0x53b   : > { %3445 = vst.msk [vmem:[%s6318_s25 + $0xc] sm:$0xf] %vm3284_vm13, %v3435_v41 }
 0x53c   : > { %v3387_v4 = vpop.permute.xlu1 %3386 }
 0x53d   : > { %v3394_v59 = vrot.slane %v3387_v4, 4 }
 0x53e   : > { %v3439_v60 = vpop.permute.xlu0 %3438 }
 0x53f   : > { %v3399_v5 = vsel %vm3398_vm3, %v3387_v4, %v3394_v59  ;;  %3447 = vst.msk [vmem:[%s6318_s25 + $0x1c] sm:$0xf] %vm3284_vm13, %v3439_v60 }
 0x540   : > { %3408 = vst.msk [vmem:[%s6318_s25] sm:$0xf] %vm3407_vm4, %v3399_v5  ;;  %v3391_v44 = vpop.permute.xlu1 %3390 }
 0x541   : > { %v3396_v62 = vrot.slane %v3391_v44, 4 }
 0x542   : > { %v3451_v61 = vpop.permute.xlu0 %3450 }
 0x543   : > { %v3401_v7 = vsel %vm3398_vm3, %v3391_v44, %v3396_v62  ;;  %3461 = vst.msk [vmem:[%s6318_s25 + $0xc] sm:$0xf] %vm3301_vm14, %v3451_v61 }
 0x544   : > { %3410 = vst.msk [vmem:[%s6318_s25 + $0x10] sm:$0xf] %vm3407_vm4, %v3401_v7  ;;  %v3417_v2 = vpop.permute.xlu1 %3416 }
 0x545   : > { %3428 = vst.msk [vmem:[%s6318_s25 + $0x4] sm:$0xf] %vm3267_vm11, %v3417_v2 }
 0x548   : > { %v3421_v1 = vpop.permute.xlu1 %3420 }
 0x549   : > { %3430 = vst.msk [vmem:[%s6318_s25 + $0x14] sm:$0xf] %vm3267_vm11, %v3421_v1  ;;  %vm6940_vm11 = vmand %vm4623_vm10, %vm4599_vm6  ;;  %vm3536_vm10 = vcmask 818176  }
 0x54c   : > { %v3433_v12 = vpop.permute.xlu1 %3432 }
 0x54d   : > { %3444 = vst.msk [vmem:[%s6318_s25 + $0x4] sm:$0xf] %vm3284_vm13, %v3433_v12 }
 0x550   : > { %v3437_v54 = vpop.permute.xlu1 %3436 }
 0x551   : > { %3446 = vst.msk [vmem:[%s6318_s25 + $0x14] sm:$0xf] %vm3284_vm13, %v3437_v54  ;;  %vm6954_vm13 = vmand %vm4631_vm12, %vm4599_vm6 }
 0x554   : > { %v3449_v15 = vpop.permute.xlu1 %3448 }
 0x555   : > { %3460 = vst.msk [vmem:[%s6318_s25 + $0x4] sm:$0xf] %vm3301_vm14, %v3449_v15 }
 0x558   : > { %v3453_v16 = vpop.permute.xlu1 %3452 }
 0x559   : > { %3462 = vst.msk [vmem:[%s6318_s25 + $0x14] sm:$0xf] %vm3301_vm14, %v3453_v16 }
 0x562   : > { %v3659_v22 = vpop.f32.mrb[8].mxu0 }
 0x563   : > { %v3661_v23 = vpop.f32.mrb[9].mxu0 }
 0x564   : > { %v3663_v24 = vpop.f32.mrb[10].mxu0 }
 0x565   : > { %v3664_v26 = vpop.f32.mrb[11].mxu0 }
 0x573   : > { %v3700_v51 = vpop.f32.mrb[12].mxu0 }
 0x574   : > { %v5327_v28 = vpop.f32.mrb[13].mxu0 }
 0x575   : > { %v3703_v34 = vpop.f32.mrb[14].mxu0 }
 0x576   : > { %v5328_v45 = vpop.f32.mrb[15].mxu0 }
 0x57c   : > { %v3771_v50 = vpop.f32.mrb[16].mxu0 }
 0x57d   : > { %v3772_v9 = vadd.f32 %v3771_v50, %v3659_v22  ;;  %v3773_v36 = vpop.f32.mrb[17].mxu0 }
 0x57e   : > { %v3774_v3 = vadd.f32 %v3773_v36, %v3661_v23  ;;  %v3775_v63 = vpop.f32.mrb[18].mxu0 }
 0x57f   : > { %v3776_v17 = vpop.f32.mrb[19].mxu0 }
 0x584   : > { %v3812_v38 = vpop.f32.mrb[20].mxu0 }
 0x585   : > { %v3813_v20 = vadd.f32 %v3812_v38, %v3700_v51  ;;  %v5335_v57 = vpop.f32.mrb[21].mxu0 }
 0x586   : > { %v3815_v42 = vpop.f32.mrb[22].mxu0 }
 0x587   : > { %v5336_v29 = vpop.f32.mrb[23].mxu0 }
 0x58c   : > { %v3885_v21 = vpop.f32.mrb[24].mxu0 }
 0x58d   : > { %v3932_v47 = vadd.f32 %v3885_v21, %v3772_v9  ;;  %v3887_v8 = vpop.f32.mrb[25].mxu0 }
 0x58e   : > { %v3933_v48 = vadd.f32 %v3887_v8, %v3774_v3  ;;  %v3889_v49 = vpop.f32.mrb[26].mxu0 }
 0x58f   : > { %v3890_v52 = vpop.f32.mrb[27].mxu0 }
 0x594   : > { %v3926_v46 = vpop.f32.mrb[28].mxu0 }
 0x595   : > { %v3934_v53 = vadd.f32 %v3926_v46, %v3813_v20  ;;  %v5343_v56 = vpop.f32.mrb[29].mxu0 }
 0x596   : > { %v3929_v58 = vpop.f32.mrb[30].mxu0 }
 0x597   : > { %v5344_v40 = vpop.f32.mrb[31].mxu0 }
 0x59c   : > { %v4002_v10 = vpop.f32.mrb[32].mxu0 }
 0x59d   : > { %v4049_v41 = vadd.f32 %v4002_v10, %v3932_v47  ;;  %v4004_v4 = vpop.f32.mrb[33].mxu0 }
 0x59e   : > { %v4050_v59 = vadd.f32 %v4004_v4, %v3933_v48  ;;  %v4006_v60 = vpop.f32.mrb[34].mxu0 }
 0x59f   : > { %v4007_v5 = vpop.f32.mrb[35].mxu0 }
 0x5a4   : > { %v4043_v44 = vpop.f32.mrb[36].mxu0 }
 0x5a5   : > { %v4051_v62 = vadd.f32 %v4043_v44, %v3934_v53  ;;  %v5351_v61 = vpop.f32.mrb[37].mxu0 }
 0x5a6   : > { %v4046_v7 = vpop.f32.mrb[38].mxu0 }
 0x5a7   : > { %v5352_v2 = vpop.f32.mrb[39].mxu0 }
 0x5ac   : > { %v4091_v1 = vpop.f32.mrb[40].mxu0 }
 0x5ad   : > { %v4138_v12 = vadd.f32 %v4091_v1, %v4049_v41  ;;  %v4093_v54 = vpop.f32.mrb[41].mxu0 }
 0x5ae   : > { %v4139_v15 = vadd.f32 %v4093_v54, %v4050_v59  ;;  %v4095_v16 = vpop.f32.mrb[42].mxu0 }
 0x5af   : > { %v4096_v22 = vpop.f32.mrb[43].mxu0 }
 0x5b4   : > { %v4132_v23 = vpop.f32.mrb[44].mxu0 }
 0x5b5   : > { %v4140_v24 = vadd.f32 %v4132_v23, %v4051_v62  ;;  %v5359_v26 = vpop.f32.mrb[45].mxu0  ;;  %v5703_v23 = vmov 1983009808  }
 0x5b6   : > { %v4135_v51 = vpop.f32.mrb[46].mxu0 }
 0x5b7   : > { %v5360_v28 = vpop.f32.mrb[47].mxu0 }
 0x5bc   : > { %v4202_v34 = vpop.f32.mrb[48].mxu0 }
 0x5bd   : > { %v4249_v45 = vadd.f32 %v4202_v34, %v4138_v12  ;;  %v4204_v50 = vpop.f32.mrb[49].mxu0 }
 0x5be   : > { %v4250_v9 = vadd.f32 %v4204_v50, %v4139_v15  ;;  %v4206_v36 = vpop.f32.mrb[50].mxu0 }
 0x5bf   : > { %v4207_v3 = vpop.f32.mrb[51].mxu0 }
 0x5c4   : > { %v4243_v63 = vpop.f32.mrb[52].mxu0 }
 0x5c5   : > { %v4251_v17 = vadd.f32 %v4243_v63, %v4140_v24  ;;  %v5367_v38 = vpop.f32.mrb[53].mxu0  ;;  %v4606_v24 = vunpack.c.l.s4 %v5703_v23 }
 0x5c6   : > { %v4246_v20 = vpop.f32.mrb[54].mxu0 }
 0x5c7   : > { %v5368_v57 = vpop.f32.mrb[55].mxu0  ;;  %v4607_v34 = vunpack.c.0.s8 %v4606_v24 }
 0x5c9   : > { %v4610_v36 = vsub.s32 %v4607_v34, %v5989_v18 }
 0x5cc   : > { %v4313_v42 = vpop.f32.mrb[56].mxu0 }
 0x5cd   : > { %v4360_v29 = vadd.f32 %v4313_v42, %v4249_v45  ;;  %v4315_v21 = vpop.f32.mrb[57].mxu0 }
 0x5ce   : > { %v4361_v47 = vadd.f32 %v4315_v21, %v4250_v9  ;;  %v4317_v8 = vpop.f32.mrb[58].mxu0 }
 0x5cf   : > { %v4318_v48 = vpop.f32.mrb[59].mxu0 }
 0x5d4   : > { %v4354_v49 = vpop.f32.mrb[60].mxu0 }
 0x5d5   : > { %v4362_v52 = vadd.f32 %v4354_v49, %v4251_v17  ;;  %v5375_v46 = vpop.f32.mrb[61].mxu0 }
 0x5d6   : > { %v4357_v53 = vpop.f32.mrb[62].mxu0 }
 0x5d7   : > { %v5376_v56 = vpop.f32.mrb[63].mxu0 }
 0x5dc   : > { %v4424_v58 = vpop.f32.mrb[64].mxu0 }
 0x5dd   : > { %v4471_v40 = vadd.f32 %v4424_v58, %v4360_v29  ;;  %v4426_v10 = vpop.f32.mrb[65].mxu0 }
 0x5de   : > { %v4472_v41 = vadd.f32 %v4426_v10, %v4361_v47  ;;  %v4428_v4 = vpop.f32.mrb[66].mxu0 }
 0x5df   : > { %v4429_v59 = vpop.f32.mrb[67].mxu0 }
 0x5e4   : > { %v4465_v60 = vpop.f32.mrb[68].mxu0 }
 0x5e5   : > { %v4473_v5 = vadd.f32 %v4465_v60, %v4362_v52  ;;  %v5383_v44 = vpop.f32.mrb[69].mxu0 }
 0x5e6   : > { %v4468_v62 = vpop.f32.mrb[70].mxu0 }
 0x5e7   : > { %v5384_v61 = vpop.f32.mrb[71].mxu0 }
 0x5ec   : > { %v4535_v7 = vpop.f32.mrb[72].mxu0 }
 0x5ed   : > { %v4582_v2 = vadd.f32 %v4535_v7, %v4471_v40  ;;  %v4537_v1 = vpop.f32.mrb[73].mxu0 }
 0x5ee   : > { %v4583_v12 = vadd.f32 %v4537_v1, %v4472_v41  ;;  %v4539_v54 = vpop.f32.mrb[74].mxu0 }
 0x5ef   : > { %v4591_v15 = vadd.f32 %v6767_v13, %v4582_v2  ;;  %v4540_v16 = vpop.f32.mrb[75].mxu0 }
 0x5f0   : > { %v4592_v22 = vadd.f32 %v6767_v13, %v4583_v12 }
 0x5f1   : > { %5667 = vtanh.f32 %v4591_v15 }
 0x5f2   : > { %5669 = vtanh.f32 %v4592_v22 }
 0x5f4   : > { %v4576_v26 = vpop.f32.mrb[76].mxu0 }
 0x5f5   : > { %v4584_v51 = vadd.f32 %v4576_v26, %v4473_v5  ;;  %v5391_v28 = vpop.f32.mrb[77].mxu0 }
 0x5f6   : > { %v4579_v45 = vpop.f32.mrb[78].mxu0 }
 0x5f7   : > { %v4593_v50 = vadd.f32 %v6767_v13, %v4584_v51  ;;  %v5392_v9 = vpop.f32.mrb[79].mxu0  ;;  %v4601_v13 = vld [vmem:[%s6873_s12] sm:$0x3] }
 0x5f9   : > { %5671 = vtanh.f32 %v4593_v50 }
 0x5fb   : > { %v5668_v3 = vpop.eup %5667 }
 0x5fc   : > { %v5670_v17 = vpop.eup %5669  ;;  %v4597_v38 = vpack.c.bf16 %v5668_v3, %v5668_v3 }
 0x5fd   : > { %v5078_v20 = vpack.c.bf16 %v5670_v17, %v5668_v3  ;;  %v4660_v18 = vpack.c.bf16 %v5670_v17, %v5670_v17 }
 0x5fe   : > { %v4611_v57 = vrot.slane %v4597_v38, %v4610_v36  ;;  %v4602_v42 = vsel %vm6877_vm7, %v4597_v38, %v4601_v13 }
 0x5ff   : > { %4603 = vst [vmem:[%s6873_s12] sm:$0x3] %v4602_v42  ;;  %v4686_v8 = vrot.slane %v4660_v18, %v4610_v36  ;;  %v4669_v39 = vrot.slane %v5078_v20, %v4610_v36 }
 0x600   : > { %4628 = vrot.lane.b32.xlu0 %v4611_v57, %s5696_s22  ;;  %4612 = vrot.lane.b32.xlu1 %v4611_v57, %s5692_s18  ;;  %s5705_s18 = smov 100   ;;  %s5708_s22 = smov 98  }
 0x603   : > { %v5672_v29 = vpop.eup %5671 }
 0x604   : > { %4636 = vrot.lane.b32.xlu0 %v4611_v57, %s5697_s24  ;;  %4620 = vrot.lane.b32.xlu1 %v4611_v57, %s5694_s21  ;;  %v5079_v21 = vpack.c.bf16 %v5672_v29, %v5670_v17  ;;  %v4723_v47 = vpack.c.bf16 %v5672_v29, %v5672_v29  ;;  %s5707_s21 = smov 102  }
 0x606   : > { %v4747_v48 = vrot.slane %v4723_v47, %v4610_v36  ;;  %v4732_v43 = vrot.slane %v5079_v21, %v4610_v36 }
 0x608   : > { %4687 = vrot.lane.b32.xlu0 %v4686_v8, %s5701_s15  ;;  %4644 = vrot.lane.b32.xlu1 %v4611_v57, %s5698_s28 }
 0x60c   : > { %3454 = vrot.lane.b32.xlu0 %v6657_v19, %s5702_s17  ;;  %4652 = vrot.lane.b32.xlu1 %v4611_v57, %s5699_s29 }
 0x610   : > { %4693 = vrot.lane.b32.xlu0 %v4686_v8, %s5690_s23  ;;  %3464 = vrot.lane.b32.xlu1 %v6662_v14, %s5704_s10  ;;  %s5706_s23 = smov 104  }
 0x614   : > { %3466 = vrot.lane.b32.xlu0 %v6644_v55, %s5704_s10  ;;  %3468 = vrot.lane.b32.xlu1 %v6675_v11, %s5704_s10 }
 0x618   : > { %4699 = vrot.lane.b32.xlu0 %v4686_v8, %s5702_s17  ;;  %4705 = vrot.lane.b32.xlu1 %v4686_v8, %s5704_s10 }
 0x61c   : > { %3470 = vrot.lane.b32.xlu0 %v6657_v19, %s5704_s10  ;;  %3524 = vrot.lane.b32.xlu1 %v5097_v33, %s5705_s18  ;;  %v5104_v33 = vpack.c.bf16 %v6408_v30, %v6408_v30 }
 0x620   : > { %3526 = vrot.lane.b32.xlu0 %v5098_v37, %s5705_s18  ;;  %3528 = vrot.lane.b32.xlu1 %v5099_v31, %s5705_s18  ;;  %v5103_v31 = vpack.c.bf16 %v6402_v25, %v6402_v25 }
 0x624   : > { %3530 = vrot.lane.b32.xlu0 %v5100_v35, %s5705_s18  ;;  %4711 = vrot.lane.b32.xlu1 %v4686_v8, %s5706_s23  ;;  %v4617_v35 = vld [vmem:[%s6873_s12] sm:$0x3] }
 0x628   : > { %3480 = vrot.lane.b32.xlu0 %v6662_v14, %s5706_s23  ;;  %3482 = vrot.lane.b32.xlu1 %v6644_v55, %s5706_s23 }
 0x62c   : > { %3484 = vrot.lane.b32.xlu0 %v6675_v11, %s5706_s23  ;;  %3486 = vrot.lane.b32.xlu1 %v6657_v19, %s5706_s23 }
 0x630   : > { %3496 = vrot.lane.b32.xlu0 %v6662_v14, %s5707_s21  ;;  %3498 = vrot.lane.b32.xlu1 %v6644_v55, %s5707_s21 }
 0x634   : > { %4717 = vrot.lane.b32.xlu0 %v4686_v8, %s5707_s21  ;;  %4670 = vrot.lane.b32.xlu1 %v4669_v39, %s5700_s14 }
 0x638   : > { %4733 = vrot.lane.b32.xlu0 %v4732_v43, %s5705_s18  ;;  %3502 = vrot.lane.b32.xlu1 %v6657_v19, %s5707_s21  ;;  %v4690_v19 = vld [vmem:[%s6873_s12 + $0x2] sm:$0x3] }
 0x63c   : > { %3500 = vrot.lane.b32.xlu0 %v6675_v11, %s5707_s21  ;;  %3553 = vrot.lane.b32.xlu1 %v5101_v0, %s5708_s22 }
 0x640   : > { %3555 = vrot.lane.b32.xlu0 %v5102_v6, %s5708_s22  ;;  %3557 = vrot.lane.b32.xlu1 %v5103_v31, %s5708_s22 }
 0x644   : > { %4748 = vrot.lane.b32.xlu0 %v4747_v48, %s5708_s22 }
 0x648   : > { %3559 = vrot.lane.b32.xlu0 %v5104_v33, %s5708_s22 }
 0x672   : > { %v4629_v32 = vpop.permute.xlu0 %4628  ;;  %v4613_v25 = vpop.permute.xlu1 %4612 }
 0x673   : > { %v4618_v37 = vsel %vm6930_vm9, %v4613_v25, %v4617_v35 }
 0x674   : > { %4619 = vst [vmem:[%s6873_s12] sm:$0x3] %v4618_v37 }
 0x676   : > { %v4637_v55 = vpop.permute.xlu0 %4636  ;;  %v4621_v30 = vpop.permute.xlu1 %4620 }
 0x67a   : > { %v4688_v11 = vpop.permute.xlu0 %4687  ;;  %v4645_v49 = vpop.permute.xlu1 %4644 }
 0x67b   : > { %v4625_v52 = vld [vmem:[%s6873_s12] sm:$0x3]  ;;  %v4691_v46 = vsel %vm6877_vm7, %v4688_v11, %v4690_v19  ;;  %vm4647_vm7 = vcmask 779904  }
 0x67c   : > { %v4626_v53 = vsel %vm6940_vm11, %v4621_v30, %v4625_v52  ;;  %4692 = vst [vmem:[%s6873_s12 + $0x2] sm:$0x3] %v4691_v46  ;;  %vm6988_vm8 = vmand %vm4647_vm7, %vm4599_vm6 }
 0x67d   : > { %4627 = vst [vmem:[%s6873_s12] sm:$0x3] %v4626_v53 }
 0x67e   : > { %v3455_v56 = vpop.permute.xlu0 %3454  ;;  %v4653_v58 = vpop.permute.xlu1 %4652 }
 0x67f   : > { %3463 = vst.msk [vmem:[%s6318_s25 + $0x1c] sm:$0xf] %vm3301_vm14, %v3455_v56  ;;  %vm4639_vm14 = vcmask 648704  }
 0x680   : > { %vm6973_vm5 = vmand %vm4639_vm14, %vm4599_vm6 }
 0x682   : > { %v4694_v10 = vpop.permute.xlu0 %4693  ;;  %v3465_v41 = vpop.permute.xlu1 %3464 }
 0x683   : > { %v4696_v4 = vld [vmem:[%s6873_s12 + $0x2] sm:$0x3]  ;;  %3476 = vst.msk [vmem:[%s6318_s25 + $0x4] sm:$0xf] %vm3318_vm15, %v3465_v41 }
 0x684   : > { %v4633_v59 = vld [vmem:[%s6873_s12] sm:$0x3]  ;;  %v4697_v60 = vsel %vm6930_vm9, %v4694_v10, %v4696_v4 }
 0x685   : > { %v4634_v5 = vsel %vm6954_vm13, %v4629_v32, %v4633_v59  ;;  %4698 = vst [vmem:[%s6873_s12 + $0x2] sm:$0x3] %v4697_v60 }
 0x686   : > { %4635 = vst [vmem:[%s6873_s12] sm:$0x3] %v4634_v5  ;;  %v3467_v44 = vpop.permute.xlu0 %3466  ;;  %v3469_v62 = vpop.permute.xlu1 %3468 }
 0x687   : > { %3477 = vst.msk [vmem:[%s6318_s25 + $0xc] sm:$0xf] %vm3318_vm15, %v3467_v44  ;;  %3478 = vst.msk [vmem:[%s6318_s25 + $0x14] sm:$0xf] %vm3318_vm15, %v3469_v62 }
 0x68a   : > { %v4700_v61 = vpop.permute.xlu0 %4699  ;;  %v4706_v7 = vpop.permute.xlu1 %4705 }
 0x68c   : > { %v4702_v1 = vld [vmem:[%s6873_s12 + $0x2] sm:$0x3] }
 0x68d   : > { %v4641_v12 = vld [vmem:[%s6873_s12] sm:$0x3]  ;;  %v4703_v54 = vsel %vm6940_vm11, %v4700_v61, %v4702_v1 }
 0x68e   : > { %v4642_v15 = vsel %vm6973_vm5, %v4637_v55, %v4641_v12  ;;  %4704 = vst [vmem:[%s6873_s12 + $0x2] sm:$0x3] %v4703_v54  ;;  %v3471_v16 = vpop.permute.xlu0 %3470  ;;  %v3525_v22 = vpop.permute.xlu1 %3524 }
 0x68f   : > { %4643 = vst [vmem:[%s6873_s12] sm:$0x3] %v4642_v15  ;;  %3479 = vst.msk [vmem:[%s6318_s25 + $0x1c] sm:$0xf] %vm3318_vm15, %v3471_v16  ;;  %vm4655_vm15 = vcmask 911104   ;;  %v3532_v57 = vrot.slane %v3525_v22, 4 }
 0x690   : > { %vm7005_vm9 = vmand %vm4655_vm15, %vm4599_vm6 }
 0x691   : > { %v3537_v8 = vsel %vm3536_vm10, %v3525_v22, %v3532_v57 }
 0x692   : > { %v3527_v23 = vpop.permute.xlu0 %3526  ;;  %v3529_v24 = vpop.permute.xlu1 %3528 }
 0x693   : > { %v3533_v42 = vrot.slane %v3527_v23, 4  ;;  %v3534_v30 = vrot.slane %v3529_v24, 4 }
 0x695   : > { %v4708_v51 = vld [vmem:[%s6873_s12 + $0x2] sm:$0x3]  ;;  %v3538_v48 = vsel %vm3536_vm10, %v3527_v23, %v3533_v42  ;;  %v3539_v52 = vsel %vm3536_vm10, %v3529_v24, %v3534_v30 }
 0x696   : > { %v4649_v28 = vld [vmem:[%s6873_s12] sm:$0x3]  ;;  %v4709_v34 = vsel %vm6954_vm13, %v4706_v7, %v4708_v51  ;;  %v3531_v45 = vpop.permute.xlu0 %3530  ;;  %v4712_v50 = vpop.permute.xlu1 %4711 }
 0x697   : > { %v4650_v9 = vsel %vm6988_vm8, %v4645_v49, %v4649_v28  ;;  %4710 = vst [vmem:[%s6873_s12 + $0x2] sm:$0x3] %v4709_v34  ;;  %v3535_v0 = vrot.slane %v3531_v45, 4 }
 0x698   : > { %4651 = vst [vmem:[%s6873_s12] sm:$0x3] %v4650_v9 }
 0x699   : > { %v3540_v19 = vsel %vm3536_vm10, %v3531_v45, %v3535_v0 }
 0x69a   : > { %v3481_v36 = vpop.permute.xlu0 %3480  ;;  %v3483_v3 = vpop.permute.xlu1 %3482 }
 0x69b   : > { %3492 = vst.msk [vmem:[%s6318_s25 + $0x4] sm:$0xf] %vm3335_vm0, %v3481_v36  ;;  %3493 = vst.msk [vmem:[%s6318_s25 + $0xc] sm:$0xf] %vm3335_vm0, %v3483_v3 }
 0x69e   : > { %v4714_v13 = vld [vmem:[%s6873_s12 + $0x2] sm:$0x3]  ;;  %v3485_v17 = vpop.permute.xlu0 %3484  ;;  %v3487_v38 = vpop.permute.xlu1 %3486 }
 0x69f   : > { %v4657_v20 = vld [vmem:[%s6873_s12] sm:$0x3]  ;;  %v4715_v18 = vsel %vm6973_vm5, %v4712_v50, %v4714_v13  ;;  %3494 = vst.msk [vmem:[%s6318_s25 + $0x14] sm:$0xf] %vm3335_vm0, %v3485_v17  ;;  %3495 = vst.msk [vmem:[%s6318_s25 + $0x1c] sm:$0xf] %vm3335_vm0, %v3487_v38 }
 0x6a0   : > { %v4658_v29 = vsel %vm7005_vm9, %v4653_v58, %v4657_v20  ;;  %4716 = vst [vmem:[%s6873_s12 + $0x2] sm:$0x3] %v4715_v18  ;;  %vm4675_vm0 = vcmask 1042304  }
 0x6a1   : > { %4659 = vst [vmem:[%s6873_s12] sm:$0x3] %v4658_v29  ;;  %vm7033_vm11 = vmand %vm4675_vm0, %vm4599_vm6 }
 0x6a2   : > { %v3497_v21 = vpop.permute.xlu0 %3496  ;;  %v3499_v47 = vpop.permute.xlu1 %3498 }
 0x6a3   : > { %3508 = vst.msk [vmem:[%s6318_s25 + $0x4] sm:$0xf] %vm3352_vm1, %v3497_v21  ;;  %3509 = vst.msk [vmem:[%s6318_s25 + $0xc] sm:$0xf] %vm3352_vm1, %v3499_v47 }
 0x6a4   : > { %3545 = vst.msk [vmem:[%s6318_s25 + $0x4] sm:$0xf] %vm3369_vm2, %v3537_v8  ;;  %3546 = vst.msk [vmem:[%s6318_s25 + $0xc] sm:$0xf] %vm3369_vm2, %v3538_v48 }
 0x6a6   : > { %v4718_v39 = vpop.permute.xlu0 %4717  ;;  %v4671_v43 = vpop.permute.xlu1 %4670 }
 0x6a7   : > { %v4720_v6 = vld [vmem:[%s6873_s12 + $0x2] sm:$0x3]  ;;  %v4672_v33 = vrot.slane %v4671_v43, 2 }
 0x6a8   : > { %v4721_v27 = vsel %vm6988_vm8, %v4718_v39, %v4720_v6  ;;  %v4677_v32 = vld [vmem:[%s6873_s12] sm:$0x3] }
 0x6a9   : > { %4722 = vst [vmem:[%s6873_s12 + $0x2] sm:$0x3] %v4721_v27  ;;  %v4673_v35 = vsel %vm3398_vm3, %v4671_v43, %v4672_v33 }
 0x6aa   : > { %v4678_v25 = vsel %vm7033_vm11, %v4673_v35, %v4677_v32  ;;  %v4734_v37 = vpop.permute.xlu0 %4733  ;;  %v3503_v55 = vpop.permute.xlu1 %3502 }
 0x6ab   : > { %4679 = vst [vmem:[%s6873_s12] sm:$0x3] %v4678_v25  ;;  %3511 = vst.msk [vmem:[%s6318_s25 + $0x1c] sm:$0xf] %vm3352_vm1, %v3503_v55  ;;  %v4735_v14 = vrot.slane %v4734_v37, 2 }
 0x6ac   : > { %3548 = vst.msk [vmem:[%s6318_s25 + $0x1c] sm:$0xf] %vm3369_vm2, %v3540_v19 }
 0x6ad   : > { %v4736_v46 = vsel %vm3536_vm10, %v4734_v37, %v4735_v14 }
 0x6ae   : > { %v3501_v11 = vpop.permute.xlu0 %3500  ;;  %v3554_v49 = vpop.permute.xlu1 %3553 }
 0x6af   : > { %3510 = vst.msk [vmem:[%s6318_s25 + $0x14] sm:$0xf] %vm3352_vm1, %v3501_v11 }
 0x6b0   : > { %3565 = vst.msk [vmem:[%s6318_s25 + $0x4] sm:$0xf] %vm3407_vm4, %v3554_v49  ;;  %v4738_v53 = vld [vmem:[%s6873_s12 + $0x2] sm:$0x3] }
 0x6b1   : > { %3547 = vst.msk [vmem:[%s6318_s25 + $0x14] sm:$0xf] %vm3369_vm2, %v3539_v52  ;;  %v4739_v56 = vsel %vm7005_vm9, %v4736_v46, %v4738_v53 }
 0x6b2   : > { %4740 = vst [vmem:[%s6873_s12 + $0x2] sm:$0x3] %v4739_v56  ;;  %v3556_v58 = vpop.permute.xlu0 %3555  ;;  %v3558_v40 = vpop.permute.xlu1 %3557 }
 0x6b3   : > { %3566 = vst.msk [vmem:[%s6318_s25 + $0xc] sm:$0xf] %vm3407_vm4, %v3556_v58  ;;  %3567 = vst.msk [vmem:[%s6318_s25 + $0x14] sm:$0xf] %vm3407_vm4, %v3558_v40 }
 0x6b6   : > { %v4749_v10 = vpop.permute.xlu0 %4748 }
 0x6b9   : > { %v4751_v41 = vld [vmem:[%s6873_s12 + $0x2] sm:$0x3] }
 0x6ba   : > { %v4752_v4 = vsel %vm7033_vm11, %v4749_v10, %v4751_v41  ;;  %v3560_v59 = vpop.permute.xlu0 %3559 }
 0x6bb   : > { %4753 = vst [vmem:[%s6873_s12 + $0x2] sm:$0x3] %v4752_v4  ;;  %3568 = vst.msk [vmem:[%s6318_s25 + $0x1c] sm:$0xf] %vm3407_vm4, %v3560_v59 }
 0x6bc PF: > { %s20_s30 = sadd.s32 1, %s5681_s30  }
 0x6bd   : > { %p17_p4 = scmp.ge.s32.totalorder %s20_s30, 4  }
 0x6bf   :  { %19 = sbr.rel (!%p17_p4) target bundleno = 1 (0x1), region = 118 }

</bundles_post_ra>
